<compile_context>
chip_gen: v7x
topology: tpu7x:2x2x1
jax: 0.10.0
libtpu: 0.0.40
codegen_flags: <defaults>
</compile_context>

<pallas_src>
import functools

import jax
import jax.numpy as jnp
from jax.experimental import pallas as pl
from jax.experimental.pallas import tpu as pltpu

LN_EPS = 1e-5  # torch nn.LayerNorm default

# Order of the per-layer vector rows inside the packed weight slab.
_VEC_ORDER = ("a1_lng", "a1_lnb", "a1_bout",
              "a2_lng", "a2_lnb", "a2_bout",
              "ff_lng", "ff_lnb", "ff_b1", "ff_b2")


def _round8(x):
    return (x + 7) // 8 * 8


def _layer_layout(dim, heads, dim_head, mlp_dim):
    """Row offsets of each weight tensor inside one layer's slab region.

    All offsets are multiples of 8 (sublane aligned); the slab is 128-lane
    wide (lane dense), matrices/vectors occupy the leading columns.
    """
    inner = heads * dim_head
    off = {}
    r = 0
    for name, nrows in (("a1_wqkv", dim), ("a2_wqkv", dim),
                        ("a1_wout", inner), ("a2_wout", inner),
                        ("ff_w1", dim), ("ff_w2", mlp_dim)):
        off[name] = r
        r += _round8(nrows)
    off["vec"] = r
    r += _round8(len(_VEC_ORDER))
    layer_rows = r
    slab_w = 128 * (-(-max(3 * inner, inner, dim, mlp_dim) // 128))
    return off, layer_rows, slab_w


# ----------------------------- in-kernel helpers -----------------------------

def _layernorm(x, gamma, beta):
    # x: (rows, dim); gamma/beta: (1, dim)
    mean = jnp.mean(x, axis=-1, keepdims=True)
    var = jnp.mean((x - mean) ** 2, axis=-1, keepdims=True)
    return (x - mean) * jax.lax.rsqrt(var + LN_EPS) * gamma + beta


def _erf(x):
    # Abramowitz & Stegun 7.1.26 rational approx (|err| < 1.5e-7); uses only
    # exp/mul/add so it lowers cleanly on the VPU/EUP.
    p = 0.3275911
    a1, a2, a3, a4, a5 = (0.254829592, -0.284496736, 1.421413741,
                          -1.453152027, 1.061405429)
    sgn = jnp.where(x >= 0.0, 1.0, -1.0)
    ax = jnp.abs(x)
    t = 1.0 / (1.0 + p * ax)
    poly = ((((a5 * t + a4) * t + a3) * t + a2) * t + a1) * t
    return sgn * (1.0 - poly * jnp.exp(-ax * ax))


def _gelu_exact(x):
    # torch nn.GELU() default (erf-based)
    return 0.5 * x * (1.0 + _erf(x * 0.7071067811865476))


def _attention(x, ln_g, ln_b, w_qkv, w_out, b_out, *, batch, seq, heads,
               dim_head):
    """Residual pre-norm MHSA on (batch*seq, dim) rows (batch-major).

    The attention scale is already folded into the Q columns of w_qkv.
    Head outputs are NOT concatenated along lanes; instead each head's output
    is projected through its own 8-aligned sublane slice of w_out and
    accumulated.
    """
    inner = heads * dim_head
    dim_out = w_out.shape[-1]
    xn = _layernorm(x, ln_g, ln_b)
    qkv = jnp.dot(xn, w_qkv, preferred_element_type=jnp.float32)  # (b*n, 3*inner)

    ys = []
    for b in range(batch):                        # static unroll: batch = 2
        r0 = b * seq
        y_b = jnp.zeros((seq, dim_out), jnp.float32)
        for h in range(heads):                    # static unroll: heads = 4
            lo = h * dim_head
            q = qkv[r0:r0 + seq, 0 * inner + lo:0 * inner + lo + dim_head]
            k = qkv[r0:r0 + seq, 1 * inner + lo:1 * inner + lo + dim_head]
            v = qkv[r0:r0 + seq, 2 * inner + lo:2 * inner + lo + dim_head]
            dots = jax.lax.dot_general(
                q, k, (((1,), (1,)), ((), ())),
                preferred_element_type=jnp.float32)               # (seq, seq)
            dots = dots - jnp.max(dots, axis=-1, keepdims=True)
            e = jnp.exp(dots)
            attn = e / jnp.sum(e, axis=-1, keepdims=True)         # exact divide
            head_out = jnp.dot(attn, v, preferred_element_type=jnp.float32)
            # Sublane-aligned slice of w_out; accumulate the output projection.
            y_b = y_b + jnp.dot(head_out, w_out[lo:lo + dim_head, :],
                                preferred_element_type=jnp.float32)
        ys.append(y_b)
    # Single 8-aligned sublane concat over the batch axis (batch=2).
    y = (ys[0] if batch == 1 else jnp.concatenate(ys, axis=0)) + b_out
    return y + x


def _ffn(x, ln_g, ln_b, w1, b1, w2, b2):
    xn = _layernorm(x, ln_g, ln_b)
    h = jnp.dot(xn, w1, preferred_element_type=jnp.float32) + b1
    h = _gelu_exact(h)
    y = jnp.dot(h, w2, preferred_element_type=jnp.float32) + b2
    return y + x


# --------------------------------- fused kernel -------------------------------

def dual_encoder_kernel(x_ref, w_ref, o_ref, *, depth, layer_rows, off,
                        batch, seq, heads, dim_head, dim, mlp_dim):
    inner = heads * dim_head
    x = x_ref[...].astype(jnp.float32)            # (batch*seq, dim)

    for l in range(depth):                        # static unroll: depth = 2
        base = l * layer_rows

        def vec(i, width, base=base):
            r = base + off["vec"] + i
            return w_ref[r:r + 1, 0:width]        # (1, width)

        # --- attention 1 ---
        x = _attention(
            x, vec(0, dim), vec(1, dim),
            w_ref[base + off["a1_wqkv"]:base + off["a1_wqkv"] + dim, 0:3 * inner],
            w_ref[base + off["a1_wout"]:base + off["a1_wout"] + inner, 0:dim],
            vec(2, dim),
            batch=batch, seq=seq, heads=heads, dim_head=dim_head)
        # --- attention 2 ---
        x = _attention(
            x, vec(3, dim), vec(4, dim),
            w_ref[base + off["a2_wqkv"]:base + off["a2_wqkv"] + dim, 0:3 * inner],
            w_ref[base + off["a2_wout"]:base + off["a2_wout"] + inner, 0:dim],
            vec(5, dim),
            batch=batch, seq=seq, heads=heads, dim_head=dim_head)
        # --- feed-forward ---
        x = _ffn(
            x, vec(6, dim), vec(7, dim),
            w_ref[base + off["ff_w1"]:base + off["ff_w1"] + dim, 0:mlp_dim],
            vec(8, mlp_dim),
            w_ref[base + off["ff_w2"]:base + off["ff_w2"] + mlp_dim, 0:dim],
            vec(9, dim))

    o_ref[...] = x.astype(o_ref.dtype)


# ------------------------------ pallas wrapper ---------------------------------

def dual_encoder_forward(x_A, x_B, w_slab, *, dim, depth, heads, dim_head,
                         mlp_dim):
    b, n, d = x_A.shape
    assert d == dim
    rows = b * n
    off, layer_rows, slab_w = _layer_layout(dim, heads, dim_head, mlp_dim)

    # Host-side layout plumbing: merge (batch, seq) so in-kernel matmul M = b*n
    # and stack the two independent streams on the leading (parallel) grid axis.
    x = jnp.stack([x_A.reshape(rows, dim), x_B.reshape(rows, dim)], axis=0)

    kernel = functools.partial(
        dual_encoder_kernel, depth=depth, layer_rows=layer_rows, off=off,
        batch=b, seq=n, heads=heads, dim_head=dim_head, dim=dim,
        mlp_dim=mlp_dim)

    act_spec = pl.BlockSpec((pl.Squeezed(), rows, dim), lambda s: (s, 0, 0))
    w_spec = pl.BlockSpec((pl.Squeezed(), depth * layer_rows, slab_w),
                          lambda s: (s, 0, 0))

    out = pl.pallas_call(
        kernel,
        out_shape=jax.ShapeDtypeStruct((2, rows, dim), x_A.dtype),
        grid=(2,),
        in_specs=[act_spec, w_spec],
        out_specs=act_spec,
        compiler_params=pltpu.CompilerParams(
            # stream axis: independent work -> both TCs on v7x; on v5e/v6e it
            # is simply a 2-iteration serial loop.
            dimension_semantics=("parallel",),
            # Working set per stream < 1 MiB; 32 MiB is safe on all generations
            # (v7x: 64 MiB physical, 32 MiB scoped default).
            vmem_limit_bytes=32 * 1024 * 1024),
    )(x, w_slab)

    return out[0].reshape(b, n, dim), out[1].reshape(b, n, dim)


# ----------------------------- parameter handling ------------------------------

def init_params(key, dim, depth, heads, dim_head, mlp_dim):
    inner = heads * dim_head
    keys = iter(jax.random.split(key, 4 * depth * 2 * 16))

    def nrm(shape, scale=0.02):
        return jax.random.normal(next(keys), shape, jnp.float32) * scale

    def attn_p():
        return dict(ln_g=jnp.ones((1, dim), jnp.float32),
                    ln_b=jnp.zeros((1, dim), jnp.float32),
                    w_qkv=nrm((dim, 3 * inner)),
                    w_out=nrm((inner, dim)),
                    b_out=nrm((1, dim)))

    def ff_p():
        return dict(ln_g=jnp.ones((1, dim), jnp.float32),
                    ln_b=jnp.zeros((1, dim), jnp.float32),
                    w1=nrm((dim, mlp_dim)), b1=nrm((1, mlp_dim)),
                    w2=nrm((mlp_dim, dim)), b2=nrm((1, dim)))

    def layer():
        return dict(attn1=attn_p(), attn2=attn_p(), ff=ff_p())

    return dict(A=[layer() for _ in range(depth)],
                B=[layer() for _ in range(depth)])


def pack_params(params, *, dim, depth, heads, dim_head, mlp_dim):
    """Pack all per-stream / per-layer weights into one lane-dense slab of
    shape (2, depth*LAYER_ROWS, 128).  The attention scale (dim**-0.5) is
    folded into the Q columns of w_qkv (one-time host transform)."""
    inner = heads * dim_head
    scale = dim ** (-0.5)   # NOTE: module scales by model dim, not dim_head
    off, layer_rows, slab_w = _layer_layout(dim, heads, dim_head, mlp_dim)
    slab = jnp.zeros((2, depth * layer_rows, slab_w), jnp.float32)

    def put(slab, si, row, arr):
        r, c = arr.shape
        return slab.at[si, row:row + r, 0:c].set(arr)

    for si, s in enumerate(("A", "B")):
        for l in range(depth):
            lp = params[s][l]
            base = l * layer_rows
            a1, a2, ff = lp["attn1"], lp["attn2"], lp["ff"]
            wqkv1 = jnp.concatenate(
                [a1["w_qkv"][:, :inner] * scale, a1["w_qkv"][:, inner:]], -1)
            wqkv2 = jnp.concatenate(
                [a2["w_qkv"][:, :inner] * scale, a2["w_qkv"][:, inner:]], -1)
            slab = put(slab, si, base + off["a1_wqkv"], wqkv1)
            slab = put(slab, si, base + off["a2_wqkv"], wqkv2)
            slab = put(slab, si, base + off["a1_wout"], a1["w_out"])
            slab = put(slab, si, base + off["a2_wout"], a2["w_out"])
            slab = put(slab, si, base + off["ff_w1"], ff["w1"])
            slab = put(slab, si, base + off["ff_w2"], ff["w2"])
            vecs = (a1["ln_g"], a1["ln_b"], a1["b_out"],
                    a2["ln_g"], a2["ln_b"], a2["b_out"],
                    ff["ln_g"], ff["ln_b"], ff["b1"], ff["b2"])
            for i, v in enumerate(vecs):
                slab = put(slab, si, base + off["vec"] + i, v)
    return slab


# ------------------------- pure-JAX reference (check) --------------------------

def _ref_ln(x, g, b):
    mean = jnp.mean(x, axis=-1, keepdims=True)
    var = jnp.mean((x - mean) ** 2, axis=-1, keepdims=True)
    return (x - mean) * jax.lax.rsqrt(var + LN_EPS) * g + b


def _ref_attn(x, p, heads, dim_head):
    b, n, dim = x.shape
    scale = dim ** (-0.5)
    xn = _ref_ln(x, p["ln_g"][0], p["ln_b"][0])
    qkv = xn @ p["w_qkv"]
    q, k, v = jnp.split(qkv, 3, axis=-1)
    sh = lambda t: t.reshape(b, n, heads, dim_head).transpose(0, 2, 1, 3)
    q, k, v = sh(q), sh(k), sh(v)
    dots = jnp.einsum('bhid,bhjd->bhij', q, k) * scale
    attn = jax.nn.softmax(dots, axis=-1)
    out = jnp.einsum('bhij,bhjd->bhid', attn, v)
    out = out.transpose(0, 2, 1, 3).reshape(b, n, heads * dim_head)
    return out @ p["w_out"] + p["b_out"][0] + x


def _ref_ffn(x, p):
    xn = _ref_ln(x, p["ln_g"][0], p["ln_b"][0])
    h = jax.nn.gelu(xn @ p["w1"] + p["b1"][0], approximate=False)
    return h @ p["w2"] + p["b2"][0] + x


def ref_forward(x_A, x_B, params, heads, dim_head):
    for lA, lB in zip(params["A"], params["B"]):
        x_A = _ref_attn(x_A, lA["attn1"], heads, dim_head)
        x_B = _ref_attn(x_B, lB["attn1"], heads, dim_head)
        x_A = _ref_attn(x_A, lA["attn2"], heads, dim_head)
        x_B = _ref_attn(x_B, lB["attn2"], heads, dim_head)
        x_A = _ref_ffn(x_A, lA["ff"])
        x_B = _ref_ffn(x_B, lB["ff"])
    return x_A, x_B


# ----------------------------------- main --------------------------------------

if __name__ == "__main__":
    # Dual_encoder(dim=32, depth=2, heads=4, dim_head=8, mlp_dim=64, dropout=0.0)
    dim, depth, heads, dim_head, mlp_dim = 32, 2, 4, 8, 64
    batch, seq = 2, 8

    root = jax.random.PRNGKey(0)
    k_xa, k_xb, k_p = jax.random.split(root, 3)
    x_A = jax.random.normal(k_xa, (batch, seq, dim), jnp.float32)
    x_B = jax.random.normal(k_xb, (batch, seq, dim), jnp.float32)
    params = init_params(k_p, dim, depth, heads, dim_head, mlp_dim)
    w_slab = pack_params(params, dim=dim, depth=depth, heads=heads,
                         dim_head=dim_head, mlp_dim=mlp_dim)

    fwd = jax.jit(functools.partial(dual_encoder_forward, dim=dim, depth=depth,
                                    heads=heads, dim_head=dim_head,
                                    mlp_dim=mlp_dim))
    out_A, out_B = fwd(x_A, x_B, w_slab)
    out_A = jax.block_until_ready(out_A)
    out_B = jax.block_until_ready(out_B)

    ref_A, ref_B = ref_forward(x_A, x_B, params, heads, dim_head)
    assert out_A.shape == (batch, seq, dim) and out_B.shape == (batch, seq, dim)
    assert jnp.allclose(out_A, ref_A, atol=5e-4, rtol=5e-4)
    assert jnp.allclose(out_B, ref_B, atol=5e-4, rtol=5e-4)

    print("KERNEL_OK")
</pallas_src>

<mosaic_0001>
module attributes {stable_mosaic.version = 11 : i64} {
  func.func @dual_encoder_kernel(%arg0: i32, %arg1: memref<1x16x32xf32, #tpu.memory_space<vmem>>, %arg2: memref<1x480x128xf32, #tpu.memory_space<vmem>>, %arg3: memref<1x16x32xf32, #tpu.memory_space<vmem>>) attributes {dimension_semantics = [#tpu.dimension_semantics<parallel>], iteration_bounds = array<i64: 2>, scalar_prefetch = 0 : i64, scratch_operands = 0 : i64, tpu.core_type = #tpu.core_type<tc>, window_params = [{transform_indices = @transform_0, window_bounds = array<i64: 1, 16, 32>}, {transform_indices = @transform_1, window_bounds = array<i64: 1, 480, 128>}, {transform_indices = @transform_2, window_bounds = array<i64: 1, 16, 32>}]} {
    %c0 = arith.constant 0 : index
    %c0_0 = arith.constant 0 : index
    %c0_1 = arith.constant 0 : index
    %0 = vector.load %arg1[%c0, %c0_0, %c0_1] : memref<1x16x32xf32, #tpu.memory_space<vmem>>, vector<1x16x32xf32>
    %1 = vector.shape_cast %0 : vector<1x16x32xf32> to vector<16x32xf32>
    %c0_2 = arith.constant 0 : index
    %c224 = arith.constant 224 : index
    %c0_3 = arith.constant 0 : index
    %2 = vector.load %arg2[%c0_2, %c224, %c0_3] : memref<1x480x128xf32, #tpu.memory_space<vmem>>, vector<1x1x32xf32>
    %3 = vector.shape_cast %2 : vector<1x1x32xf32> to vector<1x32xf32>
    %c0_4 = arith.constant 0 : index
    %c225 = arith.constant 225 : index
    %c0_5 = arith.constant 0 : index
    %4 = vector.load %arg2[%c0_4, %c225, %c0_5] : memref<1x480x128xf32, #tpu.memory_space<vmem>>, vector<1x1x32xf32>
    %5 = vector.shape_cast %4 : vector<1x1x32xf32> to vector<1x32xf32>
    %c0_6 = arith.constant 0 : index
    %c0_7 = arith.constant 0 : index
    %c0_8 = arith.constant 0 : index
    %6 = vector.load %arg2[%c0_6, %c0_7, %c0_8] : memref<1x480x128xf32, #tpu.memory_space<vmem>>, vector<1x32x96xf32>
    %7 = vector.shape_cast %6 : vector<1x32x96xf32> to vector<32x96xf32>
    %c0_9 = arith.constant 0 : index
    %c64 = arith.constant 64 : index
    %c0_10 = arith.constant 0 : index
    %8 = vector.load %arg2[%c0_9, %c64, %c0_10] : memref<1x480x128xf32, #tpu.memory_space<vmem>>, vector<1x32x32xf32>
    %9 = vector.shape_cast %8 : vector<1x32x32xf32> to vector<32x32xf32>
    %c0_11 = arith.constant 0 : index
    %c226 = arith.constant 226 : index
    %c0_12 = arith.constant 0 : index
    %10 = vector.load %arg2[%c0_11, %c226, %c0_12] : memref<1x480x128xf32, #tpu.memory_space<vmem>>, vector<1x1x32xf32>
    %11 = vector.shape_cast %10 : vector<1x1x32xf32> to vector<1x32xf32>
    %cst = arith.constant dense<0.000000e+00> : vector<16xf32>
    %12 = vector.multi_reduction <add>, %1, %cst [1] : vector<16x32xf32> to vector<16xf32>
    %13 = vector.shape_cast %12 : vector<16xf32> to vector<16x1xf32>
    %cst_13 = arith.constant 3.200000e+01 : f32
    %14 = vector.broadcast %cst_13 : f32 to vector<16x1xf32>
    %15 = arith.divf %13, %14 : vector<16x1xf32>
    %16 = vector.broadcast %15 : vector<16x1xf32> to vector<16x32xf32>
    %17 = arith.subf %1, %16 : vector<16x32xf32>
    %18 = arith.mulf %17, %17 : vector<16x32xf32>
    %cst_14 = arith.constant dense<0.000000e+00> : vector<16xf32>
    %19 = vector.multi_reduction <add>, %18, %cst_14 [1] : vector<16x32xf32> to vector<16xf32>
    %20 = vector.shape_cast %19 : vector<16xf32> to vector<16x1xf32>
    %cst_15 = arith.constant 3.200000e+01 : f32
    %21 = vector.broadcast %cst_15 : f32 to vector<16x1xf32>
    %22 = arith.divf %20, %21 : vector<16x1xf32>
    %23 = vector.broadcast %15 : vector<16x1xf32> to vector<16x32xf32>
    %24 = arith.subf %1, %23 : vector<16x32xf32>
    %cst_16 = arith.constant 9.99999974E-6 : f32
    %25 = vector.broadcast %cst_16 : f32 to vector<16x1xf32>
    %26 = arith.addf %22, %25 : vector<16x1xf32>
    %27 = math.rsqrt %26 : vector<16x1xf32>
    %28 = vector.broadcast %27 : vector<16x1xf32> to vector<16x32xf32>
    %29 = arith.mulf %24, %28 : vector<16x32xf32>
    %30 = vector.broadcast %3 : vector<1x32xf32> to vector<16x32xf32>
    %31 = arith.mulf %29, %30 : vector<16x32xf32>
    %32 = vector.broadcast %5 : vector<1x32xf32> to vector<16x32xf32>
    %33 = arith.addf %31, %32 : vector<16x32xf32>
    %cst_17 = arith.constant dense<0.000000e+00> : vector<16x96xf32>
    %34 = tpu.matmul %33, %7, %cst_17 {dimension_numbers = #tpu.dot_dimension_numbers<[1], [0], [0], [1], [0, 0, 1, 1], [], []>} : vector<16x32xf32>, vector<32x96xf32>, vector<16x96xf32> -> vector<16x96xf32>
    %cst_18 = arith.constant 0.000000e+00 : f32
    %35 = vector.broadcast %cst_18 : f32 to vector<8x32xf32>
    %36 = vector.extract_strided_slice %34 {offsets = [0, 0], sizes = [8, 8], strides = [1, 1]} : vector<16x96xf32> to vector<8x8xf32>
    %37 = vector.extract_strided_slice %34 {offsets = [0, 32], sizes = [8, 8], strides = [1, 1]} : vector<16x96xf32> to vector<8x8xf32>
    %38 = vector.extract_strided_slice %34 {offsets = [0, 64], sizes = [8, 8], strides = [1, 1]} : vector<16x96xf32> to vector<8x8xf32>
    %cst_19 = arith.constant dense<0.000000e+00> : vector<8x8xf32>
    %39 = tpu.matmul %36, %37, %cst_19 {dimension_numbers = #tpu.dot_dimension_numbers<[1], [1], [0], [0], [0, 0, 1, 0], [], []>} : vector<8x8xf32>, vector<8x8xf32>, vector<8x8xf32> -> vector<8x8xf32>
    %cst_20 = arith.constant dense<0xFF800000> : vector<8xf32>
    %40 = vector.multi_reduction <maximumf>, %39, %cst_20 [1] : vector<8x8xf32> to vector<8xf32>
    %41 = vector.shape_cast %40 : vector<8xf32> to vector<8x1xf32>
    %42 = vector.broadcast %41 : vector<8x1xf32> to vector<8x8xf32>
    %43 = arith.subf %39, %42 : vector<8x8xf32>
    %44 = math.exp %43 : vector<8x8xf32>
    %cst_21 = arith.constant dense<0.000000e+00> : vector<8xf32>
    %45 = vector.multi_reduction <add>, %44, %cst_21 [1] : vector<8x8xf32> to vector<8xf32>
    %46 = vector.shape_cast %45 : vector<8xf32> to vector<8x1xf32>
    %47 = vector.broadcast %46 : vector<8x1xf32> to vector<8x8xf32>
    %48 = arith.divf %44, %47 : vector<8x8xf32>
    %cst_22 = arith.constant dense<0.000000e+00> : vector<8x8xf32>
    %49 = tpu.matmul %48, %38, %cst_22 {dimension_numbers = #tpu.dot_dimension_numbers<[1], [0], [0], [1], [0, 0, 1, 1], [], []>} : vector<8x8xf32>, vector<8x8xf32>, vector<8x8xf32> -> vector<8x8xf32>
    %50 = vector.extract_strided_slice %9 {offsets = [0, 0], sizes = [8, 32], strides = [1, 1]} : vector<32x32xf32> to vector<8x32xf32>
    %cst_23 = arith.constant dense<0.000000e+00> : vector<8x32xf32>
    %51 = tpu.matmul %49, %50, %cst_23 {dimension_numbers = #tpu.dot_dimension_numbers<[1], [0], [0], [1], [0, 0, 1, 1], [], []>} : vector<8x8xf32>, vector<8x32xf32>, vector<8x32xf32> -> vector<8x32xf32>
    %52 = arith.addf %35, %51 : vector<8x32xf32>
    %53 = vector.extract_strided_slice %34 {offsets = [0, 8], sizes = [8, 8], strides = [1, 1]} : vector<16x96xf32> to vector<8x8xf32>
    %54 = vector.extract_strided_slice %34 {offsets = [0, 40], sizes = [8, 8], strides = [1, 1]} : vector<16x96xf32> to vector<8x8xf32>
    %55 = vector.extract_strided_slice %34 {offsets = [0, 72], sizes = [8, 8], strides = [1, 1]} : vector<16x96xf32> to vector<8x8xf32>
    %cst_24 = arith.constant dense<0.000000e+00> : vector<8x8xf32>
    %56 = tpu.matmul %53, %54, %cst_24 {dimension_numbers = #tpu.dot_dimension_numbers<[1], [1], [0], [0], [0, 0, 1, 0], [], []>} : vector<8x8xf32>, vector<8x8xf32>, vector<8x8xf32> -> vector<8x8xf32>
    %cst_25 = arith.constant dense<0xFF800000> : vector<8xf32>
    %57 = vector.multi_reduction <maximumf>, %56, %cst_25 [1] : vector<8x8xf32> to vector<8xf32>
    %58 = vector.shape_cast %57 : vector<8xf32> to vector<8x1xf32>
    %59 = vector.broadcast %58 : vector<8x1xf32> to vector<8x8xf32>
    %60 = arith.subf %56, %59 : vector<8x8xf32>
    %61 = math.exp %60 : vector<8x8xf32>
    %cst_26 = arith.constant dense<0.000000e+00> : vector<8xf32>
    %62 = vector.multi_reduction <add>, %61, %cst_26 [1] : vector<8x8xf32> to vector<8xf32>
    %63 = vector.shape_cast %62 : vector<8xf32> to vector<8x1xf32>
    %64 = vector.broadcast %63 : vector<8x1xf32> to vector<8x8xf32>
    %65 = arith.divf %61, %64 : vector<8x8xf32>
    %cst_27 = arith.constant dense<0.000000e+00> : vector<8x8xf32>
    %66 = tpu.matmul %65, %55, %cst_27 {dimension_numbers = #tpu.dot_dimension_numbers<[1], [0], [0], [1], [0, 0, 1, 1], [], []>} : vector<8x8xf32>, vector<8x8xf32>, vector<8x8xf32> -> vector<8x8xf32>
    %67 = vector.extract_strided_slice %9 {offsets = [8, 0], sizes = [8, 32], strides = [1, 1]} : vector<32x32xf32> to vector<8x32xf32>
    %cst_28 = arith.constant dense<0.000000e+00> : vector<8x32xf32>
    %68 = tpu.matmul %66, %67, %cst_28 {dimension_numbers = #tpu.dot_dimension_numbers<[1], [0], [0], [1], [0, 0, 1, 1], [], []>} : vector<8x8xf32>, vector<8x32xf32>, vector<8x32xf32> -> vector<8x32xf32>
    %69 = arith.addf %52, %68 : vector<8x32xf32>
    %70 = vector.extract_strided_slice %34 {offsets = [0, 16], sizes = [8, 8], strides = [1, 1]} : vector<16x96xf32> to vector<8x8xf32>
    %71 = vector.extract_strided_slice %34 {offsets = [0, 48], sizes = [8, 8], strides = [1, 1]} : vector<16x96xf32> to vector<8x8xf32>
    %72 = vector.extract_strided_slice %34 {offsets = [0, 80], sizes = [8, 8], strides = [1, 1]} : vector<16x96xf32> to vector<8x8xf32>
    %cst_29 = arith.constant dense<0.000000e+00> : vector<8x8xf32>
    %73 = tpu.matmul %70, %71, %cst_29 {dimension_numbers = #tpu.dot_dimension_numbers<[1], [1], [0], [0], [0, 0, 1, 0], [], []>} : vector<8x8xf32>, vector<8x8xf32>, vector<8x8xf32> -> vector<8x8xf32>
    %cst_30 = arith.constant dense<0xFF800000> : vector<8xf32>
    %74 = vector.multi_reduction <maximumf>, %73, %cst_30 [1] : vector<8x8xf32> to vector<8xf32>
    %75 = vector.shape_cast %74 : vector<8xf32> to vector<8x1xf32>
    %76 = vector.broadcast %75 : vector<8x1xf32> to vector<8x8xf32>
    %77 = arith.subf %73, %76 : vector<8x8xf32>
    %78 = math.exp %77 : vector<8x8xf32>
    %cst_31 = arith.constant dense<0.000000e+00> : vector<8xf32>
    %79 = vector.multi_reduction <add>, %78, %cst_31 [1] : vector<8x8xf32> to vector<8xf32>
    %80 = vector.shape_cast %79 : vector<8xf32> to vector<8x1xf32>
    %81 = vector.broadcast %80 : vector<8x1xf32> to vector<8x8xf32>
    %82 = arith.divf %78, %81 : vector<8x8xf32>
    %cst_32 = arith.constant dense<0.000000e+00> : vector<8x8xf32>
    %83 = tpu.matmul %82, %72, %cst_32 {dimension_numbers = #tpu.dot_dimension_numbers<[1], [0], [0], [1], [0, 0, 1, 1], [], []>} : vector<8x8xf32>, vector<8x8xf32>, vector<8x8xf32> -> vector<8x8xf32>
    %84 = vector.extract_strided_slice %9 {offsets = [16, 0], sizes = [8, 32], strides = [1, 1]} : vector<32x32xf32> to vector<8x32xf32>
    %cst_33 = arith.constant dense<0.000000e+00> : vector<8x32xf32>
    %85 = tpu.matmul %83, %84, %cst_33 {dimension_numbers = #tpu.dot_dimension_numbers<[1], [0], [0], [1], [0, 0, 1, 1], [], []>} : vector<8x8xf32>, vector<8x32xf32>, vector<8x32xf32> -> vector<8x32xf32>
    %86 = arith.addf %69, %85 : vector<8x32xf32>
    %87 = vector.extract_strided_slice %34 {offsets = [0, 24], sizes = [8, 8], strides = [1, 1]} : vector<16x96xf32> to vector<8x8xf32>
    %88 = vector.extract_strided_slice %34 {offsets = [0, 56], sizes = [8, 8], strides = [1, 1]} : vector<16x96xf32> to vector<8x8xf32>
    %89 = vector.extract_strided_slice %34 {offsets = [0, 88], sizes = [8, 8], strides = [1, 1]} : vector<16x96xf32> to vector<8x8xf32>
    %cst_34 = arith.constant dense<0.000000e+00> : vector<8x8xf32>
    %90 = tpu.matmul %87, %88, %cst_34 {dimension_numbers = #tpu.dot_dimension_numbers<[1], [1], [0], [0], [0, 0, 1, 0], [], []>} : vector<8x8xf32>, vector<8x8xf32>, vector<8x8xf32> -> vector<8x8xf32>
    %cst_35 = arith.constant dense<0xFF800000> : vector<8xf32>
    %91 = vector.multi_reduction <maximumf>, %90, %cst_35 [1] : vector<8x8xf32> to vector<8xf32>
    %92 = vector.shape_cast %91 : vector<8xf32> to vector<8x1xf32>
    %93 = vector.broadcast %92 : vector<8x1xf32> to vector<8x8xf32>
    %94 = arith.subf %90, %93 : vector<8x8xf32>
    %95 = math.exp %94 : vector<8x8xf32>
    %cst_36 = arith.constant dense<0.000000e+00> : vector<8xf32>
    %96 = vector.multi_reduction <add>, %95, %cst_36 [1] : vector<8x8xf32> to vector<8xf32>
    %97 = vector.shape_cast %96 : vector<8xf32> to vector<8x1xf32>
    %98 = vector.broadcast %97 : vector<8x1xf32> to vector<8x8xf32>
    %99 = arith.divf %95, %98 : vector<8x8xf32>
    %cst_37 = arith.constant dense<0.000000e+00> : vector<8x8xf32>
    %100 = tpu.matmul %99, %89, %cst_37 {dimension_numbers = #tpu.dot_dimension_numbers<[1], [0], [0], [1], [0, 0, 1, 1], [], []>} : vector<8x8xf32>, vector<8x8xf32>, vector<8x8xf32> -> vector<8x8xf32>
    %101 = vector.extract_strided_slice %9 {offsets = [24, 0], sizes = [8, 32], strides = [1, 1]} : vector<32x32xf32> to vector<8x32xf32>
    %cst_38 = arith.constant dense<0.000000e+00> : vector<8x32xf32>
    %102 = tpu.matmul %100, %101, %cst_38 {dimension_numbers = #tpu.dot_dimension_numbers<[1], [0], [0], [1], [0, 0, 1, 1], [], []>} : vector<8x8xf32>, vector<8x32xf32>, vector<8x32xf32> -> vector<8x32xf32>
    %103 = arith.addf %86, %102 : vector<8x32xf32>
    %cst_39 = arith.constant 0.000000e+00 : f32
    %104 = vector.broadcast %cst_39 : f32 to vector<8x32xf32>
    %105 = vector.extract_strided_slice %34 {offsets = [8, 0], sizes = [8, 8], strides = [1, 1]} : vector<16x96xf32> to vector<8x8xf32>
    %106 = vector.extract_strided_slice %34 {offsets = [8, 32], sizes = [8, 8], strides = [1, 1]} : vector<16x96xf32> to vector<8x8xf32>
    %107 = vector.extract_strided_slice %34 {offsets = [8, 64], sizes = [8, 8], strides = [1, 1]} : vector<16x96xf32> to vector<8x8xf32>
    %cst_40 = arith.constant dense<0.000000e+00> : vector<8x8xf32>
    %108 = tpu.matmul %105, %106, %cst_40 {dimension_numbers = #tpu.dot_dimension_numbers<[1], [1], [0], [0], [0, 0, 1, 0], [], []>} : vector<8x8xf32>, vector<8x8xf32>, vector<8x8xf32> -> vector<8x8xf32>
    %cst_41 = arith.constant dense<0xFF800000> : vector<8xf32>
    %109 = vector.multi_reduction <maximumf>, %108, %cst_41 [1] : vector<8x8xf32> to vector<8xf32>
    %110 = vector.shape_cast %109 : vector<8xf32> to vector<8x1xf32>
    %111 = vector.broadcast %110 : vector<8x1xf32> to vector<8x8xf32>
    %112 = arith.subf %108, %111 : vector<8x8xf32>
    %113 = math.exp %112 : vector<8x8xf32>
    %cst_42 = arith.constant dense<0.000000e+00> : vector<8xf32>
    %114 = vector.multi_reduction <add>, %113, %cst_42 [1] : vector<8x8xf32> to vector<8xf32>
    %115 = vector.shape_cast %114 : vector<8xf32> to vector<8x1xf32>
    %116 = vector.broadcast %115 : vector<8x1xf32> to vector<8x8xf32>
    %117 = arith.divf %113, %116 : vector<8x8xf32>
    %cst_43 = arith.constant dense<0.000000e+00> : vector<8x8xf32>
    %118 = tpu.matmul %117, %107, %cst_43 {dimension_numbers = #tpu.dot_dimension_numbers<[1], [0], [0], [1], [0, 0, 1, 1], [], []>} : vector<8x8xf32>, vector<8x8xf32>, vector<8x8xf32> -> vector<8x8xf32>
    %119 = vector.extract_strided_slice %9 {offsets = [0, 0], sizes = [8, 32], strides = [1, 1]} : vector<32x32xf32> to vector<8x32xf32>
    %cst_44 = arith.constant dense<0.000000e+00> : vector<8x32xf32>
    %120 = tpu.matmul %118, %119, %cst_44 {dimension_numbers = #tpu.dot_dimension_numbers<[1], [0], [0], [1], [0, 0, 1, 1], [], []>} : vector<8x8xf32>, vector<8x32xf32>, vector<8x32xf32> -> vector<8x32xf32>
    %121 = arith.addf %104, %120 : vector<8x32xf32>
    %122 = vector.extract_strided_slice %34 {offsets = [8, 8], sizes = [8, 8], strides = [1, 1]} : vector<16x96xf32> to vector<8x8xf32>
    %123 = vector.extract_strided_slice %34 {offsets = [8, 40], sizes = [8, 8], strides = [1, 1]} : vector<16x96xf32> to vector<8x8xf32>
    %124 = vector.extract_strided_slice %34 {offsets = [8, 72], sizes = [8, 8], strides = [1, 1]} : vector<16x96xf32> to vector<8x8xf32>
    %cst_45 = arith.constant dense<0.000000e+00> : vector<8x8xf32>
    %125 = tpu.matmul %122, %123, %cst_45 {dimension_numbers = #tpu.dot_dimension_numbers<[1], [1], [0], [0], [0, 0, 1, 0], [], []>} : vector<8x8xf32>, vector<8x8xf32>, vector<8x8xf32> -> vector<8x8xf32>
    %cst_46 = arith.constant dense<0xFF800000> : vector<8xf32>
    %126 = vector.multi_reduction <maximumf>, %125, %cst_46 [1] : vector<8x8xf32> to vector<8xf32>
    %127 = vector.shape_cast %126 : vector<8xf32> to vector<8x1xf32>
    %128 = vector.broadcast %127 : vector<8x1xf32> to vector<8x8xf32>
    %129 = arith.subf %125, %128 : vector<8x8xf32>
    %130 = math.exp %129 : vector<8x8xf32>
    %cst_47 = arith.constant dense<0.000000e+00> : vector<8xf32>
    %131 = vector.multi_reduction <add>, %130, %cst_47 [1] : vector<8x8xf32> to vector<8xf32>
    %132 = vector.shape_cast %131 : vector<8xf32> to vector<8x1xf32>
    %133 = vector.broadcast %132 : vector<8x1xf32> to vector<8x8xf32>
    %134 = arith.divf %130, %133 : vector<8x8xf32>
    %cst_48 = arith.constant dense<0.000000e+00> : vector<8x8xf32>
    %135 = tpu.matmul %134, %124, %cst_48 {dimension_numbers = #tpu.dot_dimension_numbers<[1], [0], [0], [1], [0, 0, 1, 1], [], []>} : vector<8x8xf32>, vector<8x8xf32>, vector<8x8xf32> -> vector<8x8xf32>
    %136 = vector.extract_strided_slice %9 {offsets = [8, 0], sizes = [8, 32], strides = [1, 1]} : vector<32x32xf32> to vector<8x32xf32>
    %cst_49 = arith.constant dense<0.000000e+00> : vector<8x32xf32>
    %137 = tpu.matmul %135, %136, %cst_49 {dimension_numbers = #tpu.dot_dimension_numbers<[1], [0], [0], [1], [0, 0, 1, 1], [], []>} : vector<8x8xf32>, vector<8x32xf32>, vector<8x32xf32> -> vector<8x32xf32>
    %138 = arith.addf %121, %137 : vector<8x32xf32>
    %139 = vector.extract_strided_slice %34 {offsets = [8, 16], sizes = [8, 8], strides = [1, 1]} : vector<16x96xf32> to vector<8x8xf32>
    %140 = vector.extract_strided_slice %34 {offsets = [8, 48], sizes = [8, 8], strides = [1, 1]} : vector<16x96xf32> to vector<8x8xf32>
    %141 = vector.extract_strided_slice %34 {offsets = [8, 80], sizes = [8, 8], strides = [1, 1]} : vector<16x96xf32> to vector<8x8xf32>
    %cst_50 = arith.constant dense<0.000000e+00> : vector<8x8xf32>
    %142 = tpu.matmul %139, %140, %cst_50 {dimension_numbers = #tpu.dot_dimension_numbers<[1], [1], [0], [0], [0, 0, 1, 0], [], []>} : vector<8x8xf32>, vector<8x8xf32>, vector<8x8xf32> -> vector<8x8xf32>
    %cst_51 = arith.constant dense<0xFF800000> : vector<8xf32>
    %143 = vector.multi_reduction <maximumf>, %142, %cst_51 [1] : vector<8x8xf32> to vector<8xf32>
    %144 = vector.shape_cast %143 : vector<8xf32> to vector<8x1xf32>
    %145 = vector.broadcast %144 : vector<8x1xf32> to vector<8x8xf32>
    %146 = arith.subf %142, %145 : vector<8x8xf32>
    %147 = math.exp %146 : vector<8x8xf32>
    %cst_52 = arith.constant dense<0.000000e+00> : vector<8xf32>
    %148 = vector.multi_reduction <add>, %147, %cst_52 [1] : vector<8x8xf32> to vector<8xf32>
    %149 = vector.shape_cast %148 : vector<8xf32> to vector<8x1xf32>
    %150 = vector.broadcast %149 : vector<8x1xf32> to vector<8x8xf32>
    %151 = arith.divf %147, %150 : vector<8x8xf32>
    %cst_53 = arith.constant dense<0.000000e+00> : vector<8x8xf32>
    %152 = tpu.matmul %151, %141, %cst_53 {dimension_numbers = #tpu.dot_dimension_numbers<[1], [0], [0], [1], [0, 0, 1, 1], [], []>} : vector<8x8xf32>, vector<8x8xf32>, vector<8x8xf32> -> vector<8x8xf32>
    %153 = vector.extract_strided_slice %9 {offsets = [16, 0], sizes = [8, 32], strides = [1, 1]} : vector<32x32xf32> to vector<8x32xf32>
    %cst_54 = arith.constant dense<0.000000e+00> : vector<8x32xf32>
    %154 = tpu.matmul %152, %153, %cst_54 {dimension_numbers = #tpu.dot_dimension_numbers<[1], [0], [0], [1], [0, 0, 1, 1], [], []>} : vector<8x8xf32>, vector<8x32xf32>, vector<8x32xf32> -> vector<8x32xf32>
    %155 = arith.addf %138, %154 : vector<8x32xf32>
    %156 = vector.extract_strided_slice %34 {offsets = [8, 24], sizes = [8, 8], strides = [1, 1]} : vector<16x96xf32> to vector<8x8xf32>
    %157 = vector.extract_strided_slice %34 {offsets = [8, 56], sizes = [8, 8], strides = [1, 1]} : vector<16x96xf32> to vector<8x8xf32>
    %158 = vector.extract_strided_slice %34 {offsets = [8, 88], sizes = [8, 8], strides = [1, 1]} : vector<16x96xf32> to vector<8x8xf32>
    %cst_55 = arith.constant dense<0.000000e+00> : vector<8x8xf32>
    %159 = tpu.matmul %156, %157, %cst_55 {dimension_numbers = #tpu.dot_dimension_numbers<[1], [1], [0], [0], [0, 0, 1, 0], [], []>} : vector<8x8xf32>, vector<8x8xf32>, vector<8x8xf32> -> vector<8x8xf32>
    %cst_56 = arith.constant dense<0xFF800000> : vector<8xf32>
    %160 = vector.multi_reduction <maximumf>, %159, %cst_56 [1] : vector<8x8xf32> to vector<8xf32>
    %161 = vector.shape_cast %160 : vector<8xf32> to vector<8x1xf32>
    %162 = vector.broadcast %161 : vector<8x1xf32> to vector<8x8xf32>
    %163 = arith.subf %159, %162 : vector<8x8xf32>
    %164 = math.exp %163 : vector<8x8xf32>
    %cst_57 = arith.constant dense<0.000000e+00> : vector<8xf32>
    %165 = vector.multi_reduction <add>, %164, %cst_57 [1] : vector<8x8xf32> to vector<8xf32>
    %166 = vector.shape_cast %165 : vector<8xf32> to vector<8x1xf32>
    %167 = vector.broadcast %166 : vector<8x1xf32> to vector<8x8xf32>
    %168 = arith.divf %164, %167 : vector<8x8xf32>
    %cst_58 = arith.constant dense<0.000000e+00> : vector<8x8xf32>
    %169 = tpu.matmul %168, %158, %cst_58 {dimension_numbers = #tpu.dot_dimension_numbers<[1], [0], [0], [1], [0, 0, 1, 1], [], []>} : vector<8x8xf32>, vector<8x8xf32>, vector<8x8xf32> -> vector<8x8xf32>
    %170 = vector.extract_strided_slice %9 {offsets = [24, 0], sizes = [8, 32], strides = [1, 1]} : vector<32x32xf32> to vector<8x32xf32>
    %cst_59 = arith.constant dense<0.000000e+00> : vector<8x32xf32>
    %171 = tpu.matmul %169, %170, %cst_59 {dimension_numbers = #tpu.dot_dimension_numbers<[1], [0], [0], [1], [0, 0, 1, 1], [], []>} : vector<8x8xf32>, vector<8x32xf32>, vector<8x32xf32> -> vector<8x32xf32>
    %172 = arith.addf %155, %171 : vector<8x32xf32>
    %173 = tpu.concatenate %103, %172 in 0 : vector<8x32xf32>, vector<8x32xf32> -> vector<16x32xf32>
    %174 = vector.broadcast %11 : vector<1x32xf32> to vector<16x32xf32>
    %175 = arith.addf %173, %174 : vector<16x32xf32>
    %176 = arith.addf %175, %1 : vector<16x32xf32>
    %c0_60 = arith.constant 0 : index
    %c227 = arith.constant 227 : index
    %c0_61 = arith.constant 0 : index
    %177 = vector.load %arg2[%c0_60, %c227, %c0_61] : memref<1x480x128xf32, #tpu.memory_space<vmem>>, vector<1x1x32xf32>
    %178 = vector.shape_cast %177 : vector<1x1x32xf32> to vector<1x32xf32>
    %c0_62 = arith.constant 0 : index
    %c228 = arith.constant 228 : index
    %c0_63 = arith.constant 0 : index
    %179 = vector.load %arg2[%c0_62, %c228, %c0_63] : memref<1x480x128xf32, #tpu.memory_space<vmem>>, vector<1x1x32xf32>
    %180 = vector.shape_cast %179 : vector<1x1x32xf32> to vector<1x32xf32>
    %c0_64 = arith.constant 0 : index
    %c32 = arith.constant 32 : index
    %c0_65 = arith.constant 0 : index
    %181 = vector.load %arg2[%c0_64, %c32, %c0_65] : memref<1x480x128xf32, #tpu.memory_space<vmem>>, vector<1x32x96xf32>
    %182 = vector.shape_cast %181 : vector<1x32x96xf32> to vector<32x96xf32>
    %c0_66 = arith.constant 0 : index
    %c96 = arith.constant 96 : index
    %c0_67 = arith.constant 0 : index
    %183 = vector.load %arg2[%c0_66, %c96, %c0_67] : memref<1x480x128xf32, #tpu.memory_space<vmem>>, vector<1x32x32xf32>
    %184 = vector.shape_cast %183 : vector<1x32x32xf32> to vector<32x32xf32>
    %c0_68 = arith.constant 0 : index
    %c229 = arith.constant 229 : index
    %c0_69 = arith.constant 0 : index
    %185 = vector.load %arg2[%c0_68, %c229, %c0_69] : memref<1x480x128xf32, #tpu.memory_space<vmem>>, vector<1x1x32xf32>
    %186 = vector.shape_cast %185 : vector<1x1x32xf32> to vector<1x32xf32>
    %cst_70 = arith.constant dense<0.000000e+00> : vector<16xf32>
    %187 = vector.multi_reduction <add>, %176, %cst_70 [1] : vector<16x32xf32> to vector<16xf32>
    %188 = vector.shape_cast %187 : vector<16xf32> to vector<16x1xf32>
    %cst_71 = arith.constant 3.200000e+01 : f32
    %189 = vector.broadcast %cst_71 : f32 to vector<16x1xf32>
    %190 = arith.divf %188, %189 : vector<16x1xf32>
    %191 = vector.broadcast %190 : vector<16x1xf32> to vector<16x32xf32>
    %192 = arith.subf %176, %191 : vector<16x32xf32>
    %193 = arith.mulf %192, %192 : vector<16x32xf32>
    %cst_72 = arith.constant dense<0.000000e+00> : vector<16xf32>
    %194 = vector.multi_reduction <add>, %193, %cst_72 [1] : vector<16x32xf32> to vector<16xf32>
    %195 = vector.shape_cast %194 : vector<16xf32> to vector<16x1xf32>
    %cst_73 = arith.constant 3.200000e+01 : f32
    %196 = vector.broadcast %cst_73 : f32 to vector<16x1xf32>
    %197 = arith.divf %195, %196 : vector<16x1xf32>
    %198 = vector.broadcast %190 : vector<16x1xf32> to vector<16x32xf32>
    %199 = arith.subf %176, %198 : vector<16x32xf32>
    %cst_74 = arith.constant 9.99999974E-6 : f32
    %200 = vector.broadcast %cst_74 : f32 to vector<16x1xf32>
    %201 = arith.addf %197, %200 : vector<16x1xf32>
    %202 = math.rsqrt %201 : vector<16x1xf32>
    %203 = vector.broadcast %202 : vector<16x1xf32> to vector<16x32xf32>
    %204 = arith.mulf %199, %203 : vector<16x32xf32>
    %205 = vector.broadcast %178 : vector<1x32xf32> to vector<16x32xf32>
    %206 = arith.mulf %204, %205 : vector<16x32xf32>
    %207 = vector.broadcast %180 : vector<1x32xf32> to vector<16x32xf32>
    %208 = arith.addf %206, %207 : vector<16x32xf32>
    %cst_75 = arith.constant dense<0.000000e+00> : vector<16x96xf32>
    %209 = tpu.matmul %208, %182, %cst_75 {dimension_numbers = #tpu.dot_dimension_numbers<[1], [0], [0], [1], [0, 0, 1, 1], [], []>} : vector<16x32xf32>, vector<32x96xf32>, vector<16x96xf32> -> vector<16x96xf32>
    %cst_76 = arith.constant 0.000000e+00 : f32
    %210 = vector.broadcast %cst_76 : f32 to vector<8x32xf32>
    %211 = vector.extract_strided_slice %209 {offsets = [0, 0], sizes = [8, 8], strides = [1, 1]} : vector<16x96xf32> to vector<8x8xf32>
    %212 = vector.extract_strided_slice %209 {offsets = [0, 32], sizes = [8, 8], strides = [1, 1]} : vector<16x96xf32> to vector<8x8xf32>
    %213 = vector.extract_strided_slice %209 {offsets = [0, 64], sizes = [8, 8], strides = [1, 1]} : vector<16x96xf32> to vector<8x8xf32>
    %cst_77 = arith.constant dense<0.000000e+00> : vector<8x8xf32>
    %214 = tpu.matmul %211, %212, %cst_77 {dimension_numbers = #tpu.dot_dimension_numbers<[1], [1], [0], [0], [0, 0, 1, 0], [], []>} : vector<8x8xf32>, vector<8x8xf32>, vector<8x8xf32> -> vector<8x8xf32>
    %cst_78 = arith.constant dense<0xFF800000> : vector<8xf32>
    %215 = vector.multi_reduction <maximumf>, %214, %cst_78 [1] : vector<8x8xf32> to vector<8xf32>
    %216 = vector.shape_cast %215 : vector<8xf32> to vector<8x1xf32>
    %217 = vector.broadcast %216 : vector<8x1xf32> to vector<8x8xf32>
    %218 = arith.subf %214, %217 : vector<8x8xf32>
    %219 = math.exp %218 : vector<8x8xf32>
    %cst_79 = arith.constant dense<0.000000e+00> : vector<8xf32>
    %220 = vector.multi_reduction <add>, %219, %cst_79 [1] : vector<8x8xf32> to vector<8xf32>
    %221 = vector.shape_cast %220 : vector<8xf32> to vector<8x1xf32>
    %222 = vector.broadcast %221 : vector<8x1xf32> to vector<8x8xf32>
    %223 = arith.divf %219, %222 : vector<8x8xf32>
    %cst_80 = arith.constant dense<0.000000e+00> : vector<8x8xf32>
    %224 = tpu.matmul %223, %213, %cst_80 {dimension_numbers = #tpu.dot_dimension_numbers<[1], [0], [0], [1], [0, 0, 1, 1], [], []>} : vector<8x8xf32>, vector<8x8xf32>, vector<8x8xf32> -> vector<8x8xf32>
    %225 = vector.extract_strided_slice %184 {offsets = [0, 0], sizes = [8, 32], strides = [1, 1]} : vector<32x32xf32> to vector<8x32xf32>
    %cst_81 = arith.constant dense<0.000000e+00> : vector<8x32xf32>
    %226 = tpu.matmul %224, %225, %cst_81 {dimension_numbers = #tpu.dot_dimension_numbers<[1], [0], [0], [1], [0, 0, 1, 1], [], []>} : vector<8x8xf32>, vector<8x32xf32>, vector<8x32xf32> -> vector<8x32xf32>
    %227 = arith.addf %210, %226 : vector<8x32xf32>
    %228 = vector.extract_strided_slice %209 {offsets = [0, 8], sizes = [8, 8], strides = [1, 1]} : vector<16x96xf32> to vector<8x8xf32>
    %229 = vector.extract_strided_slice %209 {offsets = [0, 40], sizes = [8, 8], strides = [1, 1]} : vector<16x96xf32> to vector<8x8xf32>
    %230 = vector.extract_strided_slice %209 {offsets = [0, 72], sizes = [8, 8], strides = [1, 1]} : vector<16x96xf32> to vector<8x8xf32>
    %cst_82 = arith.constant dense<0.000000e+00> : vector<8x8xf32>
    %231 = tpu.matmul %228, %229, %cst_82 {dimension_numbers = #tpu.dot_dimension_numbers<[1], [1], [0], [0], [0, 0, 1, 0], [], []>} : vector<8x8xf32>, vector<8x8xf32>, vector<8x8xf32> -> vector<8x8xf32>
    %cst_83 = arith.constant dense<0xFF800000> : vector<8xf32>
    %232 = vector.multi_reduction <maximumf>, %231, %cst_83 [1] : vector<8x8xf32> to vector<8xf32>
    %233 = vector.shape_cast %232 : vector<8xf32> to vector<8x1xf32>
    %234 = vector.broadcast %233 : vector<8x1xf32> to vector<8x8xf32>
    %235 = arith.subf %231, %234 : vector<8x8xf32>
    %236 = math.exp %235 : vector<8x8xf32>
    %cst_84 = arith.constant dense<0.000000e+00> : vector<8xf32>
    %237 = vector.multi_reduction <add>, %236, %cst_84 [1] : vector<8x8xf32> to vector<8xf32>
    %238 = vector.shape_cast %237 : vector<8xf32> to vector<8x1xf32>
    %239 = vector.broadcast %238 : vector<8x1xf32> to vector<8x8xf32>
    %240 = arith.divf %236, %239 : vector<8x8xf32>
    %cst_85 = arith.constant dense<0.000000e+00> : vector<8x8xf32>
    %241 = tpu.matmul %240, %230, %cst_85 {dimension_numbers = #tpu.dot_dimension_numbers<[1], [0], [0], [1], [0, 0, 1, 1], [], []>} : vector<8x8xf32>, vector<8x8xf32>, vector<8x8xf32> -> vector<8x8xf32>
    %242 = vector.extract_strided_slice %184 {offsets = [8, 0], sizes = [8, 32], strides = [1, 1]} : vector<32x32xf32> to vector<8x32xf32>
    %cst_86 = arith.constant dense<0.000000e+00> : vector<8x32xf32>
    %243 = tpu.matmul %241, %242, %cst_86 {dimension_numbers = #tpu.dot_dimension_numbers<[1], [0], [0], [1], [0, 0, 1, 1], [], []>} : vector<8x8xf32>, vector<8x32xf32>, vector<8x32xf32> -> vector<8x32xf32>
    %244 = arith.addf %227, %243 : vector<8x32xf32>
    %245 = vector.extract_strided_slice %209 {offsets = [0, 16], sizes = [8, 8], strides = [1, 1]} : vector<16x96xf32> to vector<8x8xf32>
    %246 = vector.extract_strided_slice %209 {offsets = [0, 48], sizes = [8, 8], strides = [1, 1]} : vector<16x96xf32> to vector<8x8xf32>
    %247 = vector.extract_strided_slice %209 {offsets = [0, 80], sizes = [8, 8], strides = [1, 1]} : vector<16x96xf32> to vector<8x8xf32>
    %cst_87 = arith.constant dense<0.000000e+00> : vector<8x8xf32>
    %248 = tpu.matmul %245, %246, %cst_87 {dimension_numbers = #tpu.dot_dimension_numbers<[1], [1], [0], [0], [0, 0, 1, 0], [], []>} : vector<8x8xf32>, vector<8x8xf32>, vector<8x8xf32> -> vector<8x8xf32>
    %cst_88 = arith.constant dense<0xFF800000> : vector<8xf32>
    %249 = vector.multi_reduction <maximumf>, %248, %cst_88 [1] : vector<8x8xf32> to vector<8xf32>
    %250 = vector.shape_cast %249 : vector<8xf32> to vector<8x1xf32>
    %251 = vector.broadcast %250 : vector<8x1xf32> to vector<8x8xf32>
    %252 = arith.subf %248, %251 : vector<8x8xf32>
    %253 = math.exp %252 : vector<8x8xf32>
    %cst_89 = arith.constant dense<0.000000e+00> : vector<8xf32>
    %254 = vector.multi_reduction <add>, %253, %cst_89 [1] : vector<8x8xf32> to vector<8xf32>
    %255 = vector.shape_cast %254 : vector<8xf32> to vector<8x1xf32>
    %256 = vector.broadcast %255 : vector<8x1xf32> to vector<8x8xf32>
    %257 = arith.divf %253, %256 : vector<8x8xf32>
    %cst_90 = arith.constant dense<0.000000e+00> : vector<8x8xf32>
    %258 = tpu.matmul %257, %247, %cst_90 {dimension_numbers = #tpu.dot_dimension_numbers<[1], [0], [0], [1], [0, 0, 1, 1], [], []>} : vector<8x8xf32>, vector<8x8xf32>, vector<8x8xf32> -> vector<8x8xf32>
    %259 = vector.extract_strided_slice %184 {offsets = [16, 0], sizes = [8, 32], strides = [1, 1]} : vector<32x32xf32> to vector<8x32xf32>
    %cst_91 = arith.constant dense<0.000000e+00> : vector<8x32xf32>
    %260 = tpu.matmul %258, %259, %cst_91 {dimension_numbers = #tpu.dot_dimension_numbers<[1], [0], [0], [1], [0, 0, 1, 1], [], []>} : vector<8x8xf32>, vector<8x32xf32>, vector<8x32xf32> -> vector<8x32xf32>
    %261 = arith.addf %244, %260 : vector<8x32xf32>
    %262 = vector.extract_strided_slice %209 {offsets = [0, 24], sizes = [8, 8], strides = [1, 1]} : vector<16x96xf32> to vector<8x8xf32>
    %263 = vector.extract_strided_slice %209 {offsets = [0, 56], sizes = [8, 8], strides = [1, 1]} : vector<16x96xf32> to vector<8x8xf32>
    %264 = vector.extract_strided_slice %209 {offsets = [0, 88], sizes = [8, 8], strides = [1, 1]} : vector<16x96xf32> to vector<8x8xf32>
    %cst_92 = arith.constant dense<0.000000e+00> : vector<8x8xf32>
    %265 = tpu.matmul %262, %263, %cst_92 {dimension_numbers = #tpu.dot_dimension_numbers<[1], [1], [0], [0], [0, 0, 1, 0], [], []>} : vector<8x8xf32>, vector<8x8xf32>, vector<8x8xf32> -> vector<8x8xf32>
    %cst_93 = arith.constant dense<0xFF800000> : vector<8xf32>
    %266 = vector.multi_reduction <maximumf>, %265, %cst_93 [1] : vector<8x8xf32> to vector<8xf32>
    %267 = vector.shape_cast %266 : vector<8xf32> to vector<8x1xf32>
    %268 = vector.broadcast %267 : vector<8x1xf32> to vector<8x8xf32>
    %269 = arith.subf %265, %268 : vector<8x8xf32>
    %270 = math.exp %269 : vector<8x8xf32>
    %cst_94 = arith.constant dense<0.000000e+00> : vector<8xf32>
    %271 = vector.multi_reduction <add>, %270, %cst_94 [1] : vector<8x8xf32> to vector<8xf32>
    %272 = vector.shape_cast %271 : vector<8xf32> to vector<8x1xf32>
    %273 = vector.broadcast %272 : vector<8x1xf32> to vector<8x8xf32>
    %274 = arith.divf %270, %273 : vector<8x8xf32>
    %cst_95 = arith.constant dense<0.000000e+00> : vector<8x8xf32>
    %275 = tpu.matmul %274, %264, %cst_95 {dimension_numbers = #tpu.dot_dimension_numbers<[1], [0], [0], [1], [0, 0, 1, 1], [], []>} : vector<8x8xf32>, vector<8x8xf32>, vector<8x8xf32> -> vector<8x8xf32>
    %276 = vector.extract_strided_slice %184 {offsets = [24, 0], sizes = [8, 32], strides = [1, 1]} : vector<32x32xf32> to vector<8x32xf32>
    %cst_96 = arith.constant dense<0.000000e+00> : vector<8x32xf32>
    %277 = tpu.matmul %275, %276, %cst_96 {dimension_numbers = #tpu.dot_dimension_numbers<[1], [0], [0], [1], [0, 0, 1, 1], [], []>} : vector<8x8xf32>, vector<8x32xf32>, vector<8x32xf32> -> vector<8x32xf32>
    %278 = arith.addf %261, %277 : vector<8x32xf32>
    %cst_97 = arith.constant 0.000000e+00 : f32
    %279 = vector.broadcast %cst_97 : f32 to vector<8x32xf32>
    %280 = vector.extract_strided_slice %209 {offsets = [8, 0], sizes = [8, 8], strides = [1, 1]} : vector<16x96xf32> to vector<8x8xf32>
    %281 = vector.extract_strided_slice %209 {offsets = [8, 32], sizes = [8, 8], strides = [1, 1]} : vector<16x96xf32> to vector<8x8xf32>
    %282 = vector.extract_strided_slice %209 {offsets = [8, 64], sizes = [8, 8], strides = [1, 1]} : vector<16x96xf32> to vector<8x8xf32>
    %cst_98 = arith.constant dense<0.000000e+00> : vector<8x8xf32>
    %283 = tpu.matmul %280, %281, %cst_98 {dimension_numbers = #tpu.dot_dimension_numbers<[1], [1], [0], [0], [0, 0, 1, 0], [], []>} : vector<8x8xf32>, vector<8x8xf32>, vector<8x8xf32> -> vector<8x8xf32>
    %cst_99 = arith.constant dense<0xFF800000> : vector<8xf32>
    %284 = vector.multi_reduction <maximumf>, %283, %cst_99 [1] : vector<8x8xf32> to vector<8xf32>
    %285 = vector.shape_cast %284 : vector<8xf32> to vector<8x1xf32>
    %286 = vector.broadcast %285 : vector<8x1xf32> to vector<8x8xf32>
    %287 = arith.subf %283, %286 : vector<8x8xf32>
    %288 = math.exp %287 : vector<8x8xf32>
    %cst_100 = arith.constant dense<0.000000e+00> : vector<8xf32>
    %289 = vector.multi_reduction <add>, %288, %cst_100 [1] : vector<8x8xf32> to vector<8xf32>
    %290 = vector.shape_cast %289 : vector<8xf32> to vector<8x1xf32>
    %291 = vector.broadcast %290 : vector<8x1xf32> to vector<8x8xf32>
    %292 = arith.divf %288, %291 : vector<8x8xf32>
    %cst_101 = arith.constant dense<0.000000e+00> : vector<8x8xf32>
    %293 = tpu.matmul %292, %282, %cst_101 {dimension_numbers = #tpu.dot_dimension_numbers<[1], [0], [0], [1], [0, 0, 1, 1], [], []>} : vector<8x8xf32>, vector<8x8xf32>, vector<8x8xf32> -> vector<8x8xf32>
    %294 = vector.extract_strided_slice %184 {offsets = [0, 0], sizes = [8, 32], strides = [1, 1]} : vector<32x32xf32> to vector<8x32xf32>
    %cst_102 = arith.constant dense<0.000000e+00> : vector<8x32xf32>
    %295 = tpu.matmul %293, %294, %cst_102 {dimension_numbers = #tpu.dot_dimension_numbers<[1], [0], [0], [1], [0, 0, 1, 1], [], []>} : vector<8x8xf32>, vector<8x32xf32>, vector<8x32xf32> -> vector<8x32xf32>
    %296 = arith.addf %279, %295 : vector<8x32xf32>
    %297 = vector.extract_strided_slice %209 {offsets = [8, 8], sizes = [8, 8], strides = [1, 1]} : vector<16x96xf32> to vector<8x8xf32>
    %298 = vector.extract_strided_slice %209 {offsets = [8, 40], sizes = [8, 8], strides = [1, 1]} : vector<16x96xf32> to vector<8x8xf32>
    %299 = vector.extract_strided_slice %209 {offsets = [8, 72], sizes = [8, 8], strides = [1, 1]} : vector<16x96xf32> to vector<8x8xf32>
    %cst_103 = arith.constant dense<0.000000e+00> : vector<8x8xf32>
    %300 = tpu.matmul %297, %298, %cst_103 {dimension_numbers = #tpu.dot_dimension_numbers<[1], [1], [0], [0], [0, 0, 1, 0], [], []>} : vector<8x8xf32>, vector<8x8xf32>, vector<8x8xf32> -> vector<8x8xf32>
    %cst_104 = arith.constant dense<0xFF800000> : vector<8xf32>
    %301 = vector.multi_reduction <maximumf>, %300, %cst_104 [1] : vector<8x8xf32> to vector<8xf32>
    %302 = vector.shape_cast %301 : vector<8xf32> to vector<8x1xf32>
    %303 = vector.broadcast %302 : vector<8x1xf32> to vector<8x8xf32>
    %304 = arith.subf %300, %303 : vector<8x8xf32>
    %305 = math.exp %304 : vector<8x8xf32>
    %cst_105 = arith.constant dense<0.000000e+00> : vector<8xf32>
    %306 = vector.multi_reduction <add>, %305, %cst_105 [1] : vector<8x8xf32> to vector<8xf32>
    %307 = vector.shape_cast %306 : vector<8xf32> to vector<8x1xf32>
    %308 = vector.broadcast %307 : vector<8x1xf32> to vector<8x8xf32>
    %309 = arith.divf %305, %308 : vector<8x8xf32>
    %cst_106 = arith.constant dense<0.000000e+00> : vector<8x8xf32>
    %310 = tpu.matmul %309, %299, %cst_106 {dimension_numbers = #tpu.dot_dimension_numbers<[1], [0], [0], [1], [0, 0, 1, 1], [], []>} : vector<8x8xf32>, vector<8x8xf32>, vector<8x8xf32> -> vector<8x8xf32>
    %311 = vector.extract_strided_slice %184 {offsets = [8, 0], sizes = [8, 32], strides = [1, 1]} : vector<32x32xf32> to vector<8x32xf32>
    %cst_107 = arith.constant dense<0.000000e+00> : vector<8x32xf32>
    %312 = tpu.matmul %310, %311, %cst_107 {dimension_numbers = #tpu.dot_dimension_numbers<[1], [0], [0], [1], [0, 0, 1, 1], [], []>} : vector<8x8xf32>, vector<8x32xf32>, vector<8x32xf32> -> vector<8x32xf32>
    %313 = arith.addf %296, %312 : vector<8x32xf32>
    %314 = vector.extract_strided_slice %209 {offsets = [8, 16], sizes = [8, 8], strides = [1, 1]} : vector<16x96xf32> to vector<8x8xf32>
    %315 = vector.extract_strided_slice %209 {offsets = [8, 48], sizes = [8, 8], strides = [1, 1]} : vector<16x96xf32> to vector<8x8xf32>
    %316 = vector.extract_strided_slice %209 {offsets = [8, 80], sizes = [8, 8], strides = [1, 1]} : vector<16x96xf32> to vector<8x8xf32>
    %cst_108 = arith.constant dense<0.000000e+00> : vector<8x8xf32>
    %317 = tpu.matmul %314, %315, %cst_108 {dimension_numbers = #tpu.dot_dimension_numbers<[1], [1], [0], [0], [0, 0, 1, 0], [], []>} : vector<8x8xf32>, vector<8x8xf32>, vector<8x8xf32> -> vector<8x8xf32>
    %cst_109 = arith.constant dense<0xFF800000> : vector<8xf32>
    %318 = vector.multi_reduction <maximumf>, %317, %cst_109 [1] : vector<8x8xf32> to vector<8xf32>
    %319 = vector.shape_cast %318 : vector<8xf32> to vector<8x1xf32>
    %320 = vector.broadcast %319 : vector<8x1xf32> to vector<8x8xf32>
    %321 = arith.subf %317, %320 : vector<8x8xf32>
    %322 = math.exp %321 : vector<8x8xf32>
    %cst_110 = arith.constant dense<0.000000e+00> : vector<8xf32>
    %323 = vector.multi_reduction <add>, %322, %cst_110 [1] : vector<8x8xf32> to vector<8xf32>
    %324 = vector.shape_cast %323 : vector<8xf32> to vector<8x1xf32>
    %325 = vector.broadcast %324 : vector<8x1xf32> to vector<8x8xf32>
    %326 = arith.divf %322, %325 : vector<8x8xf32>
    %cst_111 = arith.constant dense<0.000000e+00> : vector<8x8xf32>
    %327 = tpu.matmul %326, %316, %cst_111 {dimension_numbers = #tpu.dot_dimension_numbers<[1], [0], [0], [1], [0, 0, 1, 1], [], []>} : vector<8x8xf32>, vector<8x8xf32>, vector<8x8xf32> -> vector<8x8xf32>
    %328 = vector.extract_strided_slice %184 {offsets = [16, 0], sizes = [8, 32], strides = [1, 1]} : vector<32x32xf32> to vector<8x32xf32>
    %cst_112 = arith.constant dense<0.000000e+00> : vector<8x32xf32>
    %329 = tpu.matmul %327, %328, %cst_112 {dimension_numbers = #tpu.dot_dimension_numbers<[1], [0], [0], [1], [0, 0, 1, 1], [], []>} : vector<8x8xf32>, vector<8x32xf32>, vector<8x32xf32> -> vector<8x32xf32>
    %330 = arith.addf %313, %329 : vector<8x32xf32>
    %331 = vector.extract_strided_slice %209 {offsets = [8, 24], sizes = [8, 8], strides = [1, 1]} : vector<16x96xf32> to vector<8x8xf32>
    %332 = vector.extract_strided_slice %209 {offsets = [8, 56], sizes = [8, 8], strides = [1, 1]} : vector<16x96xf32> to vector<8x8xf32>
    %333 = vector.extract_strided_slice %209 {offsets = [8, 88], sizes = [8, 8], strides = [1, 1]} : vector<16x96xf32> to vector<8x8xf32>
    %cst_113 = arith.constant dense<0.000000e+00> : vector<8x8xf32>
    %334 = tpu.matmul %331, %332, %cst_113 {dimension_numbers = #tpu.dot_dimension_numbers<[1], [1], [0], [0], [0, 0, 1, 0], [], []>} : vector<8x8xf32>, vector<8x8xf32>, vector<8x8xf32> -> vector<8x8xf32>
    %cst_114 = arith.constant dense<0xFF800000> : vector<8xf32>
    %335 = vector.multi_reduction <maximumf>, %334, %cst_114 [1] : vector<8x8xf32> to vector<8xf32>
    %336 = vector.shape_cast %335 : vector<8xf32> to vector<8x1xf32>
    %337 = vector.broadcast %336 : vector<8x1xf32> to vector<8x8xf32>
    %338 = arith.subf %334, %337 : vector<8x8xf32>
    %339 = math.exp %338 : vector<8x8xf32>
    %cst_115 = arith.constant dense<0.000000e+00> : vector<8xf32>
    %340 = vector.multi_reduction <add>, %339, %cst_115 [1] : vector<8x8xf32> to vector<8xf32>
    %341 = vector.shape_cast %340 : vector<8xf32> to vector<8x1xf32>
    %342 = vector.broadcast %341 : vector<8x1xf32> to vector<8x8xf32>
    %343 = arith.divf %339, %342 : vector<8x8xf32>
    %cst_116 = arith.constant dense<0.000000e+00> : vector<8x8xf32>
    %344 = tpu.matmul %343, %333, %cst_116 {dimension_numbers = #tpu.dot_dimension_numbers<[1], [0], [0], [1], [0, 0, 1, 1], [], []>} : vector<8x8xf32>, vector<8x8xf32>, vector<8x8xf32> -> vector<8x8xf32>
    %345 = vector.extract_strided_slice %184 {offsets = [24, 0], sizes = [8, 32], strides = [1, 1]} : vector<32x32xf32> to vector<8x32xf32>
    %cst_117 = arith.constant dense<0.000000e+00> : vector<8x32xf32>
    %346 = tpu.matmul %344, %345, %cst_117 {dimension_numbers = #tpu.dot_dimension_numbers<[1], [0], [0], [1], [0, 0, 1, 1], [], []>} : vector<8x8xf32>, vector<8x32xf32>, vector<8x32xf32> -> vector<8x32xf32>
    %347 = arith.addf %330, %346 : vector<8x32xf32>
    %348 = tpu.concatenate %278, %347 in 0 : vector<8x32xf32>, vector<8x32xf32> -> vector<16x32xf32>
    %349 = vector.broadcast %186 : vector<1x32xf32> to vector<16x32xf32>
    %350 = arith.addf %348, %349 : vector<16x32xf32>
    %351 = arith.addf %350, %176 : vector<16x32xf32>
    %c0_118 = arith.constant 0 : index
    %c230 = arith.constant 230 : index
    %c0_119 = arith.constant 0 : index
    %352 = vector.load %arg2[%c0_118, %c230, %c0_119] : memref<1x480x128xf32, #tpu.memory_space<vmem>>, vector<1x1x32xf32>
    %353 = vector.shape_cast %352 : vector<1x1x32xf32> to vector<1x32xf32>
    %c0_120 = arith.constant 0 : index
    %c231 = arith.constant 231 : index
    %c0_121 = arith.constant 0 : index
    %354 = vector.load %arg2[%c0_120, %c231, %c0_121] : memref<1x480x128xf32, #tpu.memory_space<vmem>>, vector<1x1x32xf32>
    %355 = vector.shape_cast %354 : vector<1x1x32xf32> to vector<1x32xf32>
    %c0_122 = arith.constant 0 : index
    %c128 = arith.constant 128 : index
    %c0_123 = arith.constant 0 : index
    %356 = vector.load %arg2[%c0_122, %c128, %c0_123] : memref<1x480x128xf32, #tpu.memory_space<vmem>>, vector<1x32x64xf32>
    %357 = vector.shape_cast %356 : vector<1x32x64xf32> to vector<32x64xf32>
    %c0_124 = arith.constant 0 : index
    %c232 = arith.constant 232 : index
    %c0_125 = arith.constant 0 : index
    %358 = vector.load %arg2[%c0_124, %c232, %c0_125] : memref<1x480x128xf32, #tpu.memory_space<vmem>>, vector<1x1x64xf32>
    %359 = vector.shape_cast %358 : vector<1x1x64xf32> to vector<1x64xf32>
    %c0_126 = arith.constant 0 : index
    %c160 = arith.constant 160 : index
    %c0_127 = arith.constant 0 : index
    %360 = vector.load %arg2[%c0_126, %c160, %c0_127] : memref<1x480x128xf32, #tpu.memory_space<vmem>>, vector<1x64x32xf32>
    %361 = vector.shape_cast %360 : vector<1x64x32xf32> to vector<64x32xf32>
    %c0_128 = arith.constant 0 : index
    %c233 = arith.constant 233 : index
    %c0_129 = arith.constant 0 : index
    %362 = vector.load %arg2[%c0_128, %c233, %c0_129] : memref<1x480x128xf32, #tpu.memory_space<vmem>>, vector<1x1x32xf32>
    %363 = vector.shape_cast %362 : vector<1x1x32xf32> to vector<1x32xf32>
    %cst_130 = arith.constant dense<0.000000e+00> : vector<16xf32>
    %364 = vector.multi_reduction <add>, %351, %cst_130 [1] : vector<16x32xf32> to vector<16xf32>
    %365 = vector.shape_cast %364 : vector<16xf32> to vector<16x1xf32>
    %cst_131 = arith.constant 3.200000e+01 : f32
    %366 = vector.broadcast %cst_131 : f32 to vector<16x1xf32>
    %367 = arith.divf %365, %366 : vector<16x1xf32>
    %368 = vector.broadcast %367 : vector<16x1xf32> to vector<16x32xf32>
    %369 = arith.subf %351, %368 : vector<16x32xf32>
    %370 = arith.mulf %369, %369 : vector<16x32xf32>
    %cst_132 = arith.constant dense<0.000000e+00> : vector<16xf32>
    %371 = vector.multi_reduction <add>, %370, %cst_132 [1] : vector<16x32xf32> to vector<16xf32>
    %372 = vector.shape_cast %371 : vector<16xf32> to vector<16x1xf32>
    %cst_133 = arith.constant 3.200000e+01 : f32
    %373 = vector.broadcast %cst_133 : f32 to vector<16x1xf32>
    %374 = arith.divf %372, %373 : vector<16x1xf32>
    %375 = vector.broadcast %367 : vector<16x1xf32> to vector<16x32xf32>
    %376 = arith.subf %351, %375 : vector<16x32xf32>
    %cst_134 = arith.constant 9.99999974E-6 : f32
    %377 = vector.broadcast %cst_134 : f32 to vector<16x1xf32>
    %378 = arith.addf %374, %377 : vector<16x1xf32>
    %379 = math.rsqrt %378 : vector<16x1xf32>
    %380 = vector.broadcast %379 : vector<16x1xf32> to vector<16x32xf32>
    %381 = arith.mulf %376, %380 : vector<16x32xf32>
    %382 = vector.broadcast %353 : vector<1x32xf32> to vector<16x32xf32>
    %383 = arith.mulf %381, %382 : vector<16x32xf32>
    %384 = vector.broadcast %355 : vector<1x32xf32> to vector<16x32xf32>
    %385 = arith.addf %383, %384 : vector<16x32xf32>
    %cst_135 = arith.constant dense<0.000000e+00> : vector<16x64xf32>
    %386 = tpu.matmul %385, %357, %cst_135 {dimension_numbers = #tpu.dot_dimension_numbers<[1], [0], [0], [1], [0, 0, 1, 1], [], []>} : vector<16x32xf32>, vector<32x64xf32>, vector<16x64xf32> -> vector<16x64xf32>
    %387 = vector.broadcast %359 : vector<1x64xf32> to vector<16x64xf32>
    %388 = arith.addf %386, %387 : vector<16x64xf32>
    %cst_136 = arith.constant 5.000000e-01 : f32
    %389 = vector.broadcast %cst_136 : f32 to vector<16x64xf32>
    %390 = arith.mulf %389, %388 : vector<16x64xf32>
    %cst_137 = arith.constant 0.707106769 : f32
    %391 = vector.broadcast %cst_137 : f32 to vector<16x64xf32>
    %392 = arith.mulf %388, %391 : vector<16x64xf32>
    %cst_138 = arith.constant 0.000000e+00 : f32
    %393 = vector.broadcast %cst_138 : f32 to vector<16x64xf32>
    %394 = arith.cmpf oge, %392, %393 : vector<16x64xf32>
    %cst_139 = arith.constant 1.000000e+00 : f32
    %cst_140 = arith.constant -1.000000e+00 : f32
    %395 = vector.broadcast %cst_139 : f32 to vector<16x64xf32>
    %396 = vector.broadcast %cst_140 : f32 to vector<16x64xf32>
    %397 = arith.select %394, %395, %396 : vector<16x64xi1>, vector<16x64xf32>
    %398 = math.absf %392 : vector<16x64xf32>
    %cst_141 = arith.constant 0.327591091 : f32
    %399 = vector.broadcast %cst_141 : f32 to vector<16x64xf32>
    %400 = arith.mulf %399, %398 : vector<16x64xf32>
    %cst_142 = arith.constant 1.000000e+00 : f32
    %401 = vector.broadcast %cst_142 : f32 to vector<16x64xf32>
    %402 = arith.addf %401, %400 : vector<16x64xf32>
    %cst_143 = arith.constant 1.000000e+00 : f32
    %403 = vector.broadcast %cst_143 : f32 to vector<16x64xf32>
    %404 = arith.divf %403, %402 : vector<16x64xf32>
    %cst_144 = arith.constant 1.06140542 : f32
    %405 = vector.broadcast %cst_144 : f32 to vector<16x64xf32>
    %406 = arith.mulf %405, %404 : vector<16x64xf32>
    %cst_145 = arith.constant -1.45315206 : f32
    %407 = vector.broadcast %cst_145 : f32 to vector<16x64xf32>
    %408 = arith.addf %406, %407 : vector<16x64xf32>
    %409 = arith.mulf %408, %404 : vector<16x64xf32>
    %cst_146 = arith.constant 1.42141378 : f32
    %410 = vector.broadcast %cst_146 : f32 to vector<16x64xf32>
    %411 = arith.addf %409, %410 : vector<16x64xf32>
    %412 = arith.mulf %411, %404 : vector<16x64xf32>
    %cst_147 = arith.constant -0.284496725 : f32
    %413 = vector.broadcast %cst_147 : f32 to vector<16x64xf32>
    %414 = arith.addf %412, %413 : vector<16x64xf32>
    %415 = arith.mulf %414, %404 : vector<16x64xf32>
    %cst_148 = arith.constant 0.254829586 : f32
    %416 = vector.broadcast %cst_148 : f32 to vector<16x64xf32>
    %417 = arith.addf %415, %416 : vector<16x64xf32>
    %418 = arith.mulf %417, %404 : vector<16x64xf32>
    %cst_149 = arith.constant 0.000000e+00 : f32
    %419 = vector.broadcast %cst_149 : f32 to vector<16x64xf32>
    %420 = arith.subf %419, %398 : vector<16x64xf32>
    %421 = arith.mulf %420, %398 : vector<16x64xf32>
    %422 = math.exp %421 : vector<16x64xf32>
    %423 = arith.mulf %418, %422 : vector<16x64xf32>
    %cst_150 = arith.constant 1.000000e+00 : f32
    %424 = vector.broadcast %cst_150 : f32 to vector<16x64xf32>
    %425 = arith.subf %424, %423 : vector<16x64xf32>
    %426 = arith.mulf %397, %425 : vector<16x64xf32>
    %cst_151 = arith.constant 1.000000e+00 : f32
    %427 = vector.broadcast %cst_151 : f32 to vector<16x64xf32>
    %428 = arith.addf %427, %426 : vector<16x64xf32>
    %429 = arith.mulf %390, %428 : vector<16x64xf32>
    %cst_152 = arith.constant dense<0.000000e+00> : vector<16x32xf32>
    %430 = tpu.matmul %429, %361, %cst_152 {dimension_numbers = #tpu.dot_dimension_numbers<[1], [0], [0], [1], [0, 0, 1, 1], [], []>} : vector<16x64xf32>, vector<64x32xf32>, vector<16x32xf32> -> vector<16x32xf32>
    %431 = vector.broadcast %363 : vector<1x32xf32> to vector<16x32xf32>
    %432 = arith.addf %430, %431 : vector<16x32xf32>
    %433 = arith.addf %432, %351 : vector<16x32xf32>
    %c0_153 = arith.constant 0 : index
    %c464 = arith.constant 464 : index
    %c0_154 = arith.constant 0 : index
    %434 = vector.load %arg2[%c0_153, %c464, %c0_154] : memref<1x480x128xf32, #tpu.memory_space<vmem>>, vector<1x1x32xf32>
    %435 = vector.shape_cast %434 : vector<1x1x32xf32> to vector<1x32xf32>
    %c0_155 = arith.constant 0 : index
    %c465 = arith.constant 465 : index
    %c0_156 = arith.constant 0 : index
    %436 = vector.load %arg2[%c0_155, %c465, %c0_156] : memref<1x480x128xf32, #tpu.memory_space<vmem>>, vector<1x1x32xf32>
    %437 = vector.shape_cast %436 : vector<1x1x32xf32> to vector<1x32xf32>
    %c0_157 = arith.constant 0 : index
    %c240 = arith.constant 240 : index
    %c0_158 = arith.constant 0 : index
    %438 = vector.load %arg2[%c0_157, %c240, %c0_158] : memref<1x480x128xf32, #tpu.memory_space<vmem>>, vector<1x32x96xf32>
    %439 = vector.shape_cast %438 : vector<1x32x96xf32> to vector<32x96xf32>
    %c0_159 = arith.constant 0 : index
    %c304 = arith.constant 304 : index
    %c0_160 = arith.constant 0 : index
    %440 = vector.load %arg2[%c0_159, %c304, %c0_160] : memref<1x480x128xf32, #tpu.memory_space<vmem>>, vector<1x32x32xf32>
    %441 = vector.shape_cast %440 : vector<1x32x32xf32> to vector<32x32xf32>
    %c0_161 = arith.constant 0 : index
    %c466 = arith.constant 466 : index
    %c0_162 = arith.constant 0 : index
    %442 = vector.load %arg2[%c0_161, %c466, %c0_162] : memref<1x480x128xf32, #tpu.memory_space<vmem>>, vector<1x1x32xf32>
    %443 = vector.shape_cast %442 : vector<1x1x32xf32> to vector<1x32xf32>
    %cst_163 = arith.constant dense<0.000000e+00> : vector<16xf32>
    %444 = vector.multi_reduction <add>, %433, %cst_163 [1] : vector<16x32xf32> to vector<16xf32>
    %445 = vector.shape_cast %444 : vector<16xf32> to vector<16x1xf32>
    %cst_164 = arith.constant 3.200000e+01 : f32
    %446 = vector.broadcast %cst_164 : f32 to vector<16x1xf32>
    %447 = arith.divf %445, %446 : vector<16x1xf32>
    %448 = vector.broadcast %447 : vector<16x1xf32> to vector<16x32xf32>
    %449 = arith.subf %433, %448 : vector<16x32xf32>
    %450 = arith.mulf %449, %449 : vector<16x32xf32>
    %cst_165 = arith.constant dense<0.000000e+00> : vector<16xf32>
    %451 = vector.multi_reduction <add>, %450, %cst_165 [1] : vector<16x32xf32> to vector<16xf32>
    %452 = vector.shape_cast %451 : vector<16xf32> to vector<16x1xf32>
    %cst_166 = arith.constant 3.200000e+01 : f32
    %453 = vector.broadcast %cst_166 : f32 to vector<16x1xf32>
    %454 = arith.divf %452, %453 : vector<16x1xf32>
    %455 = vector.broadcast %447 : vector<16x1xf32> to vector<16x32xf32>
    %456 = arith.subf %433, %455 : vector<16x32xf32>
    %cst_167 = arith.constant 9.99999974E-6 : f32
    %457 = vector.broadcast %cst_167 : f32 to vector<16x1xf32>
    %458 = arith.addf %454, %457 : vector<16x1xf32>
    %459 = math.rsqrt %458 : vector<16x1xf32>
    %460 = vector.broadcast %459 : vector<16x1xf32> to vector<16x32xf32>
    %461 = arith.mulf %456, %460 : vector<16x32xf32>
    %462 = vector.broadcast %435 : vector<1x32xf32> to vector<16x32xf32>
    %463 = arith.mulf %461, %462 : vector<16x32xf32>
    %464 = vector.broadcast %437 : vector<1x32xf32> to vector<16x32xf32>
    %465 = arith.addf %463, %464 : vector<16x32xf32>
    %cst_168 = arith.constant dense<0.000000e+00> : vector<16x96xf32>
    %466 = tpu.matmul %465, %439, %cst_168 {dimension_numbers = #tpu.dot_dimension_numbers<[1], [0], [0], [1], [0, 0, 1, 1], [], []>} : vector<16x32xf32>, vector<32x96xf32>, vector<16x96xf32> -> vector<16x96xf32>
    %cst_169 = arith.constant 0.000000e+00 : f32
    %467 = vector.broadcast %cst_169 : f32 to vector<8x32xf32>
    %468 = vector.extract_strided_slice %466 {offsets = [0, 0], sizes = [8, 8], strides = [1, 1]} : vector<16x96xf32> to vector<8x8xf32>
    %469 = vector.extract_strided_slice %466 {offsets = [0, 32], sizes = [8, 8], strides = [1, 1]} : vector<16x96xf32> to vector<8x8xf32>
    %470 = vector.extract_strided_slice %466 {offsets = [0, 64], sizes = [8, 8], strides = [1, 1]} : vector<16x96xf32> to vector<8x8xf32>
    %cst_170 = arith.constant dense<0.000000e+00> : vector<8x8xf32>
    %471 = tpu.matmul %468, %469, %cst_170 {dimension_numbers = #tpu.dot_dimension_numbers<[1], [1], [0], [0], [0, 0, 1, 0], [], []>} : vector<8x8xf32>, vector<8x8xf32>, vector<8x8xf32> -> vector<8x8xf32>
    %cst_171 = arith.constant dense<0xFF800000> : vector<8xf32>
    %472 = vector.multi_reduction <maximumf>, %471, %cst_171 [1] : vector<8x8xf32> to vector<8xf32>
    %473 = vector.shape_cast %472 : vector<8xf32> to vector<8x1xf32>
    %474 = vector.broadcast %473 : vector<8x1xf32> to vector<8x8xf32>
    %475 = arith.subf %471, %474 : vector<8x8xf32>
    %476 = math.exp %475 : vector<8x8xf32>
    %cst_172 = arith.constant dense<0.000000e+00> : vector<8xf32>
    %477 = vector.multi_reduction <add>, %476, %cst_172 [1] : vector<8x8xf32> to vector<8xf32>
    %478 = vector.shape_cast %477 : vector<8xf32> to vector<8x1xf32>
    %479 = vector.broadcast %478 : vector<8x1xf32> to vector<8x8xf32>
    %480 = arith.divf %476, %479 : vector<8x8xf32>
    %cst_173 = arith.constant dense<0.000000e+00> : vector<8x8xf32>
    %481 = tpu.matmul %480, %470, %cst_173 {dimension_numbers = #tpu.dot_dimension_numbers<[1], [0], [0], [1], [0, 0, 1, 1], [], []>} : vector<8x8xf32>, vector<8x8xf32>, vector<8x8xf32> -> vector<8x8xf32>
    %482 = vector.extract_strided_slice %441 {offsets = [0, 0], sizes = [8, 32], strides = [1, 1]} : vector<32x32xf32> to vector<8x32xf32>
    %cst_174 = arith.constant dense<0.000000e+00> : vector<8x32xf32>
    %483 = tpu.matmul %481, %482, %cst_174 {dimension_numbers = #tpu.dot_dimension_numbers<[1], [0], [0], [1], [0, 0, 1, 1], [], []>} : vector<8x8xf32>, vector<8x32xf32>, vector<8x32xf32> -> vector<8x32xf32>
    %484 = arith.addf %467, %483 : vector<8x32xf32>
    %485 = vector.extract_strided_slice %466 {offsets = [0, 8], sizes = [8, 8], strides = [1, 1]} : vector<16x96xf32> to vector<8x8xf32>
    %486 = vector.extract_strided_slice %466 {offsets = [0, 40], sizes = [8, 8], strides = [1, 1]} : vector<16x96xf32> to vector<8x8xf32>
    %487 = vector.extract_strided_slice %466 {offsets = [0, 72], sizes = [8, 8], strides = [1, 1]} : vector<16x96xf32> to vector<8x8xf32>
    %cst_175 = arith.constant dense<0.000000e+00> : vector<8x8xf32>
    %488 = tpu.matmul %485, %486, %cst_175 {dimension_numbers = #tpu.dot_dimension_numbers<[1], [1], [0], [0], [0, 0, 1, 0], [], []>} : vector<8x8xf32>, vector<8x8xf32>, vector<8x8xf32> -> vector<8x8xf32>
    %cst_176 = arith.constant dense<0xFF800000> : vector<8xf32>
    %489 = vector.multi_reduction <maximumf>, %488, %cst_176 [1] : vector<8x8xf32> to vector<8xf32>
    %490 = vector.shape_cast %489 : vector<8xf32> to vector<8x1xf32>
    %491 = vector.broadcast %490 : vector<8x1xf32> to vector<8x8xf32>
    %492 = arith.subf %488, %491 : vector<8x8xf32>
    %493 = math.exp %492 : vector<8x8xf32>
    %cst_177 = arith.constant dense<0.000000e+00> : vector<8xf32>
    %494 = vector.multi_reduction <add>, %493, %cst_177 [1] : vector<8x8xf32> to vector<8xf32>
    %495 = vector.shape_cast %494 : vector<8xf32> to vector<8x1xf32>
    %496 = vector.broadcast %495 : vector<8x1xf32> to vector<8x8xf32>
    %497 = arith.divf %493, %496 : vector<8x8xf32>
    %cst_178 = arith.constant dense<0.000000e+00> : vector<8x8xf32>
    %498 = tpu.matmul %497, %487, %cst_178 {dimension_numbers = #tpu.dot_dimension_numbers<[1], [0], [0], [1], [0, 0, 1, 1], [], []>} : vector<8x8xf32>, vector<8x8xf32>, vector<8x8xf32> -> vector<8x8xf32>
    %499 = vector.extract_strided_slice %441 {offsets = [8, 0], sizes = [8, 32], strides = [1, 1]} : vector<32x32xf32> to vector<8x32xf32>
    %cst_179 = arith.constant dense<0.000000e+00> : vector<8x32xf32>
    %500 = tpu.matmul %498, %499, %cst_179 {dimension_numbers = #tpu.dot_dimension_numbers<[1], [0], [0], [1], [0, 0, 1, 1], [], []>} : vector<8x8xf32>, vector<8x32xf32>, vector<8x32xf32> -> vector<8x32xf32>
    %501 = arith.addf %484, %500 : vector<8x32xf32>
    %502 = vector.extract_strided_slice %466 {offsets = [0, 16], sizes = [8, 8], strides = [1, 1]} : vector<16x96xf32> to vector<8x8xf32>
    %503 = vector.extract_strided_slice %466 {offsets = [0, 48], sizes = [8, 8], strides = [1, 1]} : vector<16x96xf32> to vector<8x8xf32>
    %504 = vector.extract_strided_slice %466 {offsets = [0, 80], sizes = [8, 8], strides = [1, 1]} : vector<16x96xf32> to vector<8x8xf32>
    %cst_180 = arith.constant dense<0.000000e+00> : vector<8x8xf32>
    %505 = tpu.matmul %502, %503, %cst_180 {dimension_numbers = #tpu.dot_dimension_numbers<[1], [1], [0], [0], [0, 0, 1, 0], [], []>} : vector<8x8xf32>, vector<8x8xf32>, vector<8x8xf32> -> vector<8x8xf32>
    %cst_181 = arith.constant dense<0xFF800000> : vector<8xf32>
    %506 = vector.multi_reduction <maximumf>, %505, %cst_181 [1] : vector<8x8xf32> to vector<8xf32>
    %507 = vector.shape_cast %506 : vector<8xf32> to vector<8x1xf32>
    %508 = vector.broadcast %507 : vector<8x1xf32> to vector<8x8xf32>
    %509 = arith.subf %505, %508 : vector<8x8xf32>
    %510 = math.exp %509 : vector<8x8xf32>
    %cst_182 = arith.constant dense<0.000000e+00> : vector<8xf32>
    %511 = vector.multi_reduction <add>, %510, %cst_182 [1] : vector<8x8xf32> to vector<8xf32>
    %512 = vector.shape_cast %511 : vector<8xf32> to vector<8x1xf32>
    %513 = vector.broadcast %512 : vector<8x1xf32> to vector<8x8xf32>
    %514 = arith.divf %510, %513 : vector<8x8xf32>
    %cst_183 = arith.constant dense<0.000000e+00> : vector<8x8xf32>
    %515 = tpu.matmul %514, %504, %cst_183 {dimension_numbers = #tpu.dot_dimension_numbers<[1], [0], [0], [1], [0, 0, 1, 1], [], []>} : vector<8x8xf32>, vector<8x8xf32>, vector<8x8xf32> -> vector<8x8xf32>
    %516 = vector.extract_strided_slice %441 {offsets = [16, 0], sizes = [8, 32], strides = [1, 1]} : vector<32x32xf32> to vector<8x32xf32>
    %cst_184 = arith.constant dense<0.000000e+00> : vector<8x32xf32>
    %517 = tpu.matmul %515, %516, %cst_184 {dimension_numbers = #tpu.dot_dimension_numbers<[1], [0], [0], [1], [0, 0, 1, 1], [], []>} : vector<8x8xf32>, vector<8x32xf32>, vector<8x32xf32> -> vector<8x32xf32>
    %518 = arith.addf %501, %517 : vector<8x32xf32>
    %519 = vector.extract_strided_slice %466 {offsets = [0, 24], sizes = [8, 8], strides = [1, 1]} : vector<16x96xf32> to vector<8x8xf32>
    %520 = vector.extract_strided_slice %466 {offsets = [0, 56], sizes = [8, 8], strides = [1, 1]} : vector<16x96xf32> to vector<8x8xf32>
    %521 = vector.extract_strided_slice %466 {offsets = [0, 88], sizes = [8, 8], strides = [1, 1]} : vector<16x96xf32> to vector<8x8xf32>
    %cst_185 = arith.constant dense<0.000000e+00> : vector<8x8xf32>
    %522 = tpu.matmul %519, %520, %cst_185 {dimension_numbers = #tpu.dot_dimension_numbers<[1], [1], [0], [0], [0, 0, 1, 0], [], []>} : vector<8x8xf32>, vector<8x8xf32>, vector<8x8xf32> -> vector<8x8xf32>
    %cst_186 = arith.constant dense<0xFF800000> : vector<8xf32>
    %523 = vector.multi_reduction <maximumf>, %522, %cst_186 [1] : vector<8x8xf32> to vector<8xf32>
    %524 = vector.shape_cast %523 : vector<8xf32> to vector<8x1xf32>
    %525 = vector.broadcast %524 : vector<8x1xf32> to vector<8x8xf32>
    %526 = arith.subf %522, %525 : vector<8x8xf32>
    %527 = math.exp %526 : vector<8x8xf32>
    %cst_187 = arith.constant dense<0.000000e+00> : vector<8xf32>
    %528 = vector.multi_reduction <add>, %527, %cst_187 [1] : vector<8x8xf32> to vector<8xf32>
    %529 = vector.shape_cast %528 : vector<8xf32> to vector<8x1xf32>
    %530 = vector.broadcast %529 : vector<8x1xf32> to vector<8x8xf32>
    %531 = arith.divf %527, %530 : vector<8x8xf32>
    %cst_188 = arith.constant dense<0.000000e+00> : vector<8x8xf32>
    %532 = tpu.matmul %531, %521, %cst_188 {dimension_numbers = #tpu.dot_dimension_numbers<[1], [0], [0], [1], [0, 0, 1, 1], [], []>} : vector<8x8xf32>, vector<8x8xf32>, vector<8x8xf32> -> vector<8x8xf32>
    %533 = vector.extract_strided_slice %441 {offsets = [24, 0], sizes = [8, 32], strides = [1, 1]} : vector<32x32xf32> to vector<8x32xf32>
    %cst_189 = arith.constant dense<0.000000e+00> : vector<8x32xf32>
    %534 = tpu.matmul %532, %533, %cst_189 {dimension_numbers = #tpu.dot_dimension_numbers<[1], [0], [0], [1], [0, 0, 1, 1], [], []>} : vector<8x8xf32>, vector<8x32xf32>, vector<8x32xf32> -> vector<8x32xf32>
    %535 = arith.addf %518, %534 : vector<8x32xf32>
    %cst_190 = arith.constant 0.000000e+00 : f32
    %536 = vector.broadcast %cst_190 : f32 to vector<8x32xf32>
    %537 = vector.extract_strided_slice %466 {offsets = [8, 0], sizes = [8, 8], strides = [1, 1]} : vector<16x96xf32> to vector<8x8xf32>
    %538 = vector.extract_strided_slice %466 {offsets = [8, 32], sizes = [8, 8], strides = [1, 1]} : vector<16x96xf32> to vector<8x8xf32>
    %539 = vector.extract_strided_slice %466 {offsets = [8, 64], sizes = [8, 8], strides = [1, 1]} : vector<16x96xf32> to vector<8x8xf32>
    %cst_191 = arith.constant dense<0.000000e+00> : vector<8x8xf32>
    %540 = tpu.matmul %537, %538, %cst_191 {dimension_numbers = #tpu.dot_dimension_numbers<[1], [1], [0], [0], [0, 0, 1, 0], [], []>} : vector<8x8xf32>, vector<8x8xf32>, vector<8x8xf32> -> vector<8x8xf32>
    %cst_192 = arith.constant dense<0xFF800000> : vector<8xf32>
    %541 = vector.multi_reduction <maximumf>, %540, %cst_192 [1] : vector<8x8xf32> to vector<8xf32>
    %542 = vector.shape_cast %541 : vector<8xf32> to vector<8x1xf32>
    %543 = vector.broadcast %542 : vector<8x1xf32> to vector<8x8xf32>
    %544 = arith.subf %540, %543 : vector<8x8xf32>
    %545 = math.exp %544 : vector<8x8xf32>
    %cst_193 = arith.constant dense<0.000000e+00> : vector<8xf32>
    %546 = vector.multi_reduction <add>, %545, %cst_193 [1] : vector<8x8xf32> to vector<8xf32>
    %547 = vector.shape_cast %546 : vector<8xf32> to vector<8x1xf32>
    %548 = vector.broadcast %547 : vector<8x1xf32> to vector<8x8xf32>
    %549 = arith.divf %545, %548 : vector<8x8xf32>
    %cst_194 = arith.constant dense<0.000000e+00> : vector<8x8xf32>
    %550 = tpu.matmul %549, %539, %cst_194 {dimension_numbers = #tpu.dot_dimension_numbers<[1], [0], [0], [1], [0, 0, 1, 1], [], []>} : vector<8x8xf32>, vector<8x8xf32>, vector<8x8xf32> -> vector<8x8xf32>
    %551 = vector.extract_strided_slice %441 {offsets = [0, 0], sizes = [8, 32], strides = [1, 1]} : vector<32x32xf32> to vector<8x32xf32>
    %cst_195 = arith.constant dense<0.000000e+00> : vector<8x32xf32>
    %552 = tpu.matmul %550, %551, %cst_195 {dimension_numbers = #tpu.dot_dimension_numbers<[1], [0], [0], [1], [0, 0, 1, 1], [], []>} : vector<8x8xf32>, vector<8x32xf32>, vector<8x32xf32> -> vector<8x32xf32>
    %553 = arith.addf %536, %552 : vector<8x32xf32>
    %554 = vector.extract_strided_slice %466 {offsets = [8, 8], sizes = [8, 8], strides = [1, 1]} : vector<16x96xf32> to vector<8x8xf32>
    %555 = vector.extract_strided_slice %466 {offsets = [8, 40], sizes = [8, 8], strides = [1, 1]} : vector<16x96xf32> to vector<8x8xf32>
    %556 = vector.extract_strided_slice %466 {offsets = [8, 72], sizes = [8, 8], strides = [1, 1]} : vector<16x96xf32> to vector<8x8xf32>
    %cst_196 = arith.constant dense<0.000000e+00> : vector<8x8xf32>
    %557 = tpu.matmul %554, %555, %cst_196 {dimension_numbers = #tpu.dot_dimension_numbers<[1], [1], [0], [0], [0, 0, 1, 0], [], []>} : vector<8x8xf32>, vector<8x8xf32>, vector<8x8xf32> -> vector<8x8xf32>
    %cst_197 = arith.constant dense<0xFF800000> : vector<8xf32>
    %558 = vector.multi_reduction <maximumf>, %557, %cst_197 [1] : vector<8x8xf32> to vector<8xf32>
    %559 = vector.shape_cast %558 : vector<8xf32> to vector<8x1xf32>
    %560 = vector.broadcast %559 : vector<8x1xf32> to vector<8x8xf32>
    %561 = arith.subf %557, %560 : vector<8x8xf32>
    %562 = math.exp %561 : vector<8x8xf32>
    %cst_198 = arith.constant dense<0.000000e+00> : vector<8xf32>
    %563 = vector.multi_reduction <add>, %562, %cst_198 [1] : vector<8x8xf32> to vector<8xf32>
    %564 = vector.shape_cast %563 : vector<8xf32> to vector<8x1xf32>
    %565 = vector.broadcast %564 : vector<8x1xf32> to vector<8x8xf32>
    %566 = arith.divf %562, %565 : vector<8x8xf32>
    %cst_199 = arith.constant dense<0.000000e+00> : vector<8x8xf32>
    %567 = tpu.matmul %566, %556, %cst_199 {dimension_numbers = #tpu.dot_dimension_numbers<[1], [0], [0], [1], [0, 0, 1, 1], [], []>} : vector<8x8xf32>, vector<8x8xf32>, vector<8x8xf32> -> vector<8x8xf32>
    %568 = vector.extract_strided_slice %441 {offsets = [8, 0], sizes = [8, 32], strides = [1, 1]} : vector<32x32xf32> to vector<8x32xf32>
    %cst_200 = arith.constant dense<0.000000e+00> : vector<8x32xf32>
    %569 = tpu.matmul %567, %568, %cst_200 {dimension_numbers = #tpu.dot_dimension_numbers<[1], [0], [0], [1], [0, 0, 1, 1], [], []>} : vector<8x8xf32>, vector<8x32xf32>, vector<8x32xf32> -> vector<8x32xf32>
    %570 = arith.addf %553, %569 : vector<8x32xf32>
    %571 = vector.extract_strided_slice %466 {offsets = [8, 16], sizes = [8, 8], strides = [1, 1]} : vector<16x96xf32> to vector<8x8xf32>
    %572 = vector.extract_strided_slice %466 {offsets = [8, 48], sizes = [8, 8], strides = [1, 1]} : vector<16x96xf32> to vector<8x8xf32>
    %573 = vector.extract_strided_slice %466 {offsets = [8, 80], sizes = [8, 8], strides = [1, 1]} : vector<16x96xf32> to vector<8x8xf32>
    %cst_201 = arith.constant dense<0.000000e+00> : vector<8x8xf32>
    %574 = tpu.matmul %571, %572, %cst_201 {dimension_numbers = #tpu.dot_dimension_numbers<[1], [1], [0], [0], [0, 0, 1, 0], [], []>} : vector<8x8xf32>, vector<8x8xf32>, vector<8x8xf32> -> vector<8x8xf32>
    %cst_202 = arith.constant dense<0xFF800000> : vector<8xf32>
    %575 = vector.multi_reduction <maximumf>, %574, %cst_202 [1] : vector<8x8xf32> to vector<8xf32>
    %576 = vector.shape_cast %575 : vector<8xf32> to vector<8x1xf32>
    %577 = vector.broadcast %576 : vector<8x1xf32> to vector<8x8xf32>
    %578 = arith.subf %574, %577 : vector<8x8xf32>
    %579 = math.exp %578 : vector<8x8xf32>
    %cst_203 = arith.constant dense<0.000000e+00> : vector<8xf32>
    %580 = vector.multi_reduction <add>, %579, %cst_203 [1] : vector<8x8xf32> to vector<8xf32>
    %581 = vector.shape_cast %580 : vector<8xf32> to vector<8x1xf32>
    %582 = vector.broadcast %581 : vector<8x1xf32> to vector<8x8xf32>
    %583 = arith.divf %579, %582 : vector<8x8xf32>
    %cst_204 = arith.constant dense<0.000000e+00> : vector<8x8xf32>
    %584 = tpu.matmul %583, %573, %cst_204 {dimension_numbers = #tpu.dot_dimension_numbers<[1], [0], [0], [1], [0, 0, 1, 1], [], []>} : vector<8x8xf32>, vector<8x8xf32>, vector<8x8xf32> -> vector<8x8xf32>
    %585 = vector.extract_strided_slice %441 {offsets = [16, 0], sizes = [8, 32], strides = [1, 1]} : vector<32x32xf32> to vector<8x32xf32>
    %cst_205 = arith.constant dense<0.000000e+00> : vector<8x32xf32>
    %586 = tpu.matmul %584, %585, %cst_205 {dimension_numbers = #tpu.dot_dimension_numbers<[1], [0], [0], [1], [0, 0, 1, 1], [], []>} : vector<8x8xf32>, vector<8x32xf32>, vector<8x32xf32> -> vector<8x32xf32>
    %587 = arith.addf %570, %586 : vector<8x32xf32>
    %588 = vector.extract_strided_slice %466 {offsets = [8, 24], sizes = [8, 8], strides = [1, 1]} : vector<16x96xf32> to vector<8x8xf32>
    %589 = vector.extract_strided_slice %466 {offsets = [8, 56], sizes = [8, 8], strides = [1, 1]} : vector<16x96xf32> to vector<8x8xf32>
    %590 = vector.extract_strided_slice %466 {offsets = [8, 88], sizes = [8, 8], strides = [1, 1]} : vector<16x96xf32> to vector<8x8xf32>
    %cst_206 = arith.constant dense<0.000000e+00> : vector<8x8xf32>
    %591 = tpu.matmul %588, %589, %cst_206 {dimension_numbers = #tpu.dot_dimension_numbers<[1], [1], [0], [0], [0, 0, 1, 0], [], []>} : vector<8x8xf32>, vector<8x8xf32>, vector<8x8xf32> -> vector<8x8xf32>
    %cst_207 = arith.constant dense<0xFF800000> : vector<8xf32>
    %592 = vector.multi_reduction <maximumf>, %591, %cst_207 [1] : vector<8x8xf32> to vector<8xf32>
    %593 = vector.shape_cast %592 : vector<8xf32> to vector<8x1xf32>
    %594 = vector.broadcast %593 : vector<8x1xf32> to vector<8x8xf32>
    %595 = arith.subf %591, %594 : vector<8x8xf32>
    %596 = math.exp %595 : vector<8x8xf32>
    %cst_208 = arith.constant dense<0.000000e+00> : vector<8xf32>
    %597 = vector.multi_reduction <add>, %596, %cst_208 [1] : vector<8x8xf32> to vector<8xf32>
    %598 = vector.shape_cast %597 : vector<8xf32> to vector<8x1xf32>
    %599 = vector.broadcast %598 : vector<8x1xf32> to vector<8x8xf32>
    %600 = arith.divf %596, %599 : vector<8x8xf32>
    %cst_209 = arith.constant dense<0.000000e+00> : vector<8x8xf32>
    %601 = tpu.matmul %600, %590, %cst_209 {dimension_numbers = #tpu.dot_dimension_numbers<[1], [0], [0], [1], [0, 0, 1, 1], [], []>} : vector<8x8xf32>, vector<8x8xf32>, vector<8x8xf32> -> vector<8x8xf32>
    %602 = vector.extract_strided_slice %441 {offsets = [24, 0], sizes = [8, 32], strides = [1, 1]} : vector<32x32xf32> to vector<8x32xf32>
    %cst_210 = arith.constant dense<0.000000e+00> : vector<8x32xf32>
    %603 = tpu.matmul %601, %602, %cst_210 {dimension_numbers = #tpu.dot_dimension_numbers<[1], [0], [0], [1], [0, 0, 1, 1], [], []>} : vector<8x8xf32>, vector<8x32xf32>, vector<8x32xf32> -> vector<8x32xf32>
    %604 = arith.addf %587, %603 : vector<8x32xf32>
    %605 = tpu.concatenate %535, %604 in 0 : vector<8x32xf32>, vector<8x32xf32> -> vector<16x32xf32>
    %606 = vector.broadcast %443 : vector<1x32xf32> to vector<16x32xf32>
    %607 = arith.addf %605, %606 : vector<16x32xf32>
    %608 = arith.addf %607, %433 : vector<16x32xf32>
    %c0_211 = arith.constant 0 : index
    %c467 = arith.constant 467 : index
    %c0_212 = arith.constant 0 : index
    %609 = vector.load %arg2[%c0_211, %c467, %c0_212] : memref<1x480x128xf32, #tpu.memory_space<vmem>>, vector<1x1x32xf32>
    %610 = vector.shape_cast %609 : vector<1x1x32xf32> to vector<1x32xf32>
    %c0_213 = arith.constant 0 : index
    %c468 = arith.constant 468 : index
    %c0_214 = arith.constant 0 : index
    %611 = vector.load %arg2[%c0_213, %c468, %c0_214] : memref<1x480x128xf32, #tpu.memory_space<vmem>>, vector<1x1x32xf32>
    %612 = vector.shape_cast %611 : vector<1x1x32xf32> to vector<1x32xf32>
    %c0_215 = arith.constant 0 : index
    %c272 = arith.constant 272 : index
    %c0_216 = arith.constant 0 : index
    %613 = vector.load %arg2[%c0_215, %c272, %c0_216] : memref<1x480x128xf32, #tpu.memory_space<vmem>>, vector<1x32x96xf32>
    %614 = vector.shape_cast %613 : vector<1x32x96xf32> to vector<32x96xf32>
    %c0_217 = arith.constant 0 : index
    %c336 = arith.constant 336 : index
    %c0_218 = arith.constant 0 : index
    %615 = vector.load %arg2[%c0_217, %c336, %c0_218] : memref<1x480x128xf32, #tpu.memory_space<vmem>>, vector<1x32x32xf32>
    %616 = vector.shape_cast %615 : vector<1x32x32xf32> to vector<32x32xf32>
    %c0_219 = arith.constant 0 : index
    %c469 = arith.constant 469 : index
    %c0_220 = arith.constant 0 : index
    %617 = vector.load %arg2[%c0_219, %c469, %c0_220] : memref<1x480x128xf32, #tpu.memory_space<vmem>>, vector<1x1x32xf32>
    %618 = vector.shape_cast %617 : vector<1x1x32xf32> to vector<1x32xf32>
    %cst_221 = arith.constant dense<0.000000e+00> : vector<16xf32>
    %619 = vector.multi_reduction <add>, %608, %cst_221 [1] : vector<16x32xf32> to vector<16xf32>
    %620 = vector.shape_cast %619 : vector<16xf32> to vector<16x1xf32>
    %cst_222 = arith.constant 3.200000e+01 : f32
    %621 = vector.broadcast %cst_222 : f32 to vector<16x1xf32>
    %622 = arith.divf %620, %621 : vector<16x1xf32>
    %623 = vector.broadcast %622 : vector<16x1xf32> to vector<16x32xf32>
    %624 = arith.subf %608, %623 : vector<16x32xf32>
    %625 = arith.mulf %624, %624 : vector<16x32xf32>
    %cst_223 = arith.constant dense<0.000000e+00> : vector<16xf32>
    %626 = vector.multi_reduction <add>, %625, %cst_223 [1] : vector<16x32xf32> to vector<16xf32>
    %627 = vector.shape_cast %626 : vector<16xf32> to vector<16x1xf32>
    %cst_224 = arith.constant 3.200000e+01 : f32
    %628 = vector.broadcast %cst_224 : f32 to vector<16x1xf32>
    %629 = arith.divf %627, %628 : vector<16x1xf32>
    %630 = vector.broadcast %622 : vector<16x1xf32> to vector<16x32xf32>
    %631 = arith.subf %608, %630 : vector<16x32xf32>
    %cst_225 = arith.constant 9.99999974E-6 : f32
    %632 = vector.broadcast %cst_225 : f32 to vector<16x1xf32>
    %633 = arith.addf %629, %632 : vector<16x1xf32>
    %634 = math.rsqrt %633 : vector<16x1xf32>
    %635 = vector.broadcast %634 : vector<16x1xf32> to vector<16x32xf32>
    %636 = arith.mulf %631, %635 : vector<16x32xf32>
    %637 = vector.broadcast %610 : vector<1x32xf32> to vector<16x32xf32>
    %638 = arith.mulf %636, %637 : vector<16x32xf32>
    %639 = vector.broadcast %612 : vector<1x32xf32> to vector<16x32xf32>
    %640 = arith.addf %638, %639 : vector<16x32xf32>
    %cst_226 = arith.constant dense<0.000000e+00> : vector<16x96xf32>
    %641 = tpu.matmul %640, %614, %cst_226 {dimension_numbers = #tpu.dot_dimension_numbers<[1], [0], [0], [1], [0, 0, 1, 1], [], []>} : vector<16x32xf32>, vector<32x96xf32>, vector<16x96xf32> -> vector<16x96xf32>
    %cst_227 = arith.constant 0.000000e+00 : f32
    %642 = vector.broadcast %cst_227 : f32 to vector<8x32xf32>
    %643 = vector.extract_strided_slice %641 {offsets = [0, 0], sizes = [8, 8], strides = [1, 1]} : vector<16x96xf32> to vector<8x8xf32>
    %644 = vector.extract_strided_slice %641 {offsets = [0, 32], sizes = [8, 8], strides = [1, 1]} : vector<16x96xf32> to vector<8x8xf32>
    %645 = vector.extract_strided_slice %641 {offsets = [0, 64], sizes = [8, 8], strides = [1, 1]} : vector<16x96xf32> to vector<8x8xf32>
    %cst_228 = arith.constant dense<0.000000e+00> : vector<8x8xf32>
    %646 = tpu.matmul %643, %644, %cst_228 {dimension_numbers = #tpu.dot_dimension_numbers<[1], [1], [0], [0], [0, 0, 1, 0], [], []>} : vector<8x8xf32>, vector<8x8xf32>, vector<8x8xf32> -> vector<8x8xf32>
    %cst_229 = arith.constant dense<0xFF800000> : vector<8xf32>
    %647 = vector.multi_reduction <maximumf>, %646, %cst_229 [1] : vector<8x8xf32> to vector<8xf32>
    %648 = vector.shape_cast %647 : vector<8xf32> to vector<8x1xf32>
    %649 = vector.broadcast %648 : vector<8x1xf32> to vector<8x8xf32>
    %650 = arith.subf %646, %649 : vector<8x8xf32>
    %651 = math.exp %650 : vector<8x8xf32>
    %cst_230 = arith.constant dense<0.000000e+00> : vector<8xf32>
    %652 = vector.multi_reduction <add>, %651, %cst_230 [1] : vector<8x8xf32> to vector<8xf32>
    %653 = vector.shape_cast %652 : vector<8xf32> to vector<8x1xf32>
    %654 = vector.broadcast %653 : vector<8x1xf32> to vector<8x8xf32>
    %655 = arith.divf %651, %654 : vector<8x8xf32>
    %cst_231 = arith.constant dense<0.000000e+00> : vector<8x8xf32>
    %656 = tpu.matmul %655, %645, %cst_231 {dimension_numbers = #tpu.dot_dimension_numbers<[1], [0], [0], [1], [0, 0, 1, 1], [], []>} : vector<8x8xf32>, vector<8x8xf32>, vector<8x8xf32> -> vector<8x8xf32>
    %657 = vector.extract_strided_slice %616 {offsets = [0, 0], sizes = [8, 32], strides = [1, 1]} : vector<32x32xf32> to vector<8x32xf32>
    %cst_232 = arith.constant dense<0.000000e+00> : vector<8x32xf32>
    %658 = tpu.matmul %656, %657, %cst_232 {dimension_numbers = #tpu.dot_dimension_numbers<[1], [0], [0], [1], [0, 0, 1, 1], [], []>} : vector<8x8xf32>, vector<8x32xf32>, vector<8x32xf32> -> vector<8x32xf32>
    %659 = arith.addf %642, %658 : vector<8x32xf32>
    %660 = vector.extract_strided_slice %641 {offsets = [0, 8], sizes = [8, 8], strides = [1, 1]} : vector<16x96xf32> to vector<8x8xf32>
    %661 = vector.extract_strided_slice %641 {offsets = [0, 40], sizes = [8, 8], strides = [1, 1]} : vector<16x96xf32> to vector<8x8xf32>
    %662 = vector.extract_strided_slice %641 {offsets = [0, 72], sizes = [8, 8], strides = [1, 1]} : vector<16x96xf32> to vector<8x8xf32>
    %cst_233 = arith.constant dense<0.000000e+00> : vector<8x8xf32>
    %663 = tpu.matmul %660, %661, %cst_233 {dimension_numbers = #tpu.dot_dimension_numbers<[1], [1], [0], [0], [0, 0, 1, 0], [], []>} : vector<8x8xf32>, vector<8x8xf32>, vector<8x8xf32> -> vector<8x8xf32>
    %cst_234 = arith.constant dense<0xFF800000> : vector<8xf32>
    %664 = vector.multi_reduction <maximumf>, %663, %cst_234 [1] : vector<8x8xf32> to vector<8xf32>
    %665 = vector.shape_cast %664 : vector<8xf32> to vector<8x1xf32>
    %666 = vector.broadcast %665 : vector<8x1xf32> to vector<8x8xf32>
    %667 = arith.subf %663, %666 : vector<8x8xf32>
    %668 = math.exp %667 : vector<8x8xf32>
    %cst_235 = arith.constant dense<0.000000e+00> : vector<8xf32>
    %669 = vector.multi_reduction <add>, %668, %cst_235 [1] : vector<8x8xf32> to vector<8xf32>
    %670 = vector.shape_cast %669 : vector<8xf32> to vector<8x1xf32>
    %671 = vector.broadcast %670 : vector<8x1xf32> to vector<8x8xf32>
    %672 = arith.divf %668, %671 : vector<8x8xf32>
    %cst_236 = arith.constant dense<0.000000e+00> : vector<8x8xf32>
    %673 = tpu.matmul %672, %662, %cst_236 {dimension_numbers = #tpu.dot_dimension_numbers<[1], [0], [0], [1], [0, 0, 1, 1], [], []>} : vector<8x8xf32>, vector<8x8xf32>, vector<8x8xf32> -> vector<8x8xf32>
    %674 = vector.extract_strided_slice %616 {offsets = [8, 0], sizes = [8, 32], strides = [1, 1]} : vector<32x32xf32> to vector<8x32xf32>
    %cst_237 = arith.constant dense<0.000000e+00> : vector<8x32xf32>
    %675 = tpu.matmul %673, %674, %cst_237 {dimension_numbers = #tpu.dot_dimension_numbers<[1], [0], [0], [1], [0, 0, 1, 1], [], []>} : vector<8x8xf32>, vector<8x32xf32>, vector<8x32xf32> -> vector<8x32xf32>
    %676 = arith.addf %659, %675 : vector<8x32xf32>
    %677 = vector.extract_strided_slice %641 {offsets = [0, 16], sizes = [8, 8], strides = [1, 1]} : vector<16x96xf32> to vector<8x8xf32>
    %678 = vector.extract_strided_slice %641 {offsets = [0, 48], sizes = [8, 8], strides = [1, 1]} : vector<16x96xf32> to vector<8x8xf32>
    %679 = vector.extract_strided_slice %641 {offsets = [0, 80], sizes = [8, 8], strides = [1, 1]} : vector<16x96xf32> to vector<8x8xf32>
    %cst_238 = arith.constant dense<0.000000e+00> : vector<8x8xf32>
    %680 = tpu.matmul %677, %678, %cst_238 {dimension_numbers = #tpu.dot_dimension_numbers<[1], [1], [0], [0], [0, 0, 1, 0], [], []>} : vector<8x8xf32>, vector<8x8xf32>, vector<8x8xf32> -> vector<8x8xf32>
    %cst_239 = arith.constant dense<0xFF800000> : vector<8xf32>
    %681 = vector.multi_reduction <maximumf>, %680, %cst_239 [1] : vector<8x8xf32> to vector<8xf32>
    %682 = vector.shape_cast %681 : vector<8xf32> to vector<8x1xf32>
    %683 = vector.broadcast %682 : vector<8x1xf32> to vector<8x8xf32>
    %684 = arith.subf %680, %683 : vector<8x8xf32>
    %685 = math.exp %684 : vector<8x8xf32>
    %cst_240 = arith.constant dense<0.000000e+00> : vector<8xf32>
    %686 = vector.multi_reduction <add>, %685, %cst_240 [1] : vector<8x8xf32> to vector<8xf32>
    %687 = vector.shape_cast %686 : vector<8xf32> to vector<8x1xf32>
    %688 = vector.broadcast %687 : vector<8x1xf32> to vector<8x8xf32>
    %689 = arith.divf %685, %688 : vector<8x8xf32>
    %cst_241 = arith.constant dense<0.000000e+00> : vector<8x8xf32>
    %690 = tpu.matmul %689, %679, %cst_241 {dimension_numbers = #tpu.dot_dimension_numbers<[1], [0], [0], [1], [0, 0, 1, 1], [], []>} : vector<8x8xf32>, vector<8x8xf32>, vector<8x8xf32> -> vector<8x8xf32>
    %691 = vector.extract_strided_slice %616 {offsets = [16, 0], sizes = [8, 32], strides = [1, 1]} : vector<32x32xf32> to vector<8x32xf32>
    %cst_242 = arith.constant dense<0.000000e+00> : vector<8x32xf32>
    %692 = tpu.matmul %690, %691, %cst_242 {dimension_numbers = #tpu.dot_dimension_numbers<[1], [0], [0], [1], [0, 0, 1, 1], [], []>} : vector<8x8xf32>, vector<8x32xf32>, vector<8x32xf32> -> vector<8x32xf32>
    %693 = arith.addf %676, %692 : vector<8x32xf32>
    %694 = vector.extract_strided_slice %641 {offsets = [0, 24], sizes = [8, 8], strides = [1, 1]} : vector<16x96xf32> to vector<8x8xf32>
    %695 = vector.extract_strided_slice %641 {offsets = [0, 56], sizes = [8, 8], strides = [1, 1]} : vector<16x96xf32> to vector<8x8xf32>
    %696 = vector.extract_strided_slice %641 {offsets = [0, 88], sizes = [8, 8], strides = [1, 1]} : vector<16x96xf32> to vector<8x8xf32>
    %cst_243 = arith.constant dense<0.000000e+00> : vector<8x8xf32>
    %697 = tpu.matmul %694, %695, %cst_243 {dimension_numbers = #tpu.dot_dimension_numbers<[1], [1], [0], [0], [0, 0, 1, 0], [], []>} : vector<8x8xf32>, vector<8x8xf32>, vector<8x8xf32> -> vector<8x8xf32>
    %cst_244 = arith.constant dense<0xFF800000> : vector<8xf32>
    %698 = vector.multi_reduction <maximumf>, %697, %cst_244 [1] : vector<8x8xf32> to vector<8xf32>
    %699 = vector.shape_cast %698 : vector<8xf32> to vector<8x1xf32>
    %700 = vector.broadcast %699 : vector<8x1xf32> to vector<8x8xf32>
    %701 = arith.subf %697, %700 : vector<8x8xf32>
    %702 = math.exp %701 : vector<8x8xf32>
    %cst_245 = arith.constant dense<0.000000e+00> : vector<8xf32>
    %703 = vector.multi_reduction <add>, %702, %cst_245 [1] : vector<8x8xf32> to vector<8xf32>
    %704 = vector.shape_cast %703 : vector<8xf32> to vector<8x1xf32>
    %705 = vector.broadcast %704 : vector<8x1xf32> to vector<8x8xf32>
    %706 = arith.divf %702, %705 : vector<8x8xf32>
    %cst_246 = arith.constant dense<0.000000e+00> : vector<8x8xf32>
    %707 = tpu.matmul %706, %696, %cst_246 {dimension_numbers = #tpu.dot_dimension_numbers<[1], [0], [0], [1], [0, 0, 1, 1], [], []>} : vector<8x8xf32>, vector<8x8xf32>, vector<8x8xf32> -> vector<8x8xf32>
    %708 = vector.extract_strided_slice %616 {offsets = [24, 0], sizes = [8, 32], strides = [1, 1]} : vector<32x32xf32> to vector<8x32xf32>
    %cst_247 = arith.constant dense<0.000000e+00> : vector<8x32xf32>
    %709 = tpu.matmul %707, %708, %cst_247 {dimension_numbers = #tpu.dot_dimension_numbers<[1], [0], [0], [1], [0, 0, 1, 1], [], []>} : vector<8x8xf32>, vector<8x32xf32>, vector<8x32xf32> -> vector<8x32xf32>
    %710 = arith.addf %693, %709 : vector<8x32xf32>
    %cst_248 = arith.constant 0.000000e+00 : f32
    %711 = vector.broadcast %cst_248 : f32 to vector<8x32xf32>
    %712 = vector.extract_strided_slice %641 {offsets = [8, 0], sizes = [8, 8], strides = [1, 1]} : vector<16x96xf32> to vector<8x8xf32>
    %713 = vector.extract_strided_slice %641 {offsets = [8, 32], sizes = [8, 8], strides = [1, 1]} : vector<16x96xf32> to vector<8x8xf32>
    %714 = vector.extract_strided_slice %641 {offsets = [8, 64], sizes = [8, 8], strides = [1, 1]} : vector<16x96xf32> to vector<8x8xf32>
    %cst_249 = arith.constant dense<0.000000e+00> : vector<8x8xf32>
    %715 = tpu.matmul %712, %713, %cst_249 {dimension_numbers = #tpu.dot_dimension_numbers<[1], [1], [0], [0], [0, 0, 1, 0], [], []>} : vector<8x8xf32>, vector<8x8xf32>, vector<8x8xf32> -> vector<8x8xf32>
    %cst_250 = arith.constant dense<0xFF800000> : vector<8xf32>
    %716 = vector.multi_reduction <maximumf>, %715, %cst_250 [1] : vector<8x8xf32> to vector<8xf32>
    %717 = vector.shape_cast %716 : vector<8xf32> to vector<8x1xf32>
    %718 = vector.broadcast %717 : vector<8x1xf32> to vector<8x8xf32>
    %719 = arith.subf %715, %718 : vector<8x8xf32>
    %720 = math.exp %719 : vector<8x8xf32>
    %cst_251 = arith.constant dense<0.000000e+00> : vector<8xf32>
    %721 = vector.multi_reduction <add>, %720, %cst_251 [1] : vector<8x8xf32> to vector<8xf32>
    %722 = vector.shape_cast %721 : vector<8xf32> to vector<8x1xf32>
    %723 = vector.broadcast %722 : vector<8x1xf32> to vector<8x8xf32>
    %724 = arith.divf %720, %723 : vector<8x8xf32>
    %cst_252 = arith.constant dense<0.000000e+00> : vector<8x8xf32>
    %725 = tpu.matmul %724, %714, %cst_252 {dimension_numbers = #tpu.dot_dimension_numbers<[1], [0], [0], [1], [0, 0, 1, 1], [], []>} : vector<8x8xf32>, vector<8x8xf32>, vector<8x8xf32> -> vector<8x8xf32>
    %726 = vector.extract_strided_slice %616 {offsets = [0, 0], sizes = [8, 32], strides = [1, 1]} : vector<32x32xf32> to vector<8x32xf32>
    %cst_253 = arith.constant dense<0.000000e+00> : vector<8x32xf32>
    %727 = tpu.matmul %725, %726, %cst_253 {dimension_numbers = #tpu.dot_dimension_numbers<[1], [0], [0], [1], [0, 0, 1, 1], [], []>} : vector<8x8xf32>, vector<8x32xf32>, vector<8x32xf32> -> vector<8x32xf32>
    %728 = arith.addf %711, %727 : vector<8x32xf32>
    %729 = vector.extract_strided_slice %641 {offsets = [8, 8], sizes = [8, 8], strides = [1, 1]} : vector<16x96xf32> to vector<8x8xf32>
    %730 = vector.extract_strided_slice %641 {offsets = [8, 40], sizes = [8, 8], strides = [1, 1]} : vector<16x96xf32> to vector<8x8xf32>
    %731 = vector.extract_strided_slice %641 {offsets = [8, 72], sizes = [8, 8], strides = [1, 1]} : vector<16x96xf32> to vector<8x8xf32>
    %cst_254 = arith.constant dense<0.000000e+00> : vector<8x8xf32>
    %732 = tpu.matmul %729, %730, %cst_254 {dimension_numbers = #tpu.dot_dimension_numbers<[1], [1], [0], [0], [0, 0, 1, 0], [], []>} : vector<8x8xf32>, vector<8x8xf32>, vector<8x8xf32> -> vector<8x8xf32>
    %cst_255 = arith.constant dense<0xFF800000> : vector<8xf32>
    %733 = vector.multi_reduction <maximumf>, %732, %cst_255 [1] : vector<8x8xf32> to vector<8xf32>
    %734 = vector.shape_cast %733 : vector<8xf32> to vector<8x1xf32>
    %735 = vector.broadcast %734 : vector<8x1xf32> to vector<8x8xf32>
    %736 = arith.subf %732, %735 : vector<8x8xf32>
    %737 = math.exp %736 : vector<8x8xf32>
    %cst_256 = arith.constant dense<0.000000e+00> : vector<8xf32>
    %738 = vector.multi_reduction <add>, %737, %cst_256 [1] : vector<8x8xf32> to vector<8xf32>
    %739 = vector.shape_cast %738 : vector<8xf32> to vector<8x1xf32>
    %740 = vector.broadcast %739 : vector<8x1xf32> to vector<8x8xf32>
    %741 = arith.divf %737, %740 : vector<8x8xf32>
    %cst_257 = arith.constant dense<0.000000e+00> : vector<8x8xf32>
    %742 = tpu.matmul %741, %731, %cst_257 {dimension_numbers = #tpu.dot_dimension_numbers<[1], [0], [0], [1], [0, 0, 1, 1], [], []>} : vector<8x8xf32>, vector<8x8xf32>, vector<8x8xf32> -> vector<8x8xf32>
    %743 = vector.extract_strided_slice %616 {offsets = [8, 0], sizes = [8, 32], strides = [1, 1]} : vector<32x32xf32> to vector<8x32xf32>
    %cst_258 = arith.constant dense<0.000000e+00> : vector<8x32xf32>
    %744 = tpu.matmul %742, %743, %cst_258 {dimension_numbers = #tpu.dot_dimension_numbers<[1], [0], [0], [1], [0, 0, 1, 1], [], []>} : vector<8x8xf32>, vector<8x32xf32>, vector<8x32xf32> -> vector<8x32xf32>
    %745 = arith.addf %728, %744 : vector<8x32xf32>
    %746 = vector.extract_strided_slice %641 {offsets = [8, 16], sizes = [8, 8], strides = [1, 1]} : vector<16x96xf32> to vector<8x8xf32>
    %747 = vector.extract_strided_slice %641 {offsets = [8, 48], sizes = [8, 8], strides = [1, 1]} : vector<16x96xf32> to vector<8x8xf32>
    %748 = vector.extract_strided_slice %641 {offsets = [8, 80], sizes = [8, 8], strides = [1, 1]} : vector<16x96xf32> to vector<8x8xf32>
    %cst_259 = arith.constant dense<0.000000e+00> : vector<8x8xf32>
    %749 = tpu.matmul %746, %747, %cst_259 {dimension_numbers = #tpu.dot_dimension_numbers<[1], [1], [0], [0], [0, 0, 1, 0], [], []>} : vector<8x8xf32>, vector<8x8xf32>, vector<8x8xf32> -> vector<8x8xf32>
    %cst_260 = arith.constant dense<0xFF800000> : vector<8xf32>
    %750 = vector.multi_reduction <maximumf>, %749, %cst_260 [1] : vector<8x8xf32> to vector<8xf32>
    %751 = vector.shape_cast %750 : vector<8xf32> to vector<8x1xf32>
    %752 = vector.broadcast %751 : vector<8x1xf32> to vector<8x8xf32>
    %753 = arith.subf %749, %752 : vector<8x8xf32>
    %754 = math.exp %753 : vector<8x8xf32>
    %cst_261 = arith.constant dense<0.000000e+00> : vector<8xf32>
    %755 = vector.multi_reduction <add>, %754, %cst_261 [1] : vector<8x8xf32> to vector<8xf32>
    %756 = vector.shape_cast %755 : vector<8xf32> to vector<8x1xf32>
    %757 = vector.broadcast %756 : vector<8x1xf32> to vector<8x8xf32>
    %758 = arith.divf %754, %757 : vector<8x8xf32>
    %cst_262 = arith.constant dense<0.000000e+00> : vector<8x8xf32>
    %759 = tpu.matmul %758, %748, %cst_262 {dimension_numbers = #tpu.dot_dimension_numbers<[1], [0], [0], [1], [0, 0, 1, 1], [], []>} : vector<8x8xf32>, vector<8x8xf32>, vector<8x8xf32> -> vector<8x8xf32>
    %760 = vector.extract_strided_slice %616 {offsets = [16, 0], sizes = [8, 32], strides = [1, 1]} : vector<32x32xf32> to vector<8x32xf32>
    %cst_263 = arith.constant dense<0.000000e+00> : vector<8x32xf32>
    %761 = tpu.matmul %759, %760, %cst_263 {dimension_numbers = #tpu.dot_dimension_numbers<[1], [0], [0], [1], [0, 0, 1, 1], [], []>} : vector<8x8xf32>, vector<8x32xf32>, vector<8x32xf32> -> vector<8x32xf32>
    %762 = arith.addf %745, %761 : vector<8x32xf32>
    %763 = vector.extract_strided_slice %641 {offsets = [8, 24], sizes = [8, 8], strides = [1, 1]} : vector<16x96xf32> to vector<8x8xf32>
    %764 = vector.extract_strided_slice %641 {offsets = [8, 56], sizes = [8, 8], strides = [1, 1]} : vector<16x96xf32> to vector<8x8xf32>
    %765 = vector.extract_strided_slice %641 {offsets = [8, 88], sizes = [8, 8], strides = [1, 1]} : vector<16x96xf32> to vector<8x8xf32>
    %cst_264 = arith.constant dense<0.000000e+00> : vector<8x8xf32>
    %766 = tpu.matmul %763, %764, %cst_264 {dimension_numbers = #tpu.dot_dimension_numbers<[1], [1], [0], [0], [0, 0, 1, 0], [], []>} : vector<8x8xf32>, vector<8x8xf32>, vector<8x8xf32> -> vector<8x8xf32>
    %cst_265 = arith.constant dense<0xFF800000> : vector<8xf32>
    %767 = vector.multi_reduction <maximumf>, %766, %cst_265 [1] : vector<8x8xf32> to vector<8xf32>
    %768 = vector.shape_cast %767 : vector<8xf32> to vector<8x1xf32>
    %769 = vector.broadcast %768 : vector<8x1xf32> to vector<8x8xf32>
    %770 = arith.subf %766, %769 : vector<8x8xf32>
    %771 = math.exp %770 : vector<8x8xf32>
    %cst_266 = arith.constant dense<0.000000e+00> : vector<8xf32>
    %772 = vector.multi_reduction <add>, %771, %cst_266 [1] : vector<8x8xf32> to vector<8xf32>
    %773 = vector.shape_cast %772 : vector<8xf32> to vector<8x1xf32>
    %774 = vector.broadcast %773 : vector<8x1xf32> to vector<8x8xf32>
    %775 = arith.divf %771, %774 : vector<8x8xf32>
    %cst_267 = arith.constant dense<0.000000e+00> : vector<8x8xf32>
    %776 = tpu.matmul %775, %765, %cst_267 {dimension_numbers = #tpu.dot_dimension_numbers<[1], [0], [0], [1], [0, 0, 1, 1], [], []>} : vector<8x8xf32>, vector<8x8xf32>, vector<8x8xf32> -> vector<8x8xf32>
    %777 = vector.extract_strided_slice %616 {offsets = [24, 0], sizes = [8, 32], strides = [1, 1]} : vector<32x32xf32> to vector<8x32xf32>
    %cst_268 = arith.constant dense<0.000000e+00> : vector<8x32xf32>
    %778 = tpu.matmul %776, %777, %cst_268 {dimension_numbers = #tpu.dot_dimension_numbers<[1], [0], [0], [1], [0, 0, 1, 1], [], []>} : vector<8x8xf32>, vector<8x32xf32>, vector<8x32xf32> -> vector<8x32xf32>
    %779 = arith.addf %762, %778 : vector<8x32xf32>
    %780 = tpu.concatenate %710, %779 in 0 : vector<8x32xf32>, vector<8x32xf32> -> vector<16x32xf32>
    %781 = vector.broadcast %618 : vector<1x32xf32> to vector<16x32xf32>
    %782 = arith.addf %780, %781 : vector<16x32xf32>
    %783 = arith.addf %782, %608 : vector<16x32xf32>
    %c0_269 = arith.constant 0 : index
    %c470 = arith.constant 470 : index
    %c0_270 = arith.constant 0 : index
    %784 = vector.load %arg2[%c0_269, %c470, %c0_270] : memref<1x480x128xf32, #tpu.memory_space<vmem>>, vector<1x1x32xf32>
    %785 = vector.shape_cast %784 : vector<1x1x32xf32> to vector<1x32xf32>
    %c0_271 = arith.constant 0 : index
    %c471 = arith.constant 471 : index
    %c0_272 = arith.constant 0 : index
    %786 = vector.load %arg2[%c0_271, %c471, %c0_272] : memref<1x480x128xf32, #tpu.memory_space<vmem>>, vector<1x1x32xf32>
    %787 = vector.shape_cast %786 : vector<1x1x32xf32> to vector<1x32xf32>
    %c0_273 = arith.constant 0 : index
    %c368 = arith.constant 368 : index
    %c0_274 = arith.constant 0 : index
    %788 = vector.load %arg2[%c0_273, %c368, %c0_274] : memref<1x480x128xf32, #tpu.memory_space<vmem>>, vector<1x32x64xf32>
    %789 = vector.shape_cast %788 : vector<1x32x64xf32> to vector<32x64xf32>
    %c0_275 = arith.constant 0 : index
    %c472 = arith.constant 472 : index
    %c0_276 = arith.constant 0 : index
    %790 = vector.load %arg2[%c0_275, %c472, %c0_276] : memref<1x480x128xf32, #tpu.memory_space<vmem>>, vector<1x1x64xf32>
    %791 = vector.shape_cast %790 : vector<1x1x64xf32> to vector<1x64xf32>
    %c0_277 = arith.constant 0 : index
    %c400 = arith.constant 400 : index
    %c0_278 = arith.constant 0 : index
    %792 = vector.load %arg2[%c0_277, %c400, %c0_278] : memref<1x480x128xf32, #tpu.memory_space<vmem>>, vector<1x64x32xf32>
    %793 = vector.shape_cast %792 : vector<1x64x32xf32> to vector<64x32xf32>
    %c0_279 = arith.constant 0 : index
    %c473 = arith.constant 473 : index
    %c0_280 = arith.constant 0 : index
    %794 = vector.load %arg2[%c0_279, %c473, %c0_280] : memref<1x480x128xf32, #tpu.memory_space<vmem>>, vector<1x1x32xf32>
    %795 = vector.shape_cast %794 : vector<1x1x32xf32> to vector<1x32xf32>
    %cst_281 = arith.constant dense<0.000000e+00> : vector<16xf32>
    %796 = vector.multi_reduction <add>, %783, %cst_281 [1] : vector<16x32xf32> to vector<16xf32>
    %797 = vector.shape_cast %796 : vector<16xf32> to vector<16x1xf32>
    %cst_282 = arith.constant 3.200000e+01 : f32
    %798 = vector.broadcast %cst_282 : f32 to vector<16x1xf32>
    %799 = arith.divf %797, %798 : vector<16x1xf32>
    %800 = vector.broadcast %799 : vector<16x1xf32> to vector<16x32xf32>
    %801 = arith.subf %783, %800 : vector<16x32xf32>
    %802 = arith.mulf %801, %801 : vector<16x32xf32>
    %cst_283 = arith.constant dense<0.000000e+00> : vector<16xf32>
    %803 = vector.multi_reduction <add>, %802, %cst_283 [1] : vector<16x32xf32> to vector<16xf32>
    %804 = vector.shape_cast %803 : vector<16xf32> to vector<16x1xf32>
    %cst_284 = arith.constant 3.200000e+01 : f32
    %805 = vector.broadcast %cst_284 : f32 to vector<16x1xf32>
    %806 = arith.divf %804, %805 : vector<16x1xf32>
    %807 = vector.broadcast %799 : vector<16x1xf32> to vector<16x32xf32>
    %808 = arith.subf %783, %807 : vector<16x32xf32>
    %cst_285 = arith.constant 9.99999974E-6 : f32
    %809 = vector.broadcast %cst_285 : f32 to vector<16x1xf32>
    %810 = arith.addf %806, %809 : vector<16x1xf32>
    %811 = math.rsqrt %810 : vector<16x1xf32>
    %812 = vector.broadcast %811 : vector<16x1xf32> to vector<16x32xf32>
    %813 = arith.mulf %808, %812 : vector<16x32xf32>
    %814 = vector.broadcast %785 : vector<1x32xf32> to vector<16x32xf32>
    %815 = arith.mulf %813, %814 : vector<16x32xf32>
    %816 = vector.broadcast %787 : vector<1x32xf32> to vector<16x32xf32>
    %817 = arith.addf %815, %816 : vector<16x32xf32>
    %cst_286 = arith.constant dense<0.000000e+00> : vector<16x64xf32>
    %818 = tpu.matmul %817, %789, %cst_286 {dimension_numbers = #tpu.dot_dimension_numbers<[1], [0], [0], [1], [0, 0, 1, 1], [], []>} : vector<16x32xf32>, vector<32x64xf32>, vector<16x64xf32> -> vector<16x64xf32>
    %819 = vector.broadcast %791 : vector<1x64xf32> to vector<16x64xf32>
    %820 = arith.addf %818, %819 : vector<16x64xf32>
    %cst_287 = arith.constant 5.000000e-01 : f32
    %821 = vector.broadcast %cst_287 : f32 to vector<16x64xf32>
    %822 = arith.mulf %821, %820 : vector<16x64xf32>
    %cst_288 = arith.constant 0.707106769 : f32
    %823 = vector.broadcast %cst_288 : f32 to vector<16x64xf32>
    %824 = arith.mulf %820, %823 : vector<16x64xf32>
    %cst_289 = arith.constant 0.000000e+00 : f32
    %825 = vector.broadcast %cst_289 : f32 to vector<16x64xf32>
    %826 = arith.cmpf oge, %824, %825 : vector<16x64xf32>
    %cst_290 = arith.constant 1.000000e+00 : f32
    %cst_291 = arith.constant -1.000000e+00 : f32
    %827 = vector.broadcast %cst_290 : f32 to vector<16x64xf32>
    %828 = vector.broadcast %cst_291 : f32 to vector<16x64xf32>
    %829 = arith.select %826, %827, %828 : vector<16x64xi1>, vector<16x64xf32>
    %830 = math.absf %824 : vector<16x64xf32>
    %cst_292 = arith.constant 0.327591091 : f32
    %831 = vector.broadcast %cst_292 : f32 to vector<16x64xf32>
    %832 = arith.mulf %831, %830 : vector<16x64xf32>
    %cst_293 = arith.constant 1.000000e+00 : f32
    %833 = vector.broadcast %cst_293 : f32 to vector<16x64xf32>
    %834 = arith.addf %833, %832 : vector<16x64xf32>
    %cst_294 = arith.constant 1.000000e+00 : f32
    %835 = vector.broadcast %cst_294 : f32 to vector<16x64xf32>
    %836 = arith.divf %835, %834 : vector<16x64xf32>
    %cst_295 = arith.constant 1.06140542 : f32
    %837 = vector.broadcast %cst_295 : f32 to vector<16x64xf32>
    %838 = arith.mulf %837, %836 : vector<16x64xf32>
    %cst_296 = arith.constant -1.45315206 : f32
    %839 = vector.broadcast %cst_296 : f32 to vector<16x64xf32>
    %840 = arith.addf %838, %839 : vector<16x64xf32>
    %841 = arith.mulf %840, %836 : vector<16x64xf32>
    %cst_297 = arith.constant 1.42141378 : f32
    %842 = vector.broadcast %cst_297 : f32 to vector<16x64xf32>
    %843 = arith.addf %841, %842 : vector<16x64xf32>
    %844 = arith.mulf %843, %836 : vector<16x64xf32>
    %cst_298 = arith.constant -0.284496725 : f32
    %845 = vector.broadcast %cst_298 : f32 to vector<16x64xf32>
    %846 = arith.addf %844, %845 : vector<16x64xf32>
    %847 = arith.mulf %846, %836 : vector<16x64xf32>
    %cst_299 = arith.constant 0.254829586 : f32
    %848 = vector.broadcast %cst_299 : f32 to vector<16x64xf32>
    %849 = arith.addf %847, %848 : vector<16x64xf32>
    %850 = arith.mulf %849, %836 : vector<16x64xf32>
    %cst_300 = arith.constant 0.000000e+00 : f32
    %851 = vector.broadcast %cst_300 : f32 to vector<16x64xf32>
    %852 = arith.subf %851, %830 : vector<16x64xf32>
    %853 = arith.mulf %852, %830 : vector<16x64xf32>
    %854 = math.exp %853 : vector<16x64xf32>
    %855 = arith.mulf %850, %854 : vector<16x64xf32>
    %cst_301 = arith.constant 1.000000e+00 : f32
    %856 = vector.broadcast %cst_301 : f32 to vector<16x64xf32>
    %857 = arith.subf %856, %855 : vector<16x64xf32>
    %858 = arith.mulf %829, %857 : vector<16x64xf32>
    %cst_302 = arith.constant 1.000000e+00 : f32
    %859 = vector.broadcast %cst_302 : f32 to vector<16x64xf32>
    %860 = arith.addf %859, %858 : vector<16x64xf32>
    %861 = arith.mulf %822, %860 : vector<16x64xf32>
    %cst_303 = arith.constant dense<0.000000e+00> : vector<16x32xf32>
    %862 = tpu.matmul %861, %793, %cst_303 {dimension_numbers = #tpu.dot_dimension_numbers<[1], [0], [0], [1], [0, 0, 1, 1], [], []>} : vector<16x64xf32>, vector<64x32xf32>, vector<16x32xf32> -> vector<16x32xf32>
    %863 = vector.broadcast %795 : vector<1x32xf32> to vector<16x32xf32>
    %864 = arith.addf %862, %863 : vector<16x32xf32>
    %865 = arith.addf %864, %783 : vector<16x32xf32>
    %c0_304 = arith.constant 0 : index
    %c0_305 = arith.constant 0 : index
    %c0_306 = arith.constant 0 : index
    %866 = vector.load %arg3[%c0_304, %c0_305, %c0_306] : memref<1x16x32xf32, #tpu.memory_space<vmem>>, vector<1x16x32xf32>
    %867 = vector.shape_cast %866 : vector<1x16x32xf32> to vector<16x32xf32>
    %868 = vector.shape_cast %865 : vector<16x32xf32> to vector<1x16x32xf32>
    tpu.vector_store %arg3[%c0_304, %c0_305, %c0_306], %868 {strides = array<i32>} : memref<1x16x32xf32, #tpu.memory_space<vmem>>, vector<1x16x32xf32>,
    return
  }
  func.func @transform_0(%arg0: i32) -> (i32, i32, i32) {
    %c0_i32 = arith.constant 0 : i32
    %c0_i32_0 = arith.constant 0 : i32
    %c0_i32_1 = arith.constant 0 : i32
    return %arg0, %c0_i32, %c0_i32_0 : i32, i32, i32
  }
  func.func @transform_1(%arg0: i32) -> (i32, i32, i32) {
    %c0_i32 = arith.constant 0 : i32
    %c0_i32_0 = arith.constant 0 : i32
    %c0_i32_1 = arith.constant 0 : i32
    return %arg0, %c0_i32, %c0_i32_0 : i32, i32, i32
  }
  func.func @transform_2(%arg0: i32) -> (i32, i32, i32) {
    %c0_i32 = arith.constant 0 : i32
    %c0_i32_0 = arith.constant 0 : i32
    %c0_i32_1 = arith.constant 0 : i32
    return %arg0, %c0_i32, %c0_i32_0 : i32, i32, i32
  }
}

</mosaic_0001>

<bundles_post_ra>
// kernel: dual_encoder_forward.1
= control target key start
LH: loop header
LB: loop body
LE: loop exit
PB: predicated region body
PF: predicated region fallthrough
CT: control target
= control target key end

     0   :  { %7 = vsyncpa [#allocation3], 0  ;;  %s11478_s0 = inlined_call_operand.vmem [shape: f32[2,16,32], index: 0, kind: input, shape index: {}]   ;;  %s11479_s1 = inlined_call_operand.hbm [shape: f32[2,480,128], index: 1, kind: input, shape index: {}]   ;;  %s11480_s2 = inlined_call_operand.vmem [shape: f32[2,16,32], index: 2, kind: output, shape index: {}]  }
   0x1   :  { %9 = vsyncpa [#allocation3 + $0x1], 0  ;;  %s10420_s9 = smov 0   ;;  %s10422_s10 = smov 0  }
   0x2   :  { %s10424_s11 = smov 0   ;;  %s10426_s12 = smov 0  }
   0x3 LB: > { %s10439_s13 = sadd.s32 4294967295, %s10386_s12   ;;  %s10442_s14 = sadd.s32 1, %s10386_s12   ;;  %s10386_s12 = sphi %s10426_s12, %s11487_s12   ;;  %s10382_s11 = sphi %s10424_s11, %s11486_s11   ;;  %s10378_s10 = sphi %s10422_s10, %s11485_s10   ;;  %s10374_s9 = sphi %s10420_s9, %s11484_s9  }
   0x4   : > { %s45_s15 = ssub.s32 %s10386_s12, %s10442_s14  ;;  %s48_s16 = sadd.s32 1, %s10382_s11 }
   0x5   : > { %p46_p0 = scmp.eq.s32.totalorder %s45_s15, 0  ;;  %p55_p1 = scmp.ne.s32.totalorder %s10382_s11, %s10378_s10 }
   0x6   : > { %p56_p2 = scmp.eq.s32.totalorder %s10386_s12, 0  ;;  %p61_p3 = scmp.ne.s32.totalorder %s10378_s10, %s10374_s9 }
   0x7   : > { %s10452_s17 = scalar_select %p46_p0, %s10382_s11, %s48_s16  }
   0x8   : > { %p57_p4 = por %p56_p2, %p55_p1  ;;  %p62_p5 = scmp.eq.s32.totalorder %s10439_s13, 0 }
   0x9   : > { %p10105_p6 = scmp.lt.s32.totalorder %s10386_s12, 2  ;;  %s119_s19 = sand.u32 1, %s10382_s11  }
   0xa   : > { %p10456_p7 = por %p62_p5, %p61_p3  ;;  %s10096_s20 = smul.u32 480, %s119_s19 }
   0xb   : > { %s10097_s21 = smul.u32 7680, %s10386_s12  ;;  %p10462_p8 = pnand %p10105_p6, %p57_p4 }
   0xc   : > { %s123_s26 = scalar_lea.vmem [#allocation2], %s10096_s20  ;;  %s10474_s28 = scalar_lea.sflag [#allocation3], %s119_s19 }
   0xd   : > { %s10469_s25 = scalar_lea.hbm %s11479_s1, %s10097_s21  ;;  %s130_s27 = sshll.u32 %s123_s26, 4  ;;  %s10471_s27 = int_to_ptr.vmem [resolvable:$true] %s130_s27 }
   0xe   : > { %s10322_s29 = scalar_lea.hbm %s10469_s25, 7680  ;;  %p10324_p11 = pneg %p10462_p8 }
   0xf   : > { %p10323_p10 = scmp.ne.s32.totalorder %s10469_s25, %s10322_s29  ;;  %s10327_s4 = scalar_lea.hbm %s11479_s1, 15360 }
  0x10   : > { %p10328_p0 = scmp.lt.u32.totalorder %s10469_s25, %s11479_s1  ;;  %p10329_p1 = scmp.lt.u32.totalorder %s10327_s4, %s10322_s29 }
  0x11   : > { %p10325_p12 = pnand %p10324_p11, %p10323_p10  ;;  %p10331_p3 = scmp.lt.u32.totalorder %s10322_s29, %s10469_s25 }
  0x12   : > { %p10330_p2 = por %p10329_p1, %p10328_p0 }
  0x13   : > { %p10326_p13 = pneg %p10325_p12 }
  0x14   : > { %p10332_p4 = por %p10331_p3, %p10330_p2 }
  0x16   : > { %p10333_p5 = pnand %p10332_p4, %p10326_p13 }
  0x18   : > { %10336 = shalt.err (!%p10333_p5)
}
  0x19   : > { %s10337_s7 = scalar_lea.vmem %s10471_s27, 7680  ;;  %s10388_s8 = smov [#allocation2]  }
  0x1a   : > { %p10338_p6 = scmp.ne.s32.totalorder %s10471_s27, %s10337_s7  ;;  %s10342_s9 = sshll.u32 %s10388_s8, 4  ;;  %s10343_s9 = int_to_ptr.vmem [resolvable:$false] %s10342_s9 }
  0x1b   : > { %s10344_s15 = scalar_lea.vmem %s10343_s9, 15360  ;;  %p10345_p9 = scmp.lt.s32.totalorder %s10471_s27, %s10343_s9 }
  0x1c   : > { %p10340_p10 = pnand %p10338_p6, %p10324_p11  ;;  %p10346_p0 = scmp.lt.s32.totalorder %s10344_s15, %s10337_s7 }
  0x1e   : > { %p10341_p12 = pneg %p10340_p10  ;;  %p10347_p1 = por %p10346_p0, %p10345_p9 }
  0x20   : > { %p10348_p2 = pnand %p10347_p1, %p10341_p12 }
  0x22   : > { %10351 = shalt.err (!%p10348_p2)
}
  0x23   : > { %s10389_s16 = smov 128   ;;  %s10390_s19 = smov 8  }
  0x24   : > { %10104 = dma.hbm_to_vmem [thread:$0]  (!%p10462_p8), %s10469_s25, 7680, %s10471_s27, %s10474_s28, %s10389_s16, %s10389_s16, %s10390_s19  }
  0x25   : > { %p138_p11 = scmp.lt.s32.totalorder %s10386_s12, 3  ;;  %p11483_p13 = scmp.ge.s32.totalorder %s10386_s12, 1 }
  0x27   : > { %p139_p3 = pnand %p11483_p13, %p138_p11 }
  0x28   : > { %s144_s20 = sand.u32 (!%p139_p3), 1, %s10378_s10  }
  0x29   : > { %142 = sbr.rel (%p139_p3) target bundleno = 20378 (0x4f9a), region = 28  ;;  %s145_s23 = scalar_lea.sflag (!%p139_p3), [#allocation3], %s144_s20 }
  0x2a   : > { %s10098_s21 = smul.u32 (!%p139_p3), 480, %s144_s20 }
  0x2c   : > { %s10506_s24 = scalar_lea.vmem (!%p139_p3), [#allocation2], %s10098_s21 }
  0x30   : > { %10369 = dma.done.wait (%p10456_p7), %s145_s23, 7680  }
  0x31   : > { %10371 = vsyncadd (%p10456_p7), %s145_s23, 4294959616  ;;  %p174_p9 = scmp.lt.s32.totalorder %s10439_s13, 1  ;;  %vm197_vm0 = vcmask 261120   ;;  %v188_v14 = vld [vmem:[%s10506_s24] sm:$0xff]  ;;  %v189_v15 = vld [vmem:[%s10506_s24 + $0x8] sm:$0xff]  ;;  %v10391_v36 = vmov 0.0  }
  0x32   : > { %v190_v16 = vld [vmem:[%s10506_s24 + $0x10] sm:$0xff]  ;;  %v10016_v17 = vpack.c.bf16 %v189_v15, %v188_v14  ;;  %v191_v18 = vld [vmem:[%s10506_s24 + $0x18] sm:$0xff]  ;;  %v9016_v27 = vld [vmem:[%s10506_s24 + $0xe0] ss:$0 sm:$0xff]  ;;  %9448 = vmatprep.subr.mxu1 %v10391_v36  ;;  %vm10392_vm1 = vmmov 0   ;;  %s10393_s18 = smov 88  }
  0x33   : > { %s11489_s13 = smov (!%p174_p9, %s10439_s13), 1  ;;  %v10020_v19 = vpack.c.bf16 %v191_v18, %v190_v16  ;;  %v9017_v29 = vld [vmem:[%s10506_s24 + $0xe1] ss:$0 sm:$0xff]  ;;  %9450 = vmatprep.mubr.msk.f32.mxu1 %vm10392_vm1, %v10391_v36  ;;  %s10394_s27 = smov 96   ;;  %vm321_vm2 = vcmask 64512   ;;  %v10583_v59 = vld [vmem:[%s10506_s24 + $0x48] sm:$0xff] }
  0x34   : > { %s9182_s12 = sshll.u32 %s11489_s13, 4  ;;  %10017 = vmatprep.subr.bf16.mxu0 %v10016_v17  ;;  %s10395_s28 = smov 120   ;;  %vm4474_vm5 = vcmask 523264  }
  0x35   : > { %s178_s26 = scalar_lea.vmem %s11478_s0, %s9182_s12  ;;  %10019 = vmatpush3.bf16.msra.mxu0 %v10016_v17  ;;  %s10396_s29 = smov 64  }
  0x36   : > { %v10522_v0 = vld [vmem:[%s178_s26] sm:$0xff]  ;;  %v10524_v1 = vld [vmem:[%s178_s26 + $0x8] sm:$0xff]  ;;  %10021 = vmatprep.subr.bf16.mxu0 %v10020_v19  ;;  %s10397_s30 = smov 80   ;;  %s10398_s3 = smov 112  }
  0x37   : > { %v198_v2 = vsel %vm197_vm0, %v10522_v0, 0.0  ;;  %v201_v3 = vsel %vm197_vm0, %v10524_v1, 0.0  ;;  %s10399_s4 = smov 56   ;;  %s10400_s5 = smov 72  }
  0x38   : > { %199 = vadd.xlane.f32.xlu0 %v198_v2  ;;  %s10401_s6 = smov 104   ;;  %s10402_s7 = smov 48  }
  0x39   : > { %10023 = vmatpush3.bf16.msra.mxu0 %v10020_v19  ;;  %s10403_s8 = smov 40   ;;  %s183_s16 = scalar_lea.vmem %s11480_s2, %s9182_s12 }
  0x3a   : > { %9443 = vmatprep.subr.mxu0 %v10391_v36 }
  0x3c   : > { %202 = vadd.xlane.f32.xlu0 %v201_v3 }
  0xc5   : > { %v200_v4 = vpop.xlane.xlu0 %199 }
  0xc6   : > { %v205_v5 = vmul.f32 0.03125, %v200_v4 }
  0xc8   : > { %v207_v6 = vsub.f32 %v10522_v0, %v205_v5  ;;  %v10595_v5 = vld [vmem:[%s10506_s24 + $0x40] sm:$0xff] }
  0xc9   : > { %v203_v7 = vpop.xlane.xlu0 %202 }
  0xca   : > { %v206_v8 = vmul.f32 0.03125, %v203_v7  ;;  %v209_v9 = vmul.f32 %v207_v6, %v207_v6 }
  0xcc   : > { %v208_v10 = vsub.f32 %v10524_v1, %v206_v8  ;;  %v211_v11 = vsel %vm197_vm0, %v209_v9, 0.0 }
  0xcd   : > { %212 = vadd.xlane.f32.xlu1 %v211_v11 }
  0xce   : > { %v210_v12 = vmul.f32 %v208_v10, %v208_v10 }
  0xd0   : > { %v214_v13 = vsel %vm197_vm0, %v210_v12, 0.0 }
  0xd1   : > { %215 = vadd.xlane.f32.xlu1 %v214_v13 }
 0x15a   : > { %v213_v20 = vpop.xlane.xlu1 %212 }
 0x15b   : > { %v217_v21 = vmul.f32 0.03125, %v213_v20 }
 0x15d   : > { %v219_v22 = vadd.f32 1e-05, %v217_v21 }
 0x15e   : > { %v216_v23 = vpop.xlane.xlu1 %215 }
 0x15f   : > { %10154 = vrsqrt.f32 %v219_v22  ;;  %v218_v24 = vmul.f32 0.03125, %v216_v23 }
 0x161   : > { %v220_v25 = vadd.f32 1e-05, %v218_v24 }
 0x163   : > { %10156 = vrsqrt.f32 %v220_v25 }
 0x169   : > { %v10155_v26 = vpop.eup %10154 }
 0x16a   : > { %v223_v28 = vmul.f32 %v10155_v26, %v207_v6 }
 0x16c   : > { %v229_v30 = vmul.f32 %v9016_v27, %v223_v28 }
 0x16d   : > { %v10157_v31 = vpop.eup %10156 }
 0x16e   : > { %v224_v32 = vmul.f32 %v10157_v31, %v208_v10  ;;  %v235_v33 = vadd.f32 %v9017_v29, %v229_v30  ;;  %v10630_v31 = vld [vmem:[%s10506_s24 + $0x50] sm:$0xff] }
 0x170   : > { %v230_v34 = vmul.f32 %v9016_v27, %v224_v32  ;;  %9440 = vmatprep.mubr.msk.f32.mxu0 %vm197_vm0, %v235_v33 }
 0x172   : > { %v236_v35 = vadd.f32 %v9017_v29, %v230_v34 }
 0x174   : > { %9441 = vmatmul.mubr.msk.f32.vlgmr.msra.gmra.mrb[0].mxu0 %vm197_vm0, %v236_v35 }
 0x175   : > { %9445 = vmatprep.mubr.msk.f32.mxu0 %vm10392_vm1, %v10391_v36 }
 0x247   : > { %v10548_v37 = vpop.f32.mrb[0].mxu0 }
 0x248   : > { %v10550_v38 = vpop.f32.mrb[1].mxu0 }
 0x249   : > { %485 = vrot.lane.b32.xlu1 %v10550_v38, %s10393_s18  ;;  %319 = vrot.lane.b32.xlu0 %v10550_v38, %s10394_s27 }
 0x24d   : > { %483 = vrot.lane.b32.xlu1 %v10550_v38, %s10395_s28 }
 0x2bb   : > { %v320_v39 = vpop.permute.xlu0 %319  ;;  %v486_v40 = vpop.permute.xlu1 %485 }
 0x2bc   : > { %9444 = vmatpush3.xpose.msk.msra.mxu0 %vm321_vm2, %v320_v39 }
 0x2bd   : > { %9453 = vmatprep.subr.mxu0 %v10391_v36 }
 0x2bf   : > { %9446 = vmatmul.mubr.msk.f32.vlgmr.msra.gmra.mrb[2].mxu0 %vm321_vm2, %v10550_v38  ;;  %v484_v41 = vpop.permute.xlu1 %483 }
 0x2c0   : > { %9454 = vmatpush3.xpose.msk.msra.mxu0 %vm321_vm2, %v486_v40  ;;  %9455 = vmatprep.mubr.msk.f32.mxu0 %vm10392_vm1, %v10391_v36 }
 0x2c1   : > { %9463 = vmatprep.subr.mxu0 %v10391_v36 }
 0x2c3   : > { %9456 = vmatmul.mubr.msk.f32.vlgmr.msra.gmra.mrb[4].mxu0 %vm321_vm2, %v484_v41 }
 0x2c4   : > { %9465 = vmatprep.mubr.msk.f32.mxu0 %vm10392_vm1, %v10391_v36  ;;  %9464 = vmatpush3.msra.mxu0 %v10583_v59 }
 0x2c5   : > { %9473 = vmatprep.subr.mxu0 %v10391_v36 }
 0x392   : > { %v392_v42 = vpop.f32.mrb[2].mxu0 }
 0x393   : > { %v9447_v43 = vpop.f32.mrb[3].mxu0  ;;  %v396_v44 = vsel %vm321_vm2, %v392_v42, -inf }
 0x394   : > { %397 = vmax.xlane.f32.xlu1 %v396_v44 }
 0x396   : > { %v557_v45 = vpop.f32.mrb[4].mxu0 }
 0x397   : > { %v9457_v46 = vpop.f32.mrb[5].mxu0  ;;  %v561_v47 = vsel %vm321_vm2, %v557_v45, -inf }
 0x398   : > { %562 = vmax.xlane.f32.xlu0 %v561_v47 }
 0x3a5   : > { %407 = vrot.lane.b32.xlu1 %v10550_v38, %s10396_s29 }
 0x3a9   : > { %796 = vrot.lane.b32.xlu1 %v10550_v38, %s10397_s30 }
 0x3ad   : > { %794 = vrot.lane.b32.xlu1 %v10550_v38, %s10398_s3 }
 0x421   : > { %v398_v48 = vpop.xlane.xlu1 %397 }
 0x422   : > { %v399_v49 = vsub.f32 %v392_v42, %v398_v48 }
 0x424   : > { %v400_v50 = vmul.f32 1.442695, %v399_v49 }
 0x425   : > { %v408_v51 = vpop.permute.xlu1 %407  ;;  %v563_v52 = vpop.xlane.xlu0 %562 }
 0x426   : > { %10158 = vpow2.f32 %v400_v50  ;;  %v564_v53 = vsub.f32 %v557_v45, %v563_v52  ;;  %9449 = vmatpush3.msra.mxu1 %v408_v51 }
 0x427   : > { %9458 = vmatprep.subr.mxu1 %v10391_v36 }
 0x428   : > { %v565_v54 = vmul.f32 1.442695, %v564_v53 }
 0x429   : > { %v797_v8 = vpop.permute.xlu1 %796 }
 0x42a   : > { %10160 = vpow2.f32 %v565_v54  ;;  %v10663_v54 = vld [vmem:[%s10506_s24 + $0x58] sm:$0xff] }
 0x42d   : > { %v795_v11 = vpop.permute.xlu1 %794 }
 0x430   : > { %v10159_v55 = vpop.eup %10158 }
 0x431   : > { %v402_v56 = vsel %vm321_vm2, %v10159_v55, 0.0 }
 0x432   : > { %403 = vadd.xlane.f32.xlu0 %v402_v56 }
 0x434   : > { %v10161_v57 = vpop.eup %10160 }
 0x435   : > { %v567_v58 = vsel %vm321_vm2, %v10161_v57, 0.0 }
 0x436   : > { %568 = vadd.xlane.f32.xlu0 %v567_v58 }
 0x44c   : > { %572 = vrot.lane.b32.xlu0 %v10550_v38, %s10399_s4 }
 0x4bf   : > { %v404_v60 = vpop.xlane.xlu0 %403 }
 0x4c0   : > { %10162 = vrcp.f32 %v404_v60 }
 0x4c3   : > { %v569_v61 = vpop.xlane.xlu0 %568 }
 0x4c4   : > { %10164 = vrcp.f32 %v569_v61 }
 0x4c7   : > { %v573_v2 = vpop.permute.xlu0 %572 }
 0x4ca   : > { %v10163_v62 = vpop.eup %10162 }
 0x4cb   : > { %v406_v63 = vmul.f32 %v10163_v62, %v10159_v55 }
 0x4cd   : > { %9451 = vmatmul.mubr.msk.f32.vlgmr.msra.gmra.mrb[0].mxu1 %vm321_vm2, %v406_v63 }
 0x4ce   : > { %v10165_v3 = vpop.eup %10164  ;;  %9459 = vmatpush3.msra.mxu1 %v573_v2  ;;  %9460 = vmatprep.mubr.msk.f32.mxu1 %vm10392_vm1, %v10391_v36 }
 0x4cf   : > { %v571_v4 = vmul.f32 %v10165_v3, %v10161_v57  ;;  %9468 = vmatprep.subr.mxu1 %v10391_v36 }
 0x4d1   : > { %9461 = vmatmul.mubr.msk.f32.vlgmr.msra.gmra.mrb[2].mxu1 %vm321_vm2, %v571_v4 }
 0x4d2   : > { %9470 = vmatprep.mubr.msk.f32.mxu1 %vm10392_vm1, %v10391_v36  ;;  %9469 = vmatpush3.msra.mxu1 %v10595_v5 }
 0x4d3   : > { %9478 = vmatprep.subr.mxu1 %v10391_v36 }
 0x5a0   : > { %v479_v6 = vpop.f32.mrb[0].mxu1 }
 0x5a1   : > { %v9452_v7 = vpop.f32.mrb[1].mxu1  ;;  %9471 = vmatmul.mubr.msk.f32.vlgmr.msra.gmra.mrb[4].mxu1 %vm321_vm2, %v479_v6 }
 0x5a2   : > { %9480 = vmatprep.mubr.msk.f32.mxu1 %vm10392_vm1, %v10391_v36 }
 0x5a4   : > { %v644_v9 = vpop.f32.mrb[2].mxu1 }
 0x5a5   : > { %v9462_v10 = vpop.f32.mrb[3].mxu1  ;;  %9466 = vmatmul.mubr.msk.f32.vlgmr.msra.gmra.mrb[6].mxu0 %vm321_vm2, %v644_v9 }
 0x5a6   : > { %9474 = vmatpush3.xpose.msk.msra.mxu0 %vm321_vm2, %v797_v8  ;;  %9475 = vmatprep.mubr.msk.f32.mxu0 %vm10392_vm1, %v10391_v36 }
 0x5a7   : > { %9483 = vmatprep.subr.mxu0 %v10391_v36 }
 0x5a9   : > { %9476 = vmatmul.mubr.msk.f32.vlgmr.msra.gmra.mrb[8].mxu0 %vm321_vm2, %v795_v11 }
 0x5aa   : > { %9485 = vmatprep.mubr.msk.f32.mxu0 %vm10392_vm1, %v10391_v36  ;;  %9484 = vmatpush3.msra.mxu0 %v10630_v31 }
 0x5ab   : > { %9493 = vmatprep.subr.mxu0 %v10391_v36 }
 0x674   : > { %v790_v12 = vpop.f32.mrb[4].mxu1 }
 0x675   : > { %v9472_v13 = vpop.f32.mrb[5].mxu1 }
 0x678   : > { %v717_v14 = vpop.f32.mrb[6].mxu0 }
 0x679   : > { %v791_v15 = vadd.f32 %v790_v12, %v717_v14  ;;  %v9467_v16 = vpop.f32.mrb[7].mxu0 }
 0x67c   : > { %v868_v17 = vpop.f32.mrb[8].mxu0 }
 0x67d   : > { %v9477_v18 = vpop.f32.mrb[9].mxu0  ;;  %v872_v19 = vsel %vm321_vm2, %v868_v17, -inf }
 0x67e   : > { %873 = vmax.xlane.f32.xlu1 %v872_v19 }
 0x68f   : > { %1035 = vrot.lane.b32.xlu1 %v10550_v38, %s10400_s5 }
 0x693   : > { %1033 = vrot.lane.b32.xlu1 %v10550_v38, %s10401_s6 }
 0x697   : > { %1273 = vrot.lane.b32.xlu1 %v10548_v37, %s10394_s27 }
 0x70b   : > { %v874_v20 = vpop.xlane.xlu1 %873 }
 0x70c   : > { %v875_v21 = vsub.f32 %v868_v17, %v874_v20 }
 0x70e   : > { %v876_v22 = vmul.f32 1.442695, %v875_v21 }
 0x70f   : > { %v1036_v28 = vpop.permute.xlu1 %1035 }
 0x710   : > { %10166 = vpow2.f32 %v876_v22 }
 0x713   : > { %v1034_v30 = vpop.permute.xlu1 %1033 }
 0x717   : > { %v1274_v48 = vpop.permute.xlu1 %1273 }
 0x71a   : > { %v10167_v23 = vpop.eup %10166 }
 0x71b   : > { %v878_v24 = vsel %vm321_vm2, %v10167_v23, 0.0 }
 0x71c   : > { %879 = vadd.xlane.f32.xlu0 %v878_v24 }
 0x732   : > { %883 = vrot.lane.b32.xlu0 %v10550_v38, %s10402_s7 }
 0x7a9   : > { %v880_v25 = vpop.xlane.xlu0 %879 }
 0x7aa   : > { %10168 = vrcp.f32 %v880_v25 }
 0x7ad   : > { %v884_v26 = vpop.permute.xlu0 %883 }
 0x7ae   : > { %9479 = vmatpush3.msra.mxu1 %v884_v26 }
 0x7af   : > { %9488 = vmatprep.subr.mxu1 %v10391_v36 }
 0x7b4   : > { %v10169_v27 = vpop.eup %10168 }
 0x7b5   : > { %v882_v29 = vmul.f32 %v10169_v27, %v10167_v23 }
 0x7b7   : > { %9481 = vmatmul.mubr.msk.f32.vlgmr.msra.gmra.mrb[6].mxu1 %vm321_vm2, %v882_v29 }
 0x7b8   : > { %9489 = vmatpush3.xpose.msk.msra.mxu1 %vm321_vm2, %v1036_v28  ;;  %9490 = vmatprep.mubr.msk.f32.mxu1 %vm10392_vm1, %v10391_v36 }
 0x7b9   : > { %9498 = vmatprep.subr.mxu1 %v10391_v36 }
 0x7bb   : > { %9491 = vmatmul.mubr.msk.f32.vlgmr.msra.gmra.mrb[8].mxu1 %vm321_vm2, %v1034_v30 }
 0x7bc   : > { %9500 = vmatprep.mubr.msk.f32.mxu1 %vm10392_vm1, %v10391_v36  ;;  %9499 = vmatpush3.msra.mxu1 %v10663_v54 }
 0x7bd   : > { %9508 = vmatprep.subr.mxu1 %v10391_v36 }
 0x88a   : > { %v955_v32 = vpop.f32.mrb[6].mxu1 }
 0x88b   : > { %v9482_v33 = vpop.f32.mrb[7].mxu1  ;;  %9486 = vmatmul.mubr.msk.f32.vlgmr.msra.gmra.mrb[10].mxu0 %vm321_vm2, %v955_v32 }
 0x88c   : > { %9495 = vmatprep.mubr.msk.f32.mxu0 %vm10392_vm1, %v10391_v36 }
 0x88e   : > { %v1107_v34 = vpop.f32.mrb[8].mxu1 }
 0x88f   : > { %v9492_v35 = vpop.f32.mrb[9].mxu1  ;;  %v1111_v39 = vsel %vm321_vm2, %v1107_v34, -inf }
 0x890   : > { %1112 = vmax.xlane.f32.xlu0 %v1111_v39 }
 0x8a6   : > { %1122 = vrot.lane.b32.xlu0 %v10550_v38, %s10403_s8 }
 0x8aa   : > { %1438 = vrot.lane.b32.xlu0 %v10548_v37, %s10393_s18 }
 0x91d   : > { %v1113_v40 = vpop.xlane.xlu0 %1112 }
 0x91e   : > { %v1114_v41 = vsub.f32 %v1107_v34, %v1113_v40 }
 0x920   : > { %v1115_v42 = vmul.f32 1.442695, %v1114_v41 }
 0x921   : > { %v1123_v43 = vpop.permute.xlu0 %1122 }
 0x922   : > { %10170 = vpow2.f32 %v1115_v42  ;;  %9494 = vmatpush3.msra.mxu0 %v1123_v43 }
 0x923   : > { %9503 = vmatprep.subr.mxu0 %v10391_v36 }
 0x925   : > { %v1439_v52 = vpop.permute.xlu0 %1438 }
 0x92c   : > { %v10171_v44 = vpop.eup %10170 }
 0x92d   : > { %v1117_v45 = vsel %vm321_vm2, %v10171_v44, 0.0 }
 0x92e   : > { %1118 = vadd.xlane.f32.xlu1 %v1117_v45 }
 0x93f   : > { %1436 = vrot.lane.b32.xlu1 %v10548_v37, %s10395_s28 }
 0x95e   : > { %v1028_v46 = vpop.f32.mrb[10].mxu0 }
 0x95f   : > { %v1032_v38 = vadd.f32 %v1028_v46, %v791_v15  ;;  %v9487_v47 = vpop.f32.mrb[11].mxu0 }
 0x9bb   : > { %v1119_v49 = vpop.xlane.xlu1 %1118 }
 0x9bc   : > { %10172 = vrcp.f32 %v1119_v49  ;;  %v9052_v49 = vld [vmem:[%s10506_s24 + $0xe2] ss:$0 sm:$0xff] }
 0x9bf   : > { %v1437_v53 = vpop.permute.xlu1 %1436 }
 0x9c6   : > { %v10173_v50 = vpop.eup %10172 }
 0x9c7   : > { %v1121_v51 = vmul.f32 %v10173_v50, %v10171_v44 }
 0x9c9   : > { %9496 = vmatmul.mubr.msk.f32.vlgmr.msra.gmra.mrb[12].mxu0 %vm321_vm2, %v1121_v51 }
 0x9ca   : > { %9504 = vmatpush3.xpose.msk.msra.mxu0 %vm321_vm2, %v1274_v48  ;;  %9505 = vmatprep.mubr.msk.f32.mxu0 %vm10392_vm1, %v10391_v36 }
 0x9cb   : > { %9513 = vmatprep.subr.mxu0 %v10391_v36 }
 0x9cd   : > { %9506 = vmatmul.mubr.msk.f32.vlgmr.msra.gmra.mrb[14].mxu0 %vm321_vm2, %v10548_v37 }
 0x9ce   : > { %9514 = vmatpush3.xpose.msk.msra.mxu0 %vm321_vm2, %v1439_v52  ;;  %9515 = vmatprep.mubr.msk.f32.mxu0 %vm10392_vm1, %v10391_v36 }
 0x9cf   : > { %9523 = vmatprep.subr.mxu0 %v10391_v36 }
 0x9d1   : > { %9516 = vmatmul.mubr.msk.f32.vlgmr.msra.gmra.mrb[16].mxu0 %vm321_vm2, %v1437_v53 }
 0x9d2   : > { %9524 = vmatpush3.msra.mxu0 %v10583_v59  ;;  %9525 = vmatprep.mubr.msk.f32.mxu0 %vm10392_vm1, %v10391_v36 }
 0x9d3   : > { %9533 = vmatprep.subr.mxu0 %v10391_v36 }
 0xa9c   : > { %v1194_v55 = vpop.f32.mrb[12].mxu0 }
 0xa9d   : > { %v9497_v56 = vpop.f32.mrb[13].mxu0  ;;  %9501 = vmatmul.mubr.msk.f32.vlgmr.msra.gmra.mrb[10].mxu1 %vm321_vm2, %v1194_v55 }
 0xa9e   : > { %9510 = vmatprep.mubr.msk.f32.mxu1 %vm10392_vm1, %v10391_v36 }
 0xaa0   : > { %v1345_v57 = vpop.f32.mrb[14].mxu0 }
 0xaa1   : > { %v9507_v58 = vpop.f32.mrb[15].mxu0  ;;  %v1349_v59 = vsel %vm321_vm2, %v1345_v57, -inf }
 0xaa2   : > { %1350 = vmax.xlane.f32.xlu0 %v1349_v59 }
 0xaa4   : > { %v1510_v60 = vpop.f32.mrb[16].mxu0 }
 0xaa5   : > { %v9517_v61 = vpop.f32.mrb[17].mxu0  ;;  %v1514_v62 = vsel %vm321_vm2, %v1510_v60, -inf }
 0xaa6   : > { %1515 = vmax.xlane.f32.xlu1 %v1514_v62 }
 0xab7   : > { %1525 = vrot.lane.b32.xlu1 %v10548_v37, %s10399_s4 }
 0xabb   : > { %1749 = vrot.lane.b32.xlu1 %v10548_v37, %s10397_s30 }
 0xabf   : > { %1747 = vrot.lane.b32.xlu1 %v10548_v37, %s10398_s3 }
 0xb2f   : > { %v1351_v63 = vpop.xlane.xlu0 %1350 }
 0xb30   : > { %v1352_v2 = vsub.f32 %v1345_v57, %v1351_v63 }
 0xb32   : > { %v1353_v3 = vmul.f32 1.442695, %v1352_v2 }
 0xb33   : > { %v1516_v4 = vpop.xlane.xlu1 %1515 }
 0xb34   : > { %10174 = vpow2.f32 %v1353_v3  ;;  %v1517_v6 = vsub.f32 %v1510_v60, %v1516_v4 }
 0xb36   : > { %v1518_v7 = vmul.f32 1.442695, %v1517_v6 }
 0xb37   : > { %v1526_v20 = vpop.permute.xlu1 %1525 }
 0xb38   : > { %10176 = vpow2.f32 %v1518_v7 }
 0xb3b   : > { %v1750_v25 = vpop.permute.xlu1 %1749 }
 0xb3e   : > { %v10175_v8 = vpop.eup %10174 }
 0xb3f   : > { %v1355_v9 = vsel %vm321_vm2, %v10175_v8, 0.0 }
 0xb40   : > { %1356 = vadd.xlane.f32.xlu0 %v1355_v9 }
 0xb42   : > { %v10177_v10 = vpop.eup %10176 }
 0xb43   : > { %v1520_v11 = vsel %vm321_vm2, %v10177_v10, 0.0 }
 0xb44   : > { %1521 = vadd.xlane.f32.xlu0 %v1520_v11 }
 0xb5a   : > { %1360 = vrot.lane.b32.xlu0 %v10548_v37, %s10396_s29 }
 0xb70   : > { %v1267_v12 = vpop.f32.mrb[10].mxu1 }
 0xb71   : > { %v10682_v13 = vadd.f32 %v1267_v12, %v1032_v38  ;;  %v9502_v14 = vpop.f32.mrb[11].mxu1 }
 0xb73   : > { %v2229_v51 = vadd.f32 %v9052_v49, %v10682_v13 }
 0xb75   : > { %v10732_v55 = vadd.f32 %v2229_v51, %v10522_v0 }
 0xb77   : > { %v2244_v57 = vsel %vm197_vm0, %v10732_v55, 0.0 }
 0xbcd   : > { %v1357_v15 = vpop.xlane.xlu0 %1356 }
 0xbce   : > { %10178 = vrcp.f32 %v1357_v15 }
 0xbd1   : > { %v1522_v16 = vpop.xlane.xlu0 %1521 }
 0xbd2   : > { %10180 = vrcp.f32 %v1522_v16 }
 0xbd5   : > { %v1361_v17 = vpop.permute.xlu0 %1360 }
 0xbd6   : > { %9509 = vmatpush3.msra.mxu1 %v1361_v17 }
 0xbd7   : > { %9518 = vmatprep.subr.mxu1 %v10391_v36 }
 0xbd8   : > { %v10179_v18 = vpop.eup %10178 }
 0xbd9   : > { %v1359_v19 = vmul.f32 %v10179_v18, %v10175_v8 }
 0xbdb   : > { %9511 = vmatmul.mubr.msk.f32.vlgmr.msra.gmra.mrb[12].mxu1 %vm321_vm2, %v1359_v19 }
 0xbdc   : > { %v10181_v21 = vpop.eup %10180  ;;  %9519 = vmatpush3.msra.mxu1 %v1526_v20  ;;  %9520 = vmatprep.mubr.msk.f32.mxu1 %vm10392_vm1, %v10391_v36 }
 0xbdd   : > { %v1524_v22 = vmul.f32 %v10181_v21, %v10177_v10  ;;  %9528 = vmatprep.subr.mxu1 %v10391_v36 }
 0xbdf   : > { %9521 = vmatmul.mubr.msk.f32.vlgmr.msra.gmra.mrb[14].mxu1 %vm321_vm2, %v1524_v22 }
 0xbe0   : > { %9529 = vmatpush3.msra.mxu1 %v10595_v5  ;;  %9530 = vmatprep.mubr.msk.f32.mxu1 %vm10392_vm1, %v10391_v36  ;;  %v1748_v5 = vpop.permute.xlu1 %1747 }
 0xbe1   : > { %9538 = vmatprep.subr.mxu1 %v10391_v36 }
 0xcae   : > { %v1432_v23 = vpop.f32.mrb[12].mxu1 }
 0xcaf   : > { %v9512_v24 = vpop.f32.mrb[13].mxu1  ;;  %9531 = vmatmul.mubr.msk.f32.vlgmr.msra.gmra.mrb[16].mxu1 %vm321_vm2, %v1432_v23 }
 0xcb0   : > { %9540 = vmatprep.mubr.msk.f32.mxu1 %vm10392_vm1, %v10391_v36 }
 0xcb2   : > { %v1597_v26 = vpop.f32.mrb[14].mxu1 }
 0xcb3   : > { %v9522_v27 = vpop.f32.mrb[15].mxu1  ;;  %9526 = vmatmul.mubr.msk.f32.vlgmr.msra.gmra.mrb[18].mxu0 %vm321_vm2, %v1597_v26 }
 0xcb4   : > { %9534 = vmatpush3.xpose.msk.msra.mxu0 %vm321_vm2, %v1750_v25  ;;  %9535 = vmatprep.mubr.msk.f32.mxu0 %vm10392_vm1, %v10391_v36 }
 0xcb5   : > { %9543 = vmatprep.subr.mxu0 %v10391_v36 }
 0xcb7   : > { %9536 = vmatmul.mubr.msk.f32.vlgmr.msra.gmra.mrb[20].mxu0 %vm321_vm2, %v1748_v5  ;;  %v9053_v5 = vld [vmem:[%s10506_s24 + $0xe3] ss:$0 sm:$0xff] }
 0xcb8   : > { %9544 = vmatpush3.msra.mxu0 %v10630_v31  ;;  %9545 = vmatprep.mubr.msk.f32.mxu0 %vm10392_vm1, %v10391_v36 }
 0xcb9   : > { %9553 = vmatprep.subr.mxu0 %v10391_v36 }
 0xd82   : > { %v1743_v28 = vpop.f32.mrb[16].mxu1 }
 0xd83   : > { %v9532_v29 = vpop.f32.mrb[17].mxu1 }
 0xd84   : > { %v9054_v29 = vld [vmem:[%s10506_s24 + $0xe4] ss:$0 sm:$0xff] }
 0xd86   : > { %v1670_v30 = vpop.f32.mrb[18].mxu0 }
 0xd87   : > { %v1744_v32 = vadd.f32 %v1743_v28, %v1670_v30  ;;  %v9527_v33 = vpop.f32.mrb[19].mxu0 }
 0xd88   : > { %v2235_v33 = vld [vmem:[%s10506_s24 + $0x20] sm:$0xff] }
 0xd8a   : > { %v1821_v34 = vpop.f32.mrb[20].mxu0 }
 0xd8b   : > { %v9537_v35 = vpop.f32.mrb[21].mxu0  ;;  %v1825_v39 = vsel %vm321_vm2, %v1821_v34, -inf }
 0xd8c   : > { %1826 = vmax.xlane.f32.xlu0 %v1825_v39  ;;  %v2237_v39 = vld [vmem:[%s10506_s24 + $0x30] sm:$0xff] }
 0xda2   : > { %1836 = vrot.lane.b32.xlu0 %v10548_v37, %s10402_s7 }
 0xda6   : > { %1986 = vrot.lane.b32.xlu0 %v10548_v37, %s10401_s6 }
 0xe19   : > { %v1827_v31 = vpop.xlane.xlu0 %1826 }
 0xe1a   : > { %v1828_v40 = vsub.f32 %v1821_v34, %v1827_v31  ;;  %v2236_v34 = vld [vmem:[%s10506_s24 + $0x28] sm:$0xff]  ;;  %v2238_v31 = vld [vmem:[%s10506_s24 + $0x38] sm:$0xff] }
 0xe1b   : > { %v10024_v35 = vpack.c.bf16 %v2236_v34, %v2235_v33 }
 0xe1c   : > { %v1829_v41 = vmul.f32 1.442695, %v1828_v40  ;;  %v10028_v40 = vpack.c.bf16 %v2238_v31, %v2237_v39 }
 0xe1d   : > { %v1837_v42 = vpop.permute.xlu0 %1836 }
 0xe1e   : > { %10182 = vpow2.f32 %v1829_v41  ;;  %9539 = vmatpush3.msra.mxu1 %v1837_v42 }
 0xe1f   : > { %9548 = vmatprep.subr.mxu1 %v10391_v36 }
 0xe21   : > { %v1987_v48 = vpop.permute.xlu0 %1986 }
 0xe28   : > { %v10183_v43 = vpop.eup %10182 }
 0xe29   : > { %v1831_v44 = vsel %vm321_vm2, %v10183_v43, 0.0 }
 0xe2a   : > { %1832 = vadd.xlane.f32.xlu1 %v1831_v44 }
 0xe3b   : > { %1988 = vrot.lane.b32.xlu1 %v10548_v37, %s10400_s5 }
 0xeb7   : > { %v1833_v45 = vpop.xlane.xlu1 %1832 }
 0xeb8   : > { %10184 = vrcp.f32 %v1833_v45 }
 0xebb   : > { %v1989_v47 = vpop.permute.xlu1 %1988 }
 0xec2   : > { %v10185_v46 = vpop.eup %10184 }
 0xec3   : > { %v1835_v38 = vmul.f32 %v10185_v46, %v10183_v43 }
 0xec5   : > { %9541 = vmatmul.mubr.msk.f32.vlgmr.msra.gmra.mrb[18].mxu1 %vm321_vm2, %v1835_v38 }
 0xec6   : > { %9549 = vmatpush3.xpose.msk.msra.mxu1 %vm321_vm2, %v1989_v47  ;;  %9550 = vmatprep.mubr.msk.f32.mxu1 %vm10392_vm1, %v10391_v36 }
 0xec7   : > { %9558 = vmatprep.subr.mxu1 %v10391_v36 }
 0xec9   : > { %9551 = vmatmul.mubr.msk.f32.vlgmr.msra.gmra.mrb[20].mxu1 %vm321_vm2, %v1987_v48 }
 0xeca   : > { %9559 = vmatpush3.msra.mxu1 %v10663_v54  ;;  %9560 = vmatprep.mubr.msk.f32.mxu1 %vm10392_vm1, %v10391_v36 }
 0xecb   : > { %9574 = vmatprep.subr.mxu1 %v10391_v36 }
 0xf98   : > { %v1908_v50 = vpop.f32.mrb[18].mxu1 }
 0xf99   : > { %v9542_v52 = vpop.f32.mrb[19].mxu1  ;;  %9546 = vmatmul.mubr.msk.f32.vlgmr.msra.gmra.mrb[22].mxu0 %vm321_vm2, %v1908_v50 }
 0xf9a   : > { %9555 = vmatprep.mubr.msk.f32.mxu0 %vm10392_vm1, %v10391_v36 }
 0xf9c   : > { %v2060_v53 = vpop.f32.mrb[20].mxu1 }
 0xf9d   : > { %v9552_v54 = vpop.f32.mrb[21].mxu1  ;;  %v2064_v56 = vsel %vm321_vm2, %v2060_v53, -inf }
 0xf9e   : > { %2065 = vmax.xlane.f32.xlu1 %v2064_v56 }
 0xfa2   : > { %2245 = vadd.xlane.f32.xlu1 %v2244_v57 }
0x102b   : > { %v2066_v58 = vpop.xlane.xlu1 %2065 }
0x102c   : > { %v2067_v59 = vsub.f32 %v2060_v53, %v2066_v58 }
0x102e   : > { %v2068_v60 = vmul.f32 1.442695, %v2067_v59 }
0x102f   : > { %v2246_v10 = vpop.xlane.xlu1 %2245 }
0x1030   : > { %10186 = vpow2.f32 %v2068_v60 }
0x103a   : > { %v10187_v61 = vpop.eup %10186 }
0x103b   : > { %v2070_v62 = vsel %vm321_vm2, %v10187_v61, 0.0 }
0x103c   : > { %2071 = vadd.xlane.f32.xlu0 %v2070_v62 }
0x1052   : > { %2075 = vrot.lane.b32.xlu0 %v10548_v37, %s10403_s8  ;;  %v2250_v37 = vmul.f32 0.03125, %v2246_v10 }
0x1054   : > { %v2252_v14 = vsub.f32 %v10732_v55, %v2250_v37 }
0x1056   : > { %v2254_v18 = vmul.f32 %v2252_v14, %v2252_v14 }
0x1058   : > { %v2256_v19 = vsel %vm197_vm0, %v2254_v18, 0.0 }
0x106c   : > { %v1981_v0 = vpop.f32.mrb[22].mxu0 }
0x106d   : > { %v1985_v63 = vadd.f32 %v1981_v0, %v1744_v32  ;;  %v9547_v2 = vpop.f32.mrb[23].mxu0 }
0x10c9   : > { %v2072_v3 = vpop.xlane.xlu0 %2071 }
0x10ca   : > { %10188 = vrcp.f32 %v2072_v3 }
0x10cd   : > { %v2076_v4 = vpop.permute.xlu0 %2075 }
0x10ce   : > { %9554 = vmatpush3.msra.mxu0 %v2076_v4 }
0x10cf   : > { %10025 = vmatprep.subr.bf16.mxu0 %v10024_v35 }
0x10d4   : > { %v10189_v6 = vpop.eup %10188 }
0x10d5   : > { %v2074_v7 = vmul.f32 %v10189_v6, %v10187_v61 }
0x10d7   : > { %9556 = vmatmul.mubr.msk.f32.vlgmr.msra.gmra.mrb[24].mxu0 %vm321_vm2, %v2074_v7  ;;  %v10798_v7 = vld [vmem:[%s10506_s24 + $0x68] sm:$0xff] }
0x10d8   : > { %10027 = vmatpush3.bf16.msra.mxu0 %v10024_v35 }
0x10d9   : > { %10029 = vmatprep.subr.bf16.mxu0 %v10028_v40 }
0x10dc   : > { %10031 = vmatpush3.bf16.msra.mxu0 %v10028_v40 }
0x10dd   : > { %9584 = vmatprep.subr.mxu0 %v10391_v36 }
0x11aa   : > { %v2147_v8 = vpop.f32.mrb[24].mxu0 }
0x11ab   : > { %v9557_v9 = vpop.f32.mrb[25].mxu0  ;;  %9561 = vmatmul.mubr.msk.f32.vlgmr.msra.gmra.mrb[22].mxu1 %vm321_vm2, %v2147_v8 }
0x11ac   : > { %9576 = vmatprep.mubr.msk.f32.mxu1 %vm10392_vm1, %v10391_v36 }
0x127e   : > { %v2220_v11 = vpop.f32.mrb[22].mxu1 }
0x127f   : > { %v2224_v12 = vadd.f32 %v2220_v11, %v1985_v63  ;;  %v9562_v13 = vpop.f32.mrb[23].mxu1 }
0x1281   : > { %v2230_v15 = vadd.f32 %v9052_v49, %v2224_v12 }
0x1283   : > { %v10746_v16 = vadd.f32 %v2230_v15, %v10524_v1  ;;  %v10811_v15 = vld [vmem:[%s10506_s24 + $0x60] sm:$0xff] }
0x1285   : > { %v2247_v17 = vsel %vm197_vm0, %v10746_v16, 0.0 }
0x1286   : > { %2248 = vadd.xlane.f32.xlu1 %v2247_v17 }
0x128a   : > { %2257 = vadd.xlane.f32.xlu1 %v2256_v19 }
0x1313   : > { %v2249_v20 = vpop.xlane.xlu1 %2248 }
0x1314   : > { %v2251_v21 = vmul.f32 0.03125, %v2249_v20 }
0x1316   : > { %v2253_v22 = vsub.f32 %v10746_v16, %v2251_v21 }
0x1317   : > { %v2258_v23 = vpop.xlane.xlu1 %2257 }
0x1318   : > { %v2262_v24 = vmul.f32 0.03125, %v2258_v23  ;;  %v2255_v1 = vmul.f32 %v2253_v22, %v2253_v22 }
0x131a   : > { %v2264_v25 = vadd.f32 1e-05, %v2262_v24  ;;  %v2259_v26 = vsel %vm197_vm0, %v2255_v1, 0.0 }
0x131b   : > { %2260 = vadd.xlane.f32.xlu1 %v2259_v26 }
0x131c   : > { %10190 = vrsqrt.f32 %v2264_v25 }
0x1326   : > { %v10191_v27 = vpop.eup %10190 }
0x1327   : > { %v2268_v28 = vmul.f32 %v10191_v27, %v2252_v14 }
0x1329   : > { %v2274_v30 = vmul.f32 %v9053_v5, %v2268_v28 }
0x132b   : > { %v2280_v32 = vadd.f32 %v9054_v29, %v2274_v30 }
0x132d   : > { %9571 = vmatprep.mubr.msk.f32.mxu0 %vm197_vm0, %v2280_v32 }
0x13a8   : > { %v2261_v41 = vpop.xlane.xlu1 %2260 }
0x13a9   : > { %v2263_v42 = vmul.f32 0.03125, %v2261_v41 }
0x13ab   : > { %v2265_v43 = vadd.f32 1e-05, %v2263_v42 }
0x13ad   : > { %10192 = vrsqrt.f32 %v2265_v43  ;;  %v10846_v43 = vld [vmem:[%s10506_s24 + $0x70] sm:$0xff] }
0x13b7   : > { %v10193_v44 = vpop.eup %10192 }
0x13b8   : > { %v2269_v45 = vmul.f32 %v10193_v44, %v2253_v22 }
0x13ba   : > { %v2275_v46 = vmul.f32 %v9053_v5, %v2269_v45 }
0x13bc   : > { %v2281_v38 = vadd.f32 %v9054_v29, %v2275_v46 }
0x13be   : > { %9572 = vmatmul.mubr.msk.f32.vlgmr.msra.gmra.mrb[26].mxu0 %vm197_vm0, %v2281_v38 }
0x13bf   : > { %9586 = vmatprep.mubr.msk.f32.mxu0 %vm10392_vm1, %v10391_v36 }
0x1491   : > { %v10764_v47 = vpop.f32.mrb[26].mxu0 }
0x1492   : > { %v10766_v48 = vpop.f32.mrb[27].mxu0 }
0x1493   : > { %2529 = vrot.lane.b32.xlu0 %v10766_v48, %s10393_s18  ;;  %2364 = vrot.lane.b32.xlu1 %v10766_v48, %s10394_s27 }
0x1497   : > { %2527 = vrot.lane.b32.xlu0 %v10766_v48, %s10395_s28 }
0x1505   : > { %v2530_v49 = vpop.permute.xlu0 %2529  ;;  %v2365_v50 = vpop.permute.xlu1 %2364 }
0x1506   : > { %9575 = vmatpush3.xpose.msk.msra.mxu1 %vm321_vm2, %v2365_v50  ;;  %9585 = vmatpush3.xpose.msk.msra.mxu0 %vm321_vm2, %v2530_v49 }
0x1507   : > { %9579 = vmatprep.subr.mxu1 %v10391_v36  ;;  %9594 = vmatprep.subr.mxu0 %v10391_v36 }
0x1509   : > { %v2528_v51 = vpop.permute.xlu0 %2527  ;;  %9577 = vmatmul.mubr.msk.f32.vlgmr.msra.gmra.mrb[24].mxu1 %vm321_vm2, %v10766_v48 }
0x150a   : > { %9587 = vmatmul.mubr.msk.f32.vlgmr.msra.gmra.mrb[28].mxu0 %vm321_vm2, %v2528_v51  ;;  %9581 = vmatprep.mubr.msk.f32.mxu1 %vm10392_vm1, %v10391_v36 }
0x150b   : > { %9596 = vmatprep.mubr.msk.f32.mxu0 %vm10392_vm1, %v10391_v36  ;;  %9595 = vmatpush3.msra.mxu0 %v10798_v7 }
0x150c   : > { %9604 = vmatprep.subr.mxu0 %v10391_v36 }
0x15dc   : > { %v2436_v52 = vpop.f32.mrb[24].mxu1 }
0x15dd   : > { %v9578_v53 = vpop.f32.mrb[25].mxu1  ;;  %v2601_v54 = vpop.f32.mrb[28].mxu0  ;;  %v2440_v56 = vsel %vm321_vm2, %v2436_v52, -inf }
0x15de   : > { %v9588_v57 = vpop.f32.mrb[29].mxu0  ;;  %2441 = vmax.xlane.f32.xlu0 %v2440_v56  ;;  %v2605_v58 = vsel %vm321_vm2, %v2601_v54, -inf }
0x15df   : > { %2606 = vmax.xlane.f32.xlu1 %v2605_v58 }
0x15f0   : > { %2616 = vrot.lane.b32.xlu1 %v10766_v48, %s10399_s4 }
0x15f4   : > { %2840 = vrot.lane.b32.xlu1 %v10766_v48, %s10397_s30 }
0x166b   : > { %v2442_v59 = vpop.xlane.xlu0 %2441 }
0x166c   : > { %v2443_v60 = vsub.f32 %v2436_v52, %v2442_v59  ;;  %v2607_v61 = vpop.xlane.xlu1 %2606 }
0x166d   : > { %v2608_v62 = vsub.f32 %v2601_v54, %v2607_v61 }
0x166e   : > { %v2444_v0 = vmul.f32 1.442695, %v2443_v60 }
0x166f   : > { %v2609_v63 = vmul.f32 1.442695, %v2608_v62 }
0x1670   : > { %10194 = vpow2.f32 %v2444_v0  ;;  %v2617_v12 = vpop.permute.xlu1 %2616 }
0x1671   : > { %10196 = vpow2.f32 %v2609_v63 }
0x1674   : > { %v2841_v20 = vpop.permute.xlu1 %2840 }
0x167a   : > { %v10195_v2 = vpop.eup %10194 }
0x167b   : > { %v2446_v3 = vsel %vm321_vm2, %v10195_v2, 0.0  ;;  %v10197_v4 = vpop.eup %10196 }
0x167c   : > { %2447 = vadd.xlane.f32.xlu0 %v2446_v3  ;;  %v2611_v6 = vsel %vm321_vm2, %v10197_v4, 0.0 }
0x1680   : > { %2612 = vadd.xlane.f32.xlu0 %v2611_v6 }
0x1696   : > { %2451 = vrot.lane.b32.xlu0 %v10766_v48, %s10396_s29 }
0x169a   : > { %2838 = vrot.lane.b32.xlu0 %v10766_v48, %s10398_s3 }
0x1709   : > { %v2448_v8 = vpop.xlane.xlu0 %2447 }
0x170a   : > { %10198 = vrcp.f32 %v2448_v8 }
0x170d   : > { %v2613_v9 = vpop.xlane.xlu0 %2612 }
0x170e   : > { %10200 = vrcp.f32 %v2613_v9 }
0x1711   : > { %v2452_v10 = vpop.permute.xlu0 %2451 }
0x1712   : > { %9580 = vmatpush3.msra.mxu1 %v2452_v10 }
0x1713   : > { %9589 = vmatprep.subr.mxu1 %v10391_v36 }
0x1714   : > { %v10199_v37 = vpop.eup %10198 }
0x1715   : > { %v2450_v11 = vmul.f32 %v10199_v37, %v10195_v2  ;;  %v2839_v22 = vpop.permute.xlu0 %2838  ;;  %v10879_v2 = vld [vmem:[%s10506_s24 + $0x78] sm:$0xff] }
0x1717   : > { %9582 = vmatmul.mubr.msk.f32.vlgmr.msra.gmra.mrb[26].mxu1 %vm321_vm2, %v2450_v11 }
0x1718   : > { %v10201_v13 = vpop.eup %10200  ;;  %9590 = vmatpush3.msra.mxu1 %v2617_v12  ;;  %9591 = vmatprep.mubr.msk.f32.mxu1 %vm10392_vm1, %v10391_v36 }
0x1719   : > { %v2615_v14 = vmul.f32 %v10201_v13, %v10197_v4  ;;  %9599 = vmatprep.subr.mxu1 %v10391_v36 }
0x171b   : > { %9592 = vmatmul.mubr.msk.f32.vlgmr.msra.gmra.mrb[28].mxu1 %vm321_vm2, %v2615_v14 }
0x171c   : > { %9601 = vmatprep.mubr.msk.f32.mxu1 %vm10392_vm1, %v10391_v36  ;;  %9600 = vmatpush3.msra.mxu1 %v10811_v15 }
0x171d   : > { %9609 = vmatprep.subr.mxu1 %v10391_v36 }
0x17ea   : > { %v2523_v17 = vpop.f32.mrb[26].mxu1 }
0x17eb   : > { %v9583_v18 = vpop.f32.mrb[27].mxu1  ;;  %9602 = vmatmul.mubr.msk.f32.vlgmr.msra.gmra.mrb[30].mxu1 %vm321_vm2, %v2523_v17 }
0x17ec   : > { %9611 = vmatprep.mubr.msk.f32.mxu1 %vm10392_vm1, %v10391_v36 }
0x17ee   : > { %v2688_v19 = vpop.f32.mrb[28].mxu1 }
0x17ef   : > { %v9593_v21 = vpop.f32.mrb[29].mxu1  ;;  %9597 = vmatmul.mubr.msk.f32.vlgmr.msra.gmra.mrb[30].mxu0 %vm321_vm2, %v2688_v19 }
0x17f0   : > { %9605 = vmatpush3.xpose.msk.msra.mxu0 %vm321_vm2, %v2841_v20  ;;  %9606 = vmatprep.mubr.msk.f32.mxu0 %vm10392_vm1, %v10391_v36 }
0x17f1   : > { %9614 = vmatprep.subr.mxu0 %v10391_v36 }
0x17f3   : > { %9607 = vmatmul.mubr.msk.f32.vlgmr.msra.gmra.mrb[32].mxu0 %vm321_vm2, %v2839_v22 }
0x17f4   : > { %9616 = vmatprep.mubr.msk.f32.mxu0 %vm10392_vm1, %v10391_v36  ;;  %9615 = vmatpush3.msra.mxu0 %v10846_v43 }
0x17f5   : > { %9624 = vmatprep.subr.mxu0 %v10391_v36 }
0x18be   : > { %v2834_v23 = vpop.f32.mrb[30].mxu1 }
0x18bf   : > { %v9603_v24 = vpop.f32.mrb[31].mxu1 }
0x18c2   : > { %v2761_v1 = vpop.f32.mrb[30].mxu0 }
0x18c3   : > { %v2835_v25 = vadd.f32 %v2834_v23, %v2761_v1  ;;  %v9598_v26 = vpop.f32.mrb[31].mxu0 }
0x18c6   : > { %v2912_v27 = vpop.f32.mrb[32].mxu0 }
0x18c7   : > { %v9608_v5 = vpop.f32.mrb[33].mxu0  ;;  %v2916_v28 = vsel %vm321_vm2, %v2912_v27, -inf }
0x18c8   : > { %2917 = vmax.xlane.f32.xlu1 %v2916_v28 }
0x18d9   : > { %3079 = vrot.lane.b32.xlu1 %v10766_v48, %s10400_s5 }
0x18dd   : > { %3077 = vrot.lane.b32.xlu1 %v10766_v48, %s10401_s6 }
0x18e1   : > { %3317 = vrot.lane.b32.xlu1 %v10764_v47, %s10394_s27 }
0x1955   : > { %v2918_v29 = vpop.xlane.xlu1 %2917 }
0x1956   : > { %v2919_v30 = vsub.f32 %v2912_v27, %v2918_v29 }
0x1958   : > { %v2920_v32 = vmul.f32 1.442695, %v2919_v30 }
0x1959   : > { %v3080_v40 = vpop.permute.xlu1 %3079 }
0x195a   : > { %10202 = vpow2.f32 %v2920_v32 }
0x195d   : > { %v3078_v42 = vpop.permute.xlu1 %3077 }
0x1961   : > { %v3318_v59 = vpop.permute.xlu1 %3317 }
0x1964   : > { %v10203_v33 = vpop.eup %10202 }
0x1965   : > { %v2922_v34 = vsel %vm321_vm2, %v10203_v33, 0.0 }
0x1966   : > { %2923 = vadd.xlane.f32.xlu0 %v2922_v34 }
0x197c   : > { %2927 = vrot.lane.b32.xlu0 %v10766_v48, %s10402_s7 }
0x19f3   : > { %v2924_v35 = vpop.xlane.xlu0 %2923 }
0x19f4   : > { %10204 = vrcp.f32 %v2924_v35 }
0x19f7   : > { %v2928_v39 = vpop.permute.xlu0 %2927 }
0x19f8   : > { %9610 = vmatpush3.msra.mxu1 %v2928_v39 }
0x19f9   : > { %9619 = vmatprep.subr.mxu1 %v10391_v36 }
0x19fe   : > { %v10205_v31 = vpop.eup %10204 }
0x19ff   : > { %v2926_v41 = vmul.f32 %v10205_v31, %v10203_v33 }
0x1a01   : > { %9612 = vmatmul.mubr.msk.f32.vlgmr.msra.gmra.mrb[32].mxu1 %vm321_vm2, %v2926_v41 }
0x1a02   : > { %9620 = vmatpush3.xpose.msk.msra.mxu1 %vm321_vm2, %v3080_v40  ;;  %9621 = vmatprep.mubr.msk.f32.mxu1 %vm10392_vm1, %v10391_v36 }
0x1a03   : > { %9629 = vmatprep.subr.mxu1 %v10391_v36 }
0x1a05   : > { %9622 = vmatmul.mubr.msk.f32.vlgmr.msra.gmra.mrb[34].mxu1 %vm321_vm2, %v3078_v42 }
0x1a06   : > { %9631 = vmatprep.mubr.msk.f32.mxu1 %vm10392_vm1, %v10391_v36  ;;  %9630 = vmatpush3.msra.mxu1 %v10879_v2 }
0x1a07   : > { %9639 = vmatprep.subr.mxu1 %v10391_v36 }
0x1ad4   : > { %v2999_v44 = vpop.f32.mrb[32].mxu1 }
0x1ad5   : > { %v9613_v45 = vpop.f32.mrb[33].mxu1  ;;  %9617 = vmatmul.mubr.msk.f32.vlgmr.msra.gmra.mrb[34].mxu0 %vm321_vm2, %v2999_v44 }
0x1ad6   : > { %9626 = vmatprep.mubr.msk.f32.mxu0 %vm10392_vm1, %v10391_v36 }
0x1ad8   : > { %v3151_v46 = vpop.f32.mrb[34].mxu1 }
0x1ad9   : > { %v9623_v38 = vpop.f32.mrb[35].mxu1  ;;  %v3155_v49 = vsel %vm321_vm2, %v3151_v46, -inf }
0x1ada   : > { %3156 = vmax.xlane.f32.xlu0 %v3155_v49 }
0x1af0   : > { %3166 = vrot.lane.b32.xlu0 %v10766_v48, %s10403_s8 }
0x1af4   : > { %3482 = vrot.lane.b32.xlu0 %v10764_v47, %s10393_s18 }
0x1b67   : > { %v3157_v50 = vpop.xlane.xlu0 %3156 }
0x1b68   : > { %v3158_v51 = vsub.f32 %v3151_v46, %v3157_v50 }
0x1b6a   : > { %v3159_v52 = vmul.f32 1.442695, %v3158_v51 }
0x1b6b   : > { %v3167_v53 = vpop.permute.xlu0 %3166 }
0x1b6c   : > { %10206 = vpow2.f32 %v3159_v52  ;;  %9625 = vmatpush3.msra.mxu0 %v3167_v53 }
0x1b6d   : > { %9634 = vmatprep.subr.mxu0 %v10391_v36 }
0x1b6f   : > { %v3483_v0 = vpop.permute.xlu0 %3482 }
0x1b76   : > { %v10207_v54 = vpop.eup %10206 }
0x1b77   : > { %v3161_v56 = vsel %vm321_vm2, %v10207_v54, 0.0 }
0x1b78   : > { %3162 = vadd.xlane.f32.xlu1 %v3161_v56 }
0x1b89   : > { %3480 = vrot.lane.b32.xlu1 %v10764_v47, %s10395_s28 }
0x1ba8   : > { %v3072_v57 = vpop.f32.mrb[34].mxu0 }
0x1ba9   : > { %v3076_v48 = vadd.f32 %v3072_v57, %v2835_v25  ;;  %v9618_v58 = vpop.f32.mrb[35].mxu0 }
0x1c05   : > { %v3163_v60 = vpop.xlane.xlu1 %3162 }
0x1c06   : > { %10208 = vrcp.f32 %v3163_v60  ;;  %v9089_v60 = vld [vmem:[%s10506_s24 + $0xe5] ss:$0 sm:$0xff] }
0x1c09   : > { %v3481_v63 = vpop.permute.xlu1 %3480 }
0x1c10   : > { %v10209_v61 = vpop.eup %10208 }
0x1c11   : > { %v3165_v62 = vmul.f32 %v10209_v61, %v10207_v54 }
0x1c13   : > { %9627 = vmatmul.mubr.msk.f32.vlgmr.msra.gmra.mrb[36].mxu0 %vm321_vm2, %v3165_v62 }
0x1c14   : > { %9635 = vmatpush3.xpose.msk.msra.mxu0 %vm321_vm2, %v3318_v59  ;;  %9636 = vmatprep.mubr.msk.f32.mxu0 %vm10392_vm1, %v10391_v36 }
0x1c15   : > { %9644 = vmatprep.subr.mxu0 %v10391_v36 }
0x1c17   : > { %9637 = vmatmul.mubr.msk.f32.vlgmr.msra.gmra.mrb[38].mxu0 %vm321_vm2, %v10764_v47 }
0x1c18   : > { %9645 = vmatpush3.xpose.msk.msra.mxu0 %vm321_vm2, %v3483_v0  ;;  %9646 = vmatprep.mubr.msk.f32.mxu0 %vm10392_vm1, %v10391_v36 }
0x1c19   : > { %9654 = vmatprep.subr.mxu0 %v10391_v36 }
0x1c1b   : > { %9647 = vmatmul.mubr.msk.f32.vlgmr.msra.gmra.mrb[40].mxu0 %vm321_vm2, %v3481_v63 }
0x1c1c   : > { %9655 = vmatpush3.msra.mxu0 %v10798_v7  ;;  %9656 = vmatprep.mubr.msk.f32.mxu0 %vm10392_vm1, %v10391_v36 }
0x1c1d   : > { %9664 = vmatprep.subr.mxu0 %v10391_v36 }
0x1ce6   : > { %v3238_v3 = vpop.f32.mrb[36].mxu0 }
0x1ce7   : > { %v9628_v4 = vpop.f32.mrb[37].mxu0  ;;  %9632 = vmatmul.mubr.msk.f32.vlgmr.msra.gmra.mrb[36].mxu1 %vm321_vm2, %v3238_v3 }
0x1ce8   : > { %9641 = vmatprep.mubr.msk.f32.mxu1 %vm10392_vm1, %v10391_v36 }
0x1cea   : > { %v3389_v6 = vpop.f32.mrb[38].mxu0 }
0x1ceb   : > { %v9638_v7 = vpop.f32.mrb[39].mxu0  ;;  %v3393_v8 = vsel %vm321_vm2, %v3389_v6, -inf }
0x1cec   : > { %3394 = vmax.xlane.f32.xlu0 %v3393_v8 }
0x1cee   : > { %v3554_v9 = vpop.f32.mrb[40].mxu0 }
0x1cef   : > { %v9648_v10 = vpop.f32.mrb[41].mxu0  ;;  %v3558_v37 = vsel %vm321_vm2, %v3554_v9, -inf }
0x1cf0   : > { %3559 = vmax.xlane.f32.xlu1 %v3558_v37 }
0x1d01   : > { %3569 = vrot.lane.b32.xlu1 %v10764_v47, %s10399_s4 }
0x1d05   : > { %3793 = vrot.lane.b32.xlu1 %v10764_v47, %s10397_s30 }
0x1d09   : > { %3791 = vrot.lane.b32.xlu1 %v10764_v47, %s10398_s3 }
0x1d79   : > { %v3395_v11 = vpop.xlane.xlu0 %3394 }
0x1d7a   : > { %v3396_v12 = vsub.f32 %v3389_v6, %v3395_v11 }
0x1d7c   : > { %v3397_v13 = vmul.f32 1.442695, %v3396_v12 }
0x1d7d   : > { %v3560_v14 = vpop.xlane.xlu1 %3559 }
0x1d7e   : > { %10210 = vpow2.f32 %v3397_v13  ;;  %v3561_v17 = vsub.f32 %v3554_v9, %v3560_v14 }
0x1d80   : > { %v3562_v18 = vmul.f32 1.442695, %v3561_v17 }
0x1d81   : > { %v3570_v29 = vpop.permute.xlu1 %3569 }
0x1d82   : > { %10212 = vpow2.f32 %v3562_v18 }
0x1d85   : > { %v3794_v35 = vpop.permute.xlu1 %3793 }
0x1d88   : > { %v10211_v19 = vpop.eup %10210 }
0x1d89   : > { %v3399_v20 = vsel %vm321_vm2, %v10211_v19, 0.0 }
0x1d8a   : > { %3400 = vadd.xlane.f32.xlu0 %v3399_v20 }
0x1d8c   : > { %v10213_v21 = vpop.eup %10212 }
0x1d8d   : > { %v3564_v22 = vsel %vm321_vm2, %v10213_v21, 0.0 }
0x1d8e   : > { %3565 = vadd.xlane.f32.xlu0 %v3564_v22 }
0x1da4   : > { %3404 = vrot.lane.b32.xlu0 %v10764_v47, %s10396_s29 }
0x1dba   : > { %v3311_v23 = vpop.f32.mrb[36].mxu1 }
0x1dbb   : > { %v10898_v24 = vadd.f32 %v3311_v23, %v3076_v48  ;;  %v9633_v1 = vpop.f32.mrb[37].mxu1 }
0x1dbd   : > { %v4273_v62 = vadd.f32 %v9089_v60, %v10898_v24 }
0x1dbf   : > { %v10947_v3 = vadd.f32 %v4273_v62, %v10732_v55  ;;  %v4287_v62 = vld [vmem:[%s10506_s24 + $0xb8] sm:$0xff] }
0x1dc1   : > { %v4293_v6 = vsel %vm197_vm0, %v10947_v3, 0.0 }
0x1e17   : > { %v3401_v25 = vpop.xlane.xlu0 %3400 }
0x1e18   : > { %10214 = vrcp.f32 %v3401_v25 }
0x1e1b   : > { %v3566_v26 = vpop.xlane.xlu0 %3565 }
0x1e1c   : > { %10216 = vrcp.f32 %v3566_v26 }
0x1e1f   : > { %v3405_v27 = vpop.permute.xlu0 %3404 }
0x1e20   : > { %9640 = vmatpush3.msra.mxu1 %v3405_v27 }
0x1e21   : > { %9649 = vmatprep.subr.mxu1 %v10391_v36 }
0x1e22   : > { %v10215_v5 = vpop.eup %10214 }
0x1e23   : > { %v3403_v28 = vmul.f32 %v10215_v5, %v10211_v19 }
0x1e25   : > { %9642 = vmatmul.mubr.msk.f32.vlgmr.msra.gmra.mrb[38].mxu1 %vm321_vm2, %v3403_v28 }
0x1e26   : > { %v10217_v30 = vpop.eup %10216  ;;  %9650 = vmatpush3.msra.mxu1 %v3570_v29  ;;  %9651 = vmatprep.mubr.msk.f32.mxu1 %vm10392_vm1, %v10391_v36 }
0x1e27   : > { %v3568_v32 = vmul.f32 %v10217_v30, %v10213_v21  ;;  %9659 = vmatprep.subr.mxu1 %v10391_v36 }
0x1e29   : > { %9652 = vmatmul.mubr.msk.f32.vlgmr.msra.gmra.mrb[40].mxu1 %vm321_vm2, %v3568_v32 }
0x1e2a   : > { %9660 = vmatpush3.msra.mxu1 %v10811_v15  ;;  %9661 = vmatprep.mubr.msk.f32.mxu1 %vm10392_vm1, %v10391_v36  ;;  %v3792_v15 = vpop.permute.xlu1 %3791 }
0x1e2b   : > { %9669 = vmatprep.subr.mxu1 %v10391_v36 }
0x1ef8   : > { %v3476_v33 = vpop.f32.mrb[38].mxu1 }
0x1ef9   : > { %v9643_v34 = vpop.f32.mrb[39].mxu1  ;;  %9662 = vmatmul.mubr.msk.f32.vlgmr.msra.gmra.mrb[42].mxu1 %vm321_vm2, %v3476_v33 }
0x1efa   : > { %9671 = vmatprep.mubr.msk.f32.mxu1 %vm10392_vm1, %v10391_v36 }
0x1efc   : > { %v3641_v39 = vpop.f32.mrb[40].mxu1 }
0x1efd   : > { %v9653_v31 = vpop.f32.mrb[41].mxu1  ;;  %9657 = vmatmul.mubr.msk.f32.vlgmr.msra.gmra.mrb[42].mxu0 %vm321_vm2, %v3641_v39 }
0x1efe   : > { %9665 = vmatpush3.xpose.msk.msra.mxu0 %vm321_vm2, %v3794_v35  ;;  %9666 = vmatprep.mubr.msk.f32.mxu0 %vm10392_vm1, %v10391_v36 }
0x1eff   : > { %9674 = vmatprep.subr.mxu0 %v10391_v36 }
0x1f01   : > { %9667 = vmatmul.mubr.msk.f32.vlgmr.msra.gmra.mrb[44].mxu0 %vm321_vm2, %v3792_v15  ;;  %v9090_v15 = vld [vmem:[%s10506_s24 + $0xe6] ss:$0 sm:$0xff] }
0x1f02   : > { %9675 = vmatpush3.msra.mxu0 %v10846_v43  ;;  %9676 = vmatprep.mubr.msk.f32.mxu0 %vm10392_vm1, %v10391_v36 }
0x1f03   : > { %9684 = vmatprep.subr.mxu0 %v10391_v36 }
0x1fcc   : > { %v3787_v40 = vpop.f32.mrb[42].mxu1 }
0x1fcd   : > { %v9663_v41 = vpop.f32.mrb[43].mxu1 }
0x1fce   : > { %v9091_v41 = vld [vmem:[%s10506_s24 + $0xe7] ss:$0 sm:$0xff] }
0x1fd0   : > { %v3714_v42 = vpop.f32.mrb[42].mxu0 }
0x1fd1   : > { %v3788_v44 = vadd.f32 %v3787_v40, %v3714_v42  ;;  %v9658_v45 = vpop.f32.mrb[43].mxu0 }
0x1fd2   : > { %v4279_v45 = vld [vmem:[%s10506_s24 + $0x80] sm:$0xff] }
0x1fd4   : > { %v3865_v46 = vpop.f32.mrb[44].mxu0 }
0x1fd5   : > { %v9668_v38 = vpop.f32.mrb[45].mxu0  ;;  %v3869_v49 = vsel %vm321_vm2, %v3865_v46, -inf }
0x1fd6   : > { %3870 = vmax.xlane.f32.xlu0 %v3869_v49  ;;  %v4281_v49 = vld [vmem:[%s10506_s24 + $0x90] sm:$0xff] }
0x1fec   : > { %3880 = vrot.lane.b32.xlu0 %v10764_v47, %s10402_s7 }
0x1ff0   : > { %4030 = vrot.lane.b32.xlu0 %v10764_v47, %s10401_s6 }
0x2063   : > { %v3871_v43 = vpop.xlane.xlu0 %3870 }
0x2064   : > { %v3872_v50 = vsub.f32 %v3865_v46, %v3871_v43  ;;  %v4280_v46 = vld [vmem:[%s10506_s24 + $0x88] sm:$0xff]  ;;  %v4282_v43 = vld [vmem:[%s10506_s24 + $0x98] sm:$0xff] }
0x2065   : > { %v10032_v38 = vpack.c.bf16 %v4280_v46, %v4279_v45 }
0x2066   : > { %v3873_v51 = vmul.f32 1.442695, %v3872_v50  ;;  %v10036_v50 = vpack.c.bf16 %v4282_v43, %v4281_v49 }
0x2067   : > { %v3881_v52 = vpop.permute.xlu0 %3880 }
0x2068   : > { %10218 = vpow2.f32 %v3873_v51  ;;  %9670 = vmatpush3.msra.mxu1 %v3881_v52 }
0x2069   : > { %9679 = vmatprep.subr.mxu1 %v10391_v36 }
0x206b   : > { %v4031_v59 = vpop.permute.xlu0 %4030 }
0x2072   : > { %v10219_v53 = vpop.eup %10218 }
0x2073   : > { %v3875_v54 = vsel %vm321_vm2, %v10219_v53, 0.0 }
0x2074   : > { %3876 = vadd.xlane.f32.xlu1 %v3875_v54 }
0x2085   : > { %4032 = vrot.lane.b32.xlu1 %v10764_v47, %s10400_s5 }
0x2101   : > { %v3877_v56 = vpop.xlane.xlu1 %3876 }
0x2102   : > { %10220 = vrcp.f32 %v3877_v56 }
0x2105   : > { %v4033_v58 = vpop.permute.xlu1 %4032 }
0x210c   : > { %v10221_v57 = vpop.eup %10220 }
0x210d   : > { %v3879_v48 = vmul.f32 %v10221_v57, %v10219_v53 }
0x210f   : > { %9672 = vmatmul.mubr.msk.f32.vlgmr.msra.gmra.mrb[44].mxu1 %vm321_vm2, %v3879_v48 }
0x2110   : > { %9680 = vmatpush3.xpose.msk.msra.mxu1 %vm321_vm2, %v4033_v58  ;;  %9681 = vmatprep.mubr.msk.f32.mxu1 %vm10392_vm1, %v10391_v36  ;;  %v4284_v58 = vld [vmem:[%s10506_s24 + $0xa0] sm:$0xff] }
0x2111   : > { %9689 = vmatprep.subr.mxu1 %v10391_v36 }
0x2113   : > { %9682 = vmatmul.mubr.msk.f32.vlgmr.msra.gmra.mrb[46].mxu1 %vm321_vm2, %v4031_v59  ;;  %v4285_v59 = vld [vmem:[%s10506_s24 + $0xa8] sm:$0xff] }
0x2114   : > { %9690 = vmatpush3.msra.mxu1 %v10879_v2  ;;  %9691 = vmatprep.mubr.msk.f32.mxu1 %vm10392_vm1, %v10391_v36 }
0x21e2   : > { %v3952_v61 = vpop.f32.mrb[44].mxu1 }
0x21e3   : > { %v9673_v0 = vpop.f32.mrb[45].mxu1  ;;  %9677 = vmatmul.mubr.msk.f32.vlgmr.msra.gmra.mrb[46].mxu0 %vm321_vm2, %v3952_v61  ;;  %v4286_v61 = vld [vmem:[%s10506_s24 + $0xb0] sm:$0xff] }
0x21e4   : > { %9686 = vmatprep.mubr.msk.f32.mxu0 %vm10392_vm1, %v10391_v36  ;;  %v10044_v0 = vpack.c.bf16 %v4287_v62, %v4286_v61 }
0x21e6   : > { %v4104_v63 = vpop.f32.mrb[46].mxu1 }
0x21e7   : > { %v9683_v4 = vpop.f32.mrb[47].mxu1  ;;  %v4108_v2 = vsel %vm321_vm2, %v4104_v63, -inf }
0x21e8   : > { %4109 = vmax.xlane.f32.xlu1 %v4108_v2  ;;  %v4289_v4 = vld [vmem:[%s10506_s24 + $0xc8] sm:$0xff] }
0x21ec   : > { %4294 = vadd.xlane.f32.xlu1 %v4293_v6  ;;  %v4290_v6 = vld [vmem:[%s10506_s24 + $0xd0] sm:$0xff] }
0x2275   : > { %v4110_v7 = vpop.xlane.xlu1 %4109 }
0x2276   : > { %v4111_v8 = vsub.f32 %v4104_v63, %v4110_v7  ;;  %v4288_v63 = vld [vmem:[%s10506_s24 + $0xc0] sm:$0xff]  ;;  %v4291_v7 = vld [vmem:[%s10506_s24 + $0xd8] sm:$0xff] }
0x2277   : > { %v10048_v2 = vpack.c.bf16 %v4289_v4, %v4288_v63  ;;  %v9095_v4 = vld [vmem:[%s10506_s24 + $0xe9] ss:$0 sm:$0xff] }
0x2278   : > { %v4112_v9 = vmul.f32 1.442695, %v4111_v8  ;;  %v10052_v8 = vpack.c.bf16 %v4291_v7, %v4290_v6 }
0x2279   : > { %v4295_v21 = vpop.xlane.xlu1 %4294 }
0x227a   : > { %10222 = vpow2.f32 %v4112_v9  ;;  %v4299_v22 = vmul.f32 0.03125, %v4295_v21  ;;  %v9092_v9 = vld [vmem:[%s10506_s24 + $0xe8] ss:$0 sm:$0xff] }
0x227c   : > { %v4301_v1 = vsub.f32 %v10947_v3, %v4299_v22 }
0x227e   : > { %v4303_v5 = vmul.f32 %v4301_v1, %v4301_v1 }
0x2280   : > { %v4305_v28 = vsel %vm197_vm0, %v4303_v5, 0.0 }
0x2284   : > { %v10223_v10 = vpop.eup %10222 }
0x2285   : > { %v4114_v37 = vsel %vm321_vm2, %v10223_v10, 0.0 }
0x2286   : > { %4115 = vadd.xlane.f32.xlu0 %v4114_v37 }
0x229c   : > { %4119 = vrot.lane.b32.xlu0 %v10764_v47, %s10403_s8 }
0x22b6   : > { %v4025_v55 = vpop.f32.mrb[46].mxu0 }
0x22b7   : > { %v4029_v11 = vadd.f32 %v4025_v55, %v3788_v44  ;;  %v9678_v12 = vpop.f32.mrb[47].mxu0 }
0x2313   : > { %v4116_v13 = vpop.xlane.xlu0 %4115 }
0x2314   : > { %10224 = vrcp.f32 %v4116_v13 }
0x2317   : > { %v4120_v14 = vpop.permute.xlu0 %4119 }
0x2318   : > { %9685 = vmatpush3.msra.mxu0 %v4120_v14 }
0x2319   : > { %10033 = vmatprep.subr.bf16.mxu0 %v10032_v38 }
0x231e   : > { %v10225_v17 = vpop.eup %10224 }
0x231f   : > { %v4118_v18 = vmul.f32 %v10225_v17, %v10223_v10 }
0x2321   : > { %9687 = vmatmul.mubr.msk.f32.vlgmr.msra.gmra.mrb[48].mxu0 %vm321_vm2, %v4118_v18 }
0x2322   : > { %10035 = vmatpush3.bf16.msra.mxu0 %v10032_v38 }
0x2323   : > { %10037 = vmatprep.subr.bf16.mxu0 %v10036_v50 }
0x2326   : > { %10039 = vmatpush3.bf16.msra.mxu0 %v10036_v50 }
0x23f4   : > { %v4191_v19 = vpop.f32.mrb[48].mxu0 }
0x23f5   : > { %v9688_v20 = vpop.f32.mrb[49].mxu0  ;;  %9692 = vmatmul.mubr.msk.f32.vlgmr.msra.gmra.mrb[48].mxu1 %vm321_vm2, %v4191_v19 }
0x24c8   : > { %v4264_v23 = vpop.f32.mrb[48].mxu1 }
0x24c9   : > { %v4268_v24 = vadd.f32 %v4264_v23, %v4029_v11  ;;  %v9693_v47 = vpop.f32.mrb[49].mxu1 }
0x24cb   : > { %v4274_v25 = vadd.f32 %v9089_v60, %v4268_v24  ;;  %v10040_v60 = vpack.c.bf16 %v4285_v59, %v4284_v58 }
0x24cd   : > { %v10959_v26 = vadd.f32 %v4274_v25, %v10746_v16  ;;  %10041 = vmatprep.subr.bf16.mxu1 %v10040_v60 }
0x24ce   : > { %10043 = vmatpush3.bf16.msra.mxu1 %v10040_v60 }
0x24cf   : > { %v4296_v27 = vsel %vm197_vm0, %v10959_v26, 0.0  ;;  %10045 = vmatprep.subr.bf16.mxu1 %v10044_v0 }
0x24d0   : > { %4297 = vadd.xlane.f32.xlu1 %v4296_v27 }
0x24d2   : > { %10047 = vmatpush3.bf16.msra.mxu1 %v10044_v0 }
0x24d3   : > { %10049 = vmatprep.subr.bf16.mxu1 %v10048_v2 }
0x24d4   : > { %4306 = vadd.xlane.f32.xlu1 %v4305_v28 }
0x24d6   : > { %10051 = vmatpush3.bf16.msra.mxu1 %v10048_v2 }
0x24d7   : > { %10053 = vmatprep.subr.bf16.mxu1 %v10052_v8 }
0x24da   : > { %10055 = vmatpush3.bf16.msra.mxu1 %v10052_v8 }
0x24db   : > { %9740 = vmatprep.subr.mxu1 %v10391_v36 }
0x255d   : > { %v4298_v29 = vpop.xlane.xlu1 %4297 }
0x255e   : > { %v4300_v30 = vmul.f32 0.03125, %v4298_v29 }
0x2560   : > { %v4302_v32 = vsub.f32 %v10959_v26, %v4300_v30 }
0x2561   : > { %v4307_v33 = vpop.xlane.xlu1 %4306 }
0x2562   : > { %v4311_v34 = vmul.f32 0.03125, %v4307_v33  ;;  %v4304_v16 = vmul.f32 %v4302_v32, %v4302_v32 }
0x2564   : > { %v4313_v35 = vadd.f32 1e-05, %v4311_v34  ;;  %v4308_v39 = vsel %vm197_vm0, %v4304_v16, 0.0 }
0x2565   : > { %4309 = vadd.xlane.f32.xlu1 %v4308_v39 }
0x2566   : > { %10226 = vrsqrt.f32 %v4313_v35 }
0x2570   : > { %v10227_v31 = vpop.eup %10226 }
0x2571   : > { %v4317_v40 = vmul.f32 %v10227_v31, %v4301_v1 }
0x2573   : > { %v4323_v42 = vmul.f32 %v9090_v15, %v4317_v40 }
0x2575   : > { %v4329_v44 = vadd.f32 %v9091_v41, %v4323_v42 }
0x2577   : > { %9702 = vmatprep.mubr.msk.f32.mxu0 %vm197_vm0, %v4329_v44 }
0x25f2   : > { %v4310_v51 = vpop.xlane.xlu1 %4309 }
0x25f3   : > { %v4312_v52 = vmul.f32 0.03125, %v4310_v51 }
0x25f5   : > { %v4314_v53 = vadd.f32 1e-05, %v4312_v52 }
0x25f7   : > { %10228 = vrsqrt.f32 %v4314_v53  ;;  %v10404_v53 = vmov -1.0  }
0x2601   : > { %v10229_v54 = vpop.eup %10228 }
0x2602   : > { %v4318_v56 = vmul.f32 %v10229_v54, %v4302_v32 }
0x2604   : > { %v4324_v57 = vmul.f32 %v9090_v15, %v4318_v56 }
0x2606   : > { %v4330_v48 = vadd.f32 %v9091_v41, %v4324_v57 }
0x2608   : > { %9703 = vmatmul.mubr.msk.f32.vlgmr.msra.gmra.mrb[50].mxu0 %vm197_vm0, %v4330_v48 }
0x26db   : > { %v9704_v10 = vpop.f32.mrb[50].mxu0 }
0x26dc   : > { %v4413_v37 = vadd.f32 %v9704_v10, %v9092_v9  ;;  %v4407_v55 = vpop.f32.mrb[51].mxu0 }
0x26dd   : > { %v4408_v11 = vadd.f32 %v9092_v9, %v4407_v55 }
0x26de   : > { %v4419_v12 = vmul.f32 0.70710677, %v4413_v37  ;;  %v4417_v62 = vmul.f32 0.5, %v4413_v37 }
0x26df   : > { %v4418_v13 = vmul.f32 0.70710677, %v4408_v11  ;;  %v4416_v60 = vmul.f32 0.5, %v4408_v11 }
0x26e0   : > { %v4425_v14 = vand.u32 2147483647, %v4419_v12  ;;  %vm4421_vm3 = vcmp.ge.f32.partialorder %v4419_v12, 0.0 }
0x26e1   : > { %v4424_v17 = vand.u32 2147483647, %v4418_v13  ;;  %vm4420_vm4 = vcmp.ge.f32.partialorder %v4418_v13, 0.0  ;;  %v4423_v54 = vsel %vm4421_vm3, 1.0, %v10404_v53 }
0x26e2   : > { %v4427_v18 = vmul.f32 0.3275911, %v4425_v14  ;;  %v4453_v22 = vsub.f32 0.0, %v4425_v14  ;;  %v4422_v48 = vsel %vm4420_vm4, 1.0, %v10404_v53 }
0x26e3   : > { %v4426_v19 = vmul.f32 0.3275911, %v4424_v17  ;;  %v4452_v23 = vsub.f32 0.0, %v4424_v17 }
0x26e4   : > { %v4429_v20 = vadd.f32 1.0, %v4427_v18  ;;  %v4455_v47 = vmul.f32 %v4453_v22, %v4425_v14  ;;  %v4561_v22 = vld [vmem:[%s10506_s24 + $0xf8] sm:$0xff] }
0x26e5   : > { %v4428_v21 = vadd.f32 1.0, %v4426_v19  ;;  %v4454_v27 = vmul.f32 %v4452_v23, %v4424_v17 }
0x26e6   : > { %10230 = vrcp.f32 %v4429_v20  ;;  %v4458_v29 = vmul.f32 1.442695, %v4455_v47  ;;  %v4563_v47 = vld [vmem:[%s10506_s24 + $0x108] sm:$0xff] }
0x26e7   : > { %10232 = vrcp.f32 %v4428_v21  ;;  %v4456_v33 = vmul.f32 1.442695, %v4454_v27  ;;  %v4560_v21 = vld [vmem:[%s10506_s24 + $0xf0] sm:$0xff] }
0x26e8   : > { %10234 = vpow2.f32 %v4458_v29  ;;  %v10056_v23 = vpack.c.bf16 %v4561_v22, %v4560_v21 }
0x26e9   : > { %10236 = vpow2.f32 %v4456_v33  ;;  %v9098_v33 = vld [vmem:[%s10506_s24 + $0x1d0] ss:$0 sm:$0xff] }
0x26ea   : > { %10057 = vmatprep.subr.bf16.mxu0 %v10056_v23 }
0x26eb   : > { %10059 = vmatpush3.bf16.msra.mxu0 %v10056_v23 }
0x26f0   : > { %v10231_v24 = vpop.eup %10230 }
0x26f1   : > { %v10233_v1 = vpop.eup %10232  ;;  %v4435_v25 = vmul.f32 1.0614054, %v10231_v24 }
0x26f2   : > { %v4434_v5 = vmul.f32 1.0614054, %v10233_v1  ;;  %v10235_v38 = vpop.eup %10234 }
0x26f3   : > { %v4437_v28 = vadd.f32 -1.4531521, %v4435_v25  ;;  %v10237_v43 = vpop.eup %10236 }
0x26f4   : > { %v4436_v30 = vadd.f32 -1.4531521, %v4434_v5 }
0x26f5   : > { %v4439_v32 = vmul.f32 %v10231_v24, %v4437_v28 }
0x26f6   : > { %v4438_v34 = vmul.f32 %v10233_v1, %v4436_v30 }
0x26f7   : > { %v4441_v16 = vadd.f32 1.4214138, %v4439_v32 }
0x26f8   : > { %v4440_v35 = vadd.f32 1.4214138, %v4438_v34 }
0x26f9   : > { %v4443_v39 = vmul.f32 %v10231_v24, %v4441_v16  ;;  %v9099_v16 = vld [vmem:[%s10506_s24 + $0x1d1] ss:$0 sm:$0xff] }
0x26fa   : > { %v4442_v31 = vmul.f32 %v10233_v1, %v4440_v35 }
0x26fb   : > { %v4445_v15 = vadd.f32 -0.28449672, %v4443_v39 }
0x26fc   : > { %v4444_v40 = vadd.f32 -0.28449672, %v4442_v31 }
0x26fd   : > { %v4447_v41 = vmul.f32 %v10231_v24, %v4445_v15 }
0x26fe   : > { %v4446_v42 = vmul.f32 %v10233_v1, %v4444_v40 }
0x26ff   : > { %v4449_v44 = vadd.f32 0.2548296, %v4447_v41 }
0x2700   : > { %v4448_v45 = vadd.f32 0.2548296, %v4446_v42 }
0x2701   : > { %v4451_v46 = vmul.f32 %v10231_v24, %v4449_v44  ;;  %v4562_v24 = vld [vmem:[%s10506_s24 + $0x100] sm:$0xff] }
0x2702   : > { %v4450_v49 = vmul.f32 %v10233_v1, %v4448_v45  ;;  %v10060_v1 = vpack.c.bf16 %v4563_v47, %v4562_v24 }
0x2703   : > { %v4461_v50 = vmul.f32 %v10235_v38, %v4451_v46 }
0x2704   : > { %v4460_v51 = vmul.f32 %v10237_v43, %v4450_v49  ;;  %10061 = vmatprep.subr.bf16.mxu0 %v10060_v1 }
0x2705   : > { %v4463_v52 = vsub.f32 1.0, %v4461_v50  ;;  %10063 = vmatpush3.bf16.msra.mxu0 %v10060_v1 }
0x2706   : > { %v4462_v56 = vsub.f32 1.0, %v4460_v51  ;;  %9735 = vmatprep.subr.mxu0 %v10391_v36 }
0x2707   : > { %v4465_v57 = vmul.f32 %v4463_v52, %v4423_v54 }
0x2708   : > { %v4464_v58 = vmul.f32 %v4462_v56, %v4422_v48 }
0x2709   : > { %v4467_v59 = vadd.f32 1.0, %v4465_v57 }
0x270a   : > { %v4466_v61 = vadd.f32 1.0, %v4464_v58 }
0x270b   : > { %v4469_v63 = vmul.f32 %v4467_v59, %v4417_v62 }
0x270c   : > { %v4468_v0 = vmul.f32 %v4466_v61, %v4416_v60 }
0x270e   : > { %9721 = vmatprep.mubr.msk.f32.mxu1 %vm4474_vm5, %v4468_v0 }
0x270f   : > { %9722 = vmatmul.mubr.msk.f32.vlgmr.msra.gmra.mrb[50].mxu1 %vm4474_vm5, %v4469_v63 }
0x2710   : > { %9742 = vmatprep.mubr.msk.f32.mxu1 %vm10392_vm1, %v10391_v36 }
0x27e2   : > { %v9723_v2 = vpop.f32.mrb[50].mxu1 }
0x27e3   : > { %v4553_v6 = vadd.f32 %v9723_v2, %v9095_v4  ;;  %v4547_v7 = vpop.f32.mrb[51].mxu1 }
0x27e4   : > { %v4548_v8 = vadd.f32 %v9095_v4, %v4547_v7  ;;  %v11050_v4 = vld [vmem:[%s10506_s24 + $0x138] sm:$0xff] }
0x27e5   : > { %v10992_v9 = vadd.f32 %v4553_v6, %v10959_v26 }
0x27e6   : > { %v10995_v10 = vadd.f32 %v4548_v8, %v10947_v3 }
0x27e7   : > { %v4572_v37 = vsel %vm197_vm0, %v10992_v9, 0.0 }
0x27e8   : > { %4573 = vadd.xlane.f32.xlu0 %v4572_v37  ;;  %v4569_v55 = vsel %vm197_vm0, %v10995_v10, 0.0 }
0x27e9   : > { %4570 = vadd.xlane.f32.xlu1 %v4569_v55 }
0x2875   : > { %v4574_v11 = vpop.xlane.xlu0 %4573 }
0x2876   : > { %v4576_v12 = vmul.f32 0.03125, %v4574_v11  ;;  %v4571_v13 = vpop.xlane.xlu1 %4570 }
0x2877   : > { %v4575_v26 = vmul.f32 0.03125, %v4571_v13  ;;  %v11063_v13 = vld [vmem:[%s10506_s24 + $0x130] sm:$0xff] }
0x2878   : > { %v4578_v14 = vsub.f32 %v10992_v9, %v4576_v12 }
0x2879   : > { %v4577_v3 = vsub.f32 %v10995_v10, %v4575_v26 }
0x287a   : > { %v4580_v19 = vmul.f32 %v4578_v14, %v4578_v14 }
0x287b   : > { %v4579_v17 = vmul.f32 %v4577_v3, %v4577_v3 }
0x287c   : > { %v4584_v20 = vsel %vm197_vm0, %v4580_v19, 0.0 }
0x287d   : > { %v4581_v18 = vsel %vm197_vm0, %v4579_v17, 0.0 }
0x287e   : > { %4582 = vadd.xlane.f32.xlu1 %v4581_v18 }
0x2882   : > { %4585 = vadd.xlane.f32.xlu1 %v4584_v20 }
0x290b   : > { %v4583_v25 = vpop.xlane.xlu1 %4582 }
0x290c   : > { %v4587_v27 = vmul.f32 0.03125, %v4583_v25 }
0x290e   : > { %v4589_v5 = vadd.f32 1e-05, %v4587_v27 }
0x290f   : > { %v4586_v28 = vpop.xlane.xlu1 %4585 }
0x2910   : > { %10238 = vrsqrt.f32 %v4589_v5  ;;  %v4588_v29 = vmul.f32 0.03125, %v4586_v28 }
0x2912   : > { %v4590_v30 = vadd.f32 1e-05, %v4588_v29 }
0x2914   : > { %10240 = vrsqrt.f32 %v4590_v30 }
0x291a   : > { %v10239_v32 = vpop.eup %10238 }
0x291b   : > { %v4593_v34 = vmul.f32 %v10239_v32, %v4577_v3 }
0x291d   : > { %v4599_v35 = vmul.f32 %v9098_v33, %v4593_v34 }
0x291e   : > { %v10241_v39 = vpop.eup %10240 }
0x291f   : > { %v4594_v31 = vmul.f32 %v10241_v39, %v4578_v14  ;;  %v4605_v15 = vadd.f32 %v9099_v16, %v4599_v35 }
0x2921   : > { %v4600_v40 = vmul.f32 %v9098_v33, %v4594_v31  ;;  %9732 = vmatprep.mubr.msk.f32.mxu0 %vm197_vm0, %v4605_v15  ;;  %v11096_v31 = vld [vmem:[%s10506_s24 + $0x140] sm:$0xff] }
0x2923   : > { %v4606_v41 = vadd.f32 %v9099_v16, %v4600_v40 }
0x2925   : > { %9733 = vmatmul.mubr.msk.f32.vlgmr.msra.gmra.mrb[52].mxu0 %vm197_vm0, %v4606_v41 }
0x2926   : > { %9737 = vmatprep.mubr.msk.f32.mxu0 %vm10392_vm1, %v10391_v36 }
0x29f8   : > { %v11016_v42 = vpop.f32.mrb[52].mxu0 }
0x29f9   : > { %v11018_v44 = vpop.f32.mrb[53].mxu0 }
0x29fa   : > { %4852 = vrot.lane.b32.xlu0 %v11018_v44, %s10395_s28  ;;  %4689 = vrot.lane.b32.xlu1 %v11018_v44, %s10394_s27 }
0x29fe   : > { %4854 = vrot.lane.b32.xlu1 %v11018_v44, %s10393_s18 }
0x2a6c   : > { %v4690_v45 = vpop.permute.xlu1 %4689  ;;  %v4853_v38 = vpop.permute.xlu0 %4852 }
0x2a6d   : > { %9736 = vmatpush3.xpose.msk.msra.mxu0 %vm321_vm2, %v4690_v45 }
0x2a6e   : > { %9745 = vmatprep.subr.mxu0 %v10391_v36 }
0x2a70   : > { %9738 = vmatmul.mubr.msk.f32.vlgmr.msra.gmra.mrb[54].mxu0 %vm321_vm2, %v11018_v44  ;;  %v4855_v46 = vpop.permute.xlu1 %4854 }
0x2a71   : > { %9746 = vmatpush3.xpose.msk.msra.mxu0 %vm321_vm2, %v4855_v46  ;;  %9747 = vmatprep.mubr.msk.f32.mxu0 %vm10392_vm1, %v10391_v36 }
0x2a72   : > { %9755 = vmatprep.subr.mxu0 %v10391_v36 }
0x2a74   : > { %9748 = vmatmul.mubr.msk.f32.vlgmr.msra.gmra.mrb[56].mxu0 %vm321_vm2, %v4853_v38 }
0x2a75   : > { %9757 = vmatprep.mubr.msk.f32.mxu0 %vm10392_vm1, %v10391_v36  ;;  %9756 = vmatpush3.msra.mxu0 %v11050_v4 }
0x2a76   : > { %9765 = vmatprep.subr.mxu0 %v10391_v36 }
0x2b43   : > { %v4761_v49 = vpop.f32.mrb[54].mxu0 }
0x2b44   : > { %v9739_v43 = vpop.f32.mrb[55].mxu0  ;;  %v4765_v50 = vsel %vm321_vm2, %v4761_v49, -inf }
0x2b45   : > { %4766 = vmax.xlane.f32.xlu1 %v4765_v50 }
0x2b47   : > { %v4926_v51 = vpop.f32.mrb[56].mxu0 }
0x2b48   : > { %v9749_v52 = vpop.f32.mrb[57].mxu0  ;;  %v4930_v54 = vsel %vm321_vm2, %v4926_v51, -inf }
0x2b49   : > { %4931 = vmax.xlane.f32.xlu0 %v4930_v54 }
0x2b5f   : > { %4941 = vrot.lane.b32.xlu0 %v11018_v44, %s10399_s4 }
0x2bd2   : > { %v4767_v56 = vpop.xlane.xlu1 %4766 }
0x2bd3   : > { %v4768_v57 = vsub.f32 %v4761_v49, %v4767_v56 }
0x2bd5   : > { %v4769_v48 = vmul.f32 1.442695, %v4768_v57 }
0x2bd6   : > { %v4932_v58 = vpop.xlane.xlu0 %4931 }
0x2bd7   : > { %10242 = vpow2.f32 %v4769_v48  ;;  %v4933_v59 = vsub.f32 %v4926_v51, %v4932_v58 }
0x2bd9   : > { %v4934_v60 = vmul.f32 1.442695, %v4933_v59 }
0x2bda   : > { %v4942_v55 = vpop.permute.xlu0 %4941 }
0x2bdb   : > { %10244 = vpow2.f32 %v4934_v60 }
0x2be1   : > { %v10243_v61 = vpop.eup %10242 }
0x2be2   : > { %v4771_v62 = vsel %vm321_vm2, %v10243_v61, 0.0 }
0x2be3   : > { %4772 = vadd.xlane.f32.xlu1 %v4771_v62  ;;  %v11131_v62 = vld [vmem:[%s10506_s24 + $0x148] sm:$0xff] }
0x2be5   : > { %v10245_v0 = vpop.eup %10244 }
0x2be6   : > { %v4936_v63 = vsel %vm321_vm2, %v10245_v0, 0.0 }
0x2be7   : > { %4937 = vadd.xlane.f32.xlu1 %v4936_v63 }
0x2bf8   : > { %4776 = vrot.lane.b32.xlu1 %v11018_v44, %s10396_s29 }
0x2bfc   : > { %5165 = vrot.lane.b32.xlu1 %v11018_v44, %s10397_s30 }
0x2c00   : > { %5163 = vrot.lane.b32.xlu1 %v11018_v44, %s10398_s3 }
0x2c70   : > { %v4773_v2 = vpop.xlane.xlu1 %4772 }
0x2c71   : > { %10246 = vrcp.f32 %v4773_v2 }
0x2c74   : > { %v4938_v6 = vpop.xlane.xlu1 %4937 }
0x2c75   : > { %10248 = vrcp.f32 %v4938_v6 }
0x2c78   : > { %v4777_v7 = vpop.permute.xlu1 %4776 }
0x2c79   : > { %9741 = vmatpush3.msra.mxu1 %v4777_v7 }
0x2c7a   : > { %9750 = vmatprep.subr.mxu1 %v10391_v36 }
0x2c7b   : > { %v10247_v8 = vpop.eup %10246 }
0x2c7c   : > { %v4775_v37 = vmul.f32 %v10247_v8, %v10243_v61  ;;  %v5166_v3 = vpop.permute.xlu1 %5165 }
0x2c7e   : > { %9743 = vmatmul.mubr.msk.f32.vlgmr.msra.gmra.mrb[52].mxu1 %vm321_vm2, %v4775_v37 }
0x2c7f   : > { %v10249_v11 = vpop.eup %10248  ;;  %9751 = vmatpush3.msra.mxu1 %v4942_v55  ;;  %9752 = vmatprep.mubr.msk.f32.mxu1 %vm10392_vm1, %v10391_v36 }
0x2c80   : > { %v4940_v12 = vmul.f32 %v10249_v11, %v10245_v0  ;;  %9760 = vmatprep.subr.mxu1 %v10391_v36  ;;  %v5164_v19 = vpop.permute.xlu1 %5163 }
0x2c82   : > { %9753 = vmatmul.mubr.msk.f32.vlgmr.msra.gmra.mrb[54].mxu1 %vm321_vm2, %v4940_v12 }
0x2c83   : > { %9762 = vmatprep.mubr.msk.f32.mxu1 %vm10392_vm1, %v10391_v36  ;;  %9761 = vmatpush3.msra.mxu1 %v11063_v13 }
0x2c84   : > { %9770 = vmatprep.subr.mxu1 %v10391_v36 }
0x2d51   : > { %v4848_v26 = vpop.f32.mrb[52].mxu1 }
0x2d52   : > { %v9744_v14 = vpop.f32.mrb[53].mxu1  ;;  %9763 = vmatmul.mubr.msk.f32.vlgmr.msra.gmra.mrb[56].mxu1 %vm321_vm2, %v4848_v26 }
0x2d53   : > { %9772 = vmatprep.mubr.msk.f32.mxu1 %vm10392_vm1, %v10391_v36 }
0x2d55   : > { %v5013_v17 = vpop.f32.mrb[54].mxu1 }
0x2d56   : > { %v9754_v18 = vpop.f32.mrb[55].mxu1  ;;  %9758 = vmatmul.mubr.msk.f32.vlgmr.msra.gmra.mrb[58].mxu0 %vm321_vm2, %v5013_v17 }
0x2d57   : > { %9766 = vmatpush3.xpose.msk.msra.mxu0 %vm321_vm2, %v5166_v3  ;;  %9767 = vmatprep.mubr.msk.f32.mxu0 %vm10392_vm1, %v10391_v36 }
0x2d58   : > { %9775 = vmatprep.subr.mxu0 %v10391_v36 }
0x2d5a   : > { %9768 = vmatmul.mubr.msk.f32.vlgmr.msra.gmra.mrb[60].mxu0 %vm321_vm2, %v5164_v19 }
0x2d5b   : > { %9777 = vmatprep.mubr.msk.f32.mxu0 %vm10392_vm1, %v10391_v36  ;;  %9776 = vmatpush3.msra.mxu0 %v11096_v31 }
0x2d5c   : > { %9785 = vmatprep.subr.mxu0 %v10391_v36 }
0x2e25   : > { %v5159_v20 = vpop.f32.mrb[56].mxu1 }
0x2e26   : > { %v9764_v21 = vpop.f32.mrb[57].mxu1 }
0x2e29   : > { %v5086_v22 = vpop.f32.mrb[58].mxu0 }
0x2e2a   : > { %v5160_v23 = vadd.f32 %v5159_v20, %v5086_v22  ;;  %v9759_v24 = vpop.f32.mrb[59].mxu0 }
0x2e2d   : > { %v5237_v47 = vpop.f32.mrb[60].mxu0 }
0x2e2e   : > { %v9769_v1 = vpop.f32.mrb[61].mxu0  ;;  %v5241_v25 = vsel %vm321_vm2, %v5237_v47, -inf }
0x2e2f   : > { %5242 = vmax.xlane.f32.xlu1 %v5241_v25 }
0x2e40   : > { %5252 = vrot.lane.b32.xlu1 %v11018_v44, %s10402_s7 }
0x2e44   : > { %5402 = vrot.lane.b32.xlu1 %v11018_v44, %s10401_s6 }
0x2ebc   : > { %v5243_v27 = vpop.xlane.xlu1 %5242 }
0x2ebd   : > { %v5244_v5 = vsub.f32 %v5237_v47, %v5243_v27 }
0x2ebf   : > { %v5245_v28 = vmul.f32 1.442695, %v5244_v5 }
0x2ec0   : > { %v5253_v29 = vpop.permute.xlu1 %5252 }
0x2ec1   : > { %10250 = vpow2.f32 %v5245_v28  ;;  %9771 = vmatpush3.msra.mxu1 %v5253_v29 }
0x2ec2   : > { %9780 = vmatprep.subr.mxu1 %v10391_v36 }
0x2ec4   : > { %v5403_v39 = vpop.permute.xlu1 %5402 }
0x2ecb   : > { %v10251_v30 = vpop.eup %10250 }
0x2ecc   : > { %v5247_v32 = vsel %vm321_vm2, %v10251_v30, 0.0 }
0x2ecd   : > { %5248 = vadd.xlane.f32.xlu0 %v5247_v32 }
0x2ee3   : > { %5404 = vrot.lane.b32.xlu0 %v11018_v44, %s10400_s5 }
0x2f5a   : > { %v5249_v33 = vpop.xlane.xlu0 %5248 }
0x2f5b   : > { %10252 = vrcp.f32 %v5249_v33 }
0x2f5e   : > { %v5405_v35 = vpop.permute.xlu0 %5404 }
0x2f65   : > { %v10253_v34 = vpop.eup %10252 }
0x2f66   : > { %v5251_v16 = vmul.f32 %v10253_v34, %v10251_v30 }
0x2f68   : > { %9773 = vmatmul.mubr.msk.f32.vlgmr.msra.gmra.mrb[58].mxu1 %vm321_vm2, %v5251_v16 }
0x2f69   : > { %9781 = vmatpush3.xpose.msk.msra.mxu1 %vm321_vm2, %v5405_v35  ;;  %9782 = vmatprep.mubr.msk.f32.mxu1 %vm10392_vm1, %v10391_v36 }
0x2f6a   : > { %9790 = vmatprep.subr.mxu1 %v10391_v36 }
0x2f6c   : > { %9783 = vmatmul.mubr.msk.f32.vlgmr.msra.gmra.mrb[60].mxu1 %vm321_vm2, %v5403_v39 }
0x2f6d   : > { %9792 = vmatprep.mubr.msk.f32.mxu1 %vm10392_vm1, %v10391_v36  ;;  %9791 = vmatpush3.msra.mxu1 %v11131_v62 }
0x2f6e   : > { %9800 = vmatprep.subr.mxu1 %v10391_v36 }
0x303b   : > { %v5324_v15 = vpop.f32.mrb[58].mxu1 }
0x303c   : > { %v9774_v40 = vpop.f32.mrb[59].mxu1  ;;  %9778 = vmatmul.mubr.msk.f32.vlgmr.msra.gmra.mrb[62].mxu0 %vm321_vm2, %v5324_v15 }
0x303d   : > { %9787 = vmatprep.mubr.msk.f32.mxu0 %vm10392_vm1, %v10391_v36 }
0x303f   : > { %v5476_v41 = vpop.f32.mrb[60].mxu1 }
0x3040   : > { %v9784_v45 = vpop.f32.mrb[61].mxu1  ;;  %v5480_v46 = vsel %vm321_vm2, %v5476_v41, -inf }
0x3041   : > { %5481 = vmax.xlane.f32.xlu1 %v5480_v46 }
0x3052   : > { %5642 = vrot.lane.b32.xlu1 %v11016_v42, %s10394_s27 }
0x3056   : > { %5807 = vrot.lane.b32.xlu1 %v11016_v42, %s10393_s18 }
0x30ce   : > { %v5482_v38 = vpop.xlane.xlu1 %5481 }
0x30cf   : > { %v5483_v49 = vsub.f32 %v5476_v41, %v5482_v38 }
0x30d1   : > { %v5484_v43 = vmul.f32 1.442695, %v5483_v49 }
0x30d2   : > { %v5643_v59 = vpop.permute.xlu1 %5642 }
0x30d3   : > { %10254 = vpow2.f32 %v5484_v43 }
0x30dd   : > { %v10255_v50 = vpop.eup %10254 }
0x30de   : > { %v5486_v51 = vsel %vm321_vm2, %v10255_v50, 0.0 }
0x30df   : > { %5487 = vadd.xlane.f32.xlu0 %v5486_v51 }
0x30f5   : > { %5491 = vrot.lane.b32.xlu0 %v11018_v44, %s10403_s8  ;;  %v5808_v44 = vpop.permute.xlu1 %5807 }
0x30f9   : > { %5805 = vrot.lane.b32.xlu0 %v11016_v42, %s10395_s28 }
0x310f   : > { %v5397_v52 = vpop.f32.mrb[62].mxu0 }
0x3110   : > { %v5401_v54 = vadd.f32 %v5397_v52, %v5160_v23  ;;  %v9779_v56 = vpop.f32.mrb[63].mxu0 }
0x316c   : > { %v5488_v57 = vpop.xlane.xlu0 %5487 }
0x316d   : > { %10256 = vrcp.f32 %v5488_v57 }
0x3170   : > { %v5492_v48 = vpop.permute.xlu0 %5491 }
0x3171   : > { %9786 = vmatpush3.msra.mxu0 %v5492_v48 }
0x3172   : > { %9795 = vmatprep.subr.mxu0 %v10391_v36 }
0x3174   : > { %v5806_v61 = vpop.permute.xlu0 %5805 }
0x3177   : > { %v10257_v58 = vpop.eup %10256 }
0x3178   : > { %v5490_v60 = vmul.f32 %v10257_v58, %v10255_v50 }
0x317a   : > { %9788 = vmatmul.mubr.msk.f32.vlgmr.msra.gmra.mrb[64].mxu0 %vm321_vm2, %v5490_v60 }
0x317b   : > { %9796 = vmatpush3.xpose.msk.msra.mxu0 %vm321_vm2, %v5643_v59  ;;  %9797 = vmatprep.mubr.msk.f32.mxu0 %vm10392_vm1, %v10391_v36 }
0x317c   : > { %9805 = vmatprep.subr.mxu0 %v10391_v36 }
0x317e   : > { %9798 = vmatmul.mubr.msk.f32.vlgmr.msra.gmra.mrb[66].mxu0 %vm321_vm2, %v11016_v42 }
0x317f   : > { %9806 = vmatpush3.xpose.msk.msra.mxu0 %vm321_vm2, %v5808_v44  ;;  %9807 = vmatprep.mubr.msk.f32.mxu0 %vm10392_vm1, %v10391_v36 }
0x3180   : > { %9815 = vmatprep.subr.mxu0 %v10391_v36 }
0x3182   : > { %9808 = vmatmul.mubr.msk.f32.vlgmr.msra.gmra.mrb[68].mxu0 %vm321_vm2, %v5806_v61 }
0x3183   : > { %9816 = vmatpush3.msra.mxu0 %v11050_v4  ;;  %9817 = vmatprep.mubr.msk.f32.mxu0 %vm10392_vm1, %v10391_v36 }
0x3184   : > { %9825 = vmatprep.subr.mxu0 %v10391_v36 }
0x324d   : > { %v5563_v0 = vpop.f32.mrb[64].mxu0 }
0x324e   : > { %v9789_v63 = vpop.f32.mrb[65].mxu0  ;;  %9793 = vmatmul.mubr.msk.f32.vlgmr.msra.gmra.mrb[62].mxu1 %vm321_vm2, %v5563_v0 }
0x324f   : > { %9802 = vmatprep.mubr.msk.f32.mxu1 %vm10392_vm1, %v10391_v36 }
0x3251   : > { %v5714_v2 = vpop.f32.mrb[66].mxu0 }
0x3252   : > { %v9799_v4 = vpop.f32.mrb[67].mxu0  ;;  %v5718_v6 = vsel %vm321_vm2, %v5714_v2, -inf }
0x3253   : > { %5719 = vmax.xlane.f32.xlu1 %v5718_v6  ;;  %v9134_v6 = vld [vmem:[%s10506_s24 + $0x1d2] ss:$0 sm:$0xff] }
0x3255   : > { %v5879_v7 = vpop.f32.mrb[68].mxu0 }
0x3256   : > { %v9809_v8 = vpop.f32.mrb[69].mxu0  ;;  %v5883_v37 = vsel %vm321_vm2, %v5879_v7, -inf }
0x3257   : > { %5884 = vmax.xlane.f32.xlu0 %v5883_v37 }
0x32e0   : > { %v5720_v55 = vpop.xlane.xlu1 %5719 }
0x32e1   : > { %v5721_v11 = vsub.f32 %v5714_v2, %v5720_v55 }
0x32e3   : > { %v5722_v12 = vmul.f32 1.442695, %v5721_v11 }
0x32e4   : > { %v5885_v26 = vpop.xlane.xlu0 %5884 }
0x32e5   : > { %10258 = vpow2.f32 %v5722_v12  ;;  %v5886_v14 = vsub.f32 %v5879_v7, %v5885_v26 }
0x32e7   : > { %v5887_v3 = vmul.f32 1.442695, %v5886_v14 }
0x32e9   : > { %10260 = vpow2.f32 %v5887_v3 }
0x32ef   : > { %v10259_v17 = vpop.eup %10258 }
0x32f0   : > { %v5724_v18 = vsel %vm321_vm2, %v10259_v17, 0.0 }
0x32f1   : > { %5725 = vadd.xlane.f32.xlu0 %v5724_v18 }
0x32f3   : > { %v10261_v19 = vpop.eup %10260 }
0x32f4   : > { %v5889_v20 = vsel %vm321_vm2, %v10261_v19, 0.0 }
0x32f5   : > { %5890 = vadd.xlane.f32.xlu1 %v5889_v20 }
0x3306   : > { %5894 = vrot.lane.b32.xlu1 %v11016_v42, %s10399_s4 }
0x3307   : > { %5729 = vrot.lane.b32.xlu0 %v11016_v42, %s10396_s29 }
0x330a   : > { %6118 = vrot.lane.b32.xlu1 %v11016_v42, %s10397_s30 }
0x330b   : > { %6116 = vrot.lane.b32.xlu0 %v11016_v42, %s10398_s3 }
0x3321   : > { %v5636_v21 = vpop.f32.mrb[62].mxu1 }
0x3322   : > { %v11150_v22 = vadd.f32 %v5636_v21, %v5401_v54  ;;  %v9794_v23 = vpop.f32.mrb[63].mxu1 }
0x3324   : > { %v6598_v7 = vadd.f32 %v9134_v6, %v11150_v22 }
0x3326   : > { %v11203_v37 = vadd.f32 %v6598_v7, %v10995_v10 }
0x3328   : > { %v6613_v11 = vsel %vm197_vm0, %v11203_v37, 0.0 }
0x337e   : > { %v5726_v24 = vpop.xlane.xlu0 %5725 }
0x337f   : > { %10262 = vrcp.f32 %v5726_v24 }
0x3382   : > { %v5891_v47 = vpop.xlane.xlu1 %5890  ;;  %v5730_v1 = vpop.permute.xlu0 %5729 }
0x3383   : > { %10264 = vrcp.f32 %v5891_v47  ;;  %9801 = vmatpush3.msra.mxu1 %v5730_v1 }
0x3384   : > { %9810 = vmatprep.subr.mxu1 %v10391_v36 }
0x3386   : > { %v5895_v5 = vpop.permute.xlu1 %5894 }
0x3389   : > { %v10263_v25 = vpop.eup %10262 }
0x338a   : > { %v5728_v27 = vmul.f32 %v10263_v25, %v10259_v17  ;;  %v6119_v34 = vpop.permute.xlu1 %6118 }
0x338c   : > { %9803 = vmatmul.mubr.msk.f32.vlgmr.msra.gmra.mrb[64].mxu1 %vm321_vm2, %v5728_v27 }
0x338d   : > { %v10265_v28 = vpop.eup %10264  ;;  %9811 = vmatpush3.msra.mxu1 %v5895_v5  ;;  %9812 = vmatprep.mubr.msk.f32.mxu1 %vm10392_vm1, %v10391_v36 }
0x338e   : > { %v5893_v29 = vmul.f32 %v10265_v28, %v10261_v19  ;;  %9820 = vmatprep.subr.mxu1 %v10391_v36 }
0x3390   : > { %9813 = vmatmul.mubr.msk.f32.vlgmr.msra.gmra.mrb[66].mxu1 %vm321_vm2, %v5893_v29 }
0x3391   : > { %9821 = vmatpush3.msra.mxu1 %v11063_v13  ;;  %9822 = vmatprep.mubr.msk.f32.mxu1 %vm10392_vm1, %v10391_v36  ;;  %v6117_v13 = vpop.permute.xlu0 %6116 }
0x3392   : > { %9830 = vmatprep.subr.mxu1 %v10391_v36 }
0x345f   : > { %v5801_v30 = vpop.f32.mrb[64].mxu1 }
0x3460   : > { %v9804_v32 = vpop.f32.mrb[65].mxu1  ;;  %9823 = vmatmul.mubr.msk.f32.vlgmr.msra.gmra.mrb[68].mxu1 %vm321_vm2, %v5801_v30 }
0x3461   : > { %9832 = vmatprep.mubr.msk.f32.mxu1 %vm10392_vm1, %v10391_v36 }
0x3463   : > { %v5966_v33 = vpop.f32.mrb[66].mxu1 }
0x3464   : > { %v9814_v16 = vpop.f32.mrb[67].mxu1  ;;  %9818 = vmatmul.mubr.msk.f32.vlgmr.msra.gmra.mrb[70].mxu0 %vm321_vm2, %v5966_v33 }
0x3465   : > { %9826 = vmatpush3.xpose.msk.msra.mxu0 %vm321_vm2, %v6119_v34  ;;  %9827 = vmatprep.mubr.msk.f32.mxu0 %vm10392_vm1, %v10391_v36 }
0x3466   : > { %9835 = vmatprep.subr.mxu0 %v10391_v36 }
0x3468   : > { %9828 = vmatmul.mubr.msk.f32.vlgmr.msra.gmra.mrb[72].mxu0 %vm321_vm2, %v6117_v13 }
0x3469   : > { %9836 = vmatpush3.msra.mxu0 %v11096_v31  ;;  %9837 = vmatprep.mubr.msk.f32.mxu0 %vm10392_vm1, %v10391_v36 }
0x346a   : > { %9845 = vmatprep.subr.mxu0 %v10391_v36 }
0x3533   : > { %v6112_v35 = vpop.f32.mrb[68].mxu1 }
0x3534   : > { %v9824_v39 = vpop.f32.mrb[69].mxu1 }
0x3537   : > { %v6039_v15 = vpop.f32.mrb[70].mxu0 }
0x3538   : > { %v6113_v40 = vadd.f32 %v6112_v35, %v6039_v15  ;;  %v9819_v41 = vpop.f32.mrb[71].mxu0  ;;  %v9135_v35 = vld [vmem:[%s10506_s24 + $0x1d3] ss:$0 sm:$0xff]  ;;  %v9136_v15 = vld [vmem:[%s10506_s24 + $0x1d4] ss:$0 sm:$0xff] }
0x353b   : > { %v6190_v45 = vpop.f32.mrb[72].mxu0 }
0x353c   : > { %v9829_v46 = vpop.f32.mrb[73].mxu0  ;;  %v6194_v38 = vsel %vm321_vm2, %v6190_v45, -inf }
0x353d   : > { %6195 = vmax.xlane.f32.xlu1 %v6194_v38  ;;  %v6605_v46 = vld [vmem:[%s10506_s24 + $0x118] sm:$0xff] }
0x354e   : > { %6357 = vrot.lane.b32.xlu1 %v11016_v42, %s10400_s5 }
0x3552   : > { %6355 = vrot.lane.b32.xlu1 %v11016_v42, %s10401_s6 }
0x35ca   : > { %v6196_v31 = vpop.xlane.xlu1 %6195 }
0x35cb   : > { %v6197_v49 = vsub.f32 %v6190_v45, %v6196_v31  ;;  %v6604_v45 = vld [vmem:[%s10506_s24 + $0x110] sm:$0xff]  ;;  %v6606_v31 = vld [vmem:[%s10506_s24 + $0x120] sm:$0xff] }
0x35cc   : > { %v10064_v38 = vpack.c.bf16 %v6605_v46, %v6604_v45 }
0x35cd   : > { %v6198_v43 = vmul.f32 1.442695, %v6197_v49  ;;  %v6607_v49 = vld [vmem:[%s10506_s24 + $0x128] sm:$0xff] }
0x35ce   : > { %v6358_v57 = vpop.permute.xlu1 %6357 }
0x35cf   : > { %10266 = vpow2.f32 %v6198_v43  ;;  %v10068_v43 = vpack.c.bf16 %v6607_v49, %v6606_v31 }
0x35d2   : > { %v6356_v58 = vpop.permute.xlu1 %6355 }
0x35d9   : > { %v10267_v50 = vpop.eup %10266 }
0x35da   : > { %v6200_v51 = vsel %vm321_vm2, %v10267_v50, 0.0 }
0x35db   : > { %6201 = vadd.xlane.f32.xlu0 %v6200_v51 }
0x35f1   : > { %6205 = vrot.lane.b32.xlu0 %v11016_v42, %s10402_s7 }
0x3668   : > { %v6202_v52 = vpop.xlane.xlu0 %6201 }
0x3669   : > { %10268 = vrcp.f32 %v6202_v52 }
0x366c   : > { %v6206_v54 = vpop.permute.xlu0 %6205 }
0x366d   : > { %9831 = vmatpush3.msra.mxu1 %v6206_v54 }
0x366e   : > { %9840 = vmatprep.subr.mxu1 %v10391_v36 }
0x3673   : > { %v10269_v56 = vpop.eup %10268 }
0x3674   : > { %v6204_v48 = vmul.f32 %v10269_v56, %v10267_v50 }
0x3676   : > { %9833 = vmatmul.mubr.msk.f32.vlgmr.msra.gmra.mrb[70].mxu1 %vm321_vm2, %v6204_v48 }
0x3677   : > { %9841 = vmatpush3.xpose.msk.msra.mxu1 %vm321_vm2, %v6358_v57  ;;  %9842 = vmatprep.mubr.msk.f32.mxu1 %vm10392_vm1, %v10391_v36 }
0x3678   : > { %9850 = vmatprep.subr.mxu1 %v10391_v36 }
0x367a   : > { %9843 = vmatmul.mubr.msk.f32.vlgmr.msra.gmra.mrb[72].mxu1 %vm321_vm2, %v6356_v58 }
0x367b   : > { %9851 = vmatpush3.msra.mxu1 %v11131_v62  ;;  %9852 = vmatprep.mubr.msk.f32.mxu1 %vm10392_vm1, %v10391_v36 }
0x367c   : > { %9866 = vmatprep.subr.mxu1 %v10391_v36 }
0x3749   : > { %v6277_v59 = vpop.f32.mrb[70].mxu1 }
0x374a   : > { %v9834_v60 = vpop.f32.mrb[71].mxu1  ;;  %9838 = vmatmul.mubr.msk.f32.vlgmr.msra.gmra.mrb[74].mxu0 %vm321_vm2, %v6277_v59 }
0x374b   : > { %9847 = vmatprep.mubr.msk.f32.mxu0 %vm10392_vm1, %v10391_v36 }
0x374d   : > { %v6429_v44 = vpop.f32.mrb[72].mxu1 }
0x374e   : > { %v9844_v61 = vpop.f32.mrb[73].mxu1  ;;  %v6433_v0 = vsel %vm321_vm2, %v6429_v44, -inf }
0x374f   : > { %6434 = vmax.xlane.f32.xlu0 %v6433_v0 }
0x3765   : > { %6444 = vrot.lane.b32.xlu0 %v11016_v42, %s10403_s8 }
0x37dc   : > { %v6435_v62 = vpop.xlane.xlu0 %6434 }
0x37dd   : > { %v6436_v63 = vsub.f32 %v6429_v44, %v6435_v62 }
0x37df   : > { %v6437_v2 = vmul.f32 1.442695, %v6436_v63 }
0x37e0   : > { %v6445_v4 = vpop.permute.xlu0 %6444 }
0x37e1   : > { %10270 = vpow2.f32 %v6437_v2  ;;  %9846 = vmatpush3.msra.mxu0 %v6445_v4 }
0x37e2   : > { %10065 = vmatprep.subr.bf16.mxu0 %v10064_v38 }
0x37eb   : > { %v10271_v8 = vpop.eup %10270 }
0x37ec   : > { %v6439_v55 = vsel %vm321_vm2, %v10271_v8, 0.0 }
0x37ed   : > { %6440 = vadd.xlane.f32.xlu1 %v6439_v55 }
0x37f1   : > { %6614 = vadd.xlane.f32.xlu1 %v6613_v11 }
0x381d   : > { %v6350_v42 = vpop.f32.mrb[74].mxu0 }
0x381e   : > { %v6354_v12 = vadd.f32 %v6350_v42, %v6113_v40  ;;  %v9839_v26 = vpop.f32.mrb[75].mxu0 }
0x387a   : > { %v6441_v14 = vpop.xlane.xlu1 %6440 }
0x387b   : > { %10272 = vrcp.f32 %v6441_v14 }
0x387e   : > { %v6615_v10 = vpop.xlane.xlu1 %6614 }
0x387f   : > { %v6619_v20 = vmul.f32 0.03125, %v6615_v10 }
0x3881   : > { %v6621_v24 = vsub.f32 %v11203_v37, %v6619_v20 }
0x3883   : > { %v6623_v27 = vmul.f32 %v6621_v24, %v6621_v24 }
0x3885   : > { %v10273_v3 = vpop.eup %10272  ;;  %v6625_v5 = vsel %vm197_vm0, %v6623_v27, 0.0 }
0x3886   : > { %v6443_v17 = vmul.f32 %v10273_v3, %v10271_v8 }
0x3888   : > { %9848 = vmatmul.mubr.msk.f32.vlgmr.msra.gmra.mrb[76].mxu0 %vm321_vm2, %v6443_v17 }
0x3889   : > { %10067 = vmatpush3.bf16.msra.mxu0 %v10064_v38 }
0x388a   : > { %10069 = vmatprep.subr.bf16.mxu0 %v10068_v43 }
0x388d   : > { %10071 = vmatpush3.bf16.msra.mxu0 %v10068_v43 }
0x388e   : > { %9876 = vmatprep.subr.mxu0 %v10391_v36 }
0x395b   : > { %v6516_v18 = vpop.f32.mrb[76].mxu0 }
0x395c   : > { %v9849_v19 = vpop.f32.mrb[77].mxu0  ;;  %9853 = vmatmul.mubr.msk.f32.vlgmr.msra.gmra.mrb[74].mxu1 %vm321_vm2, %v6516_v18  ;;  %v11266_v18 = vld [vmem:[%s10506_s24 + $0x158] sm:$0xff] }
0x395d   : > { %9868 = vmatprep.mubr.msk.f32.mxu1 %vm10392_vm1, %v10391_v36 }
0x3a2f   : > { %v6589_v21 = vpop.f32.mrb[74].mxu1 }
0x3a30   : > { %v6593_v22 = vadd.f32 %v6589_v21, %v6354_v12  ;;  %v9854_v23 = vpop.f32.mrb[75].mxu1 }
0x3a32   : > { %v6599_v47 = vadd.f32 %v9134_v6, %v6593_v22 }
0x3a34   : > { %v11214_v1 = vadd.f32 %v6599_v47, %v10992_v9 }
0x3a36   : > { %v6616_v25 = vsel %vm197_vm0, %v11214_v1, 0.0 }
0x3a37   : > { %6617 = vadd.xlane.f32.xlu1 %v6616_v25  ;;  %v11279_v25 = vld [vmem:[%s10506_s24 + $0x150] sm:$0xff] }
0x3a3b   : > { %6626 = vadd.xlane.f32.xlu1 %v6625_v5 }
0x3ac4   : > { %v6618_v28 = vpop.xlane.xlu1 %6617 }
0x3ac5   : > { %v6620_v29 = vmul.f32 0.03125, %v6618_v28 }
0x3ac7   : > { %v6622_v30 = vsub.f32 %v11214_v1, %v6620_v29 }
0x3ac8   : > { %v6627_v32 = vpop.xlane.xlu1 %6626 }
0x3ac9   : > { %v6631_v33 = vmul.f32 0.03125, %v6627_v32  ;;  %v6624_v9 = vmul.f32 %v6622_v30, %v6622_v30 }
0x3acb   : > { %v6633_v34 = vadd.f32 1e-05, %v6631_v33  ;;  %v6628_v16 = vsel %vm197_vm0, %v6624_v9, 0.0 }
0x3acc   : > { %6629 = vadd.xlane.f32.xlu1 %v6628_v16 }
0x3acd   : > { %10274 = vrsqrt.f32 %v6633_v34 }
0x3ad7   : > { %v10275_v13 = vpop.eup %10274 }
0x3ad8   : > { %v6637_v39 = vmul.f32 %v10275_v13, %v6621_v24 }
0x3ada   : > { %v6643_v40 = vmul.f32 %v9135_v35, %v6637_v39 }
0x3adc   : > { %v6649_v41 = vadd.f32 %v9136_v15, %v6643_v40 }
0x3ade   : > { %9863 = vmatprep.mubr.msk.f32.mxu0 %vm197_vm0, %v6649_v41 }
0x3b59   : > { %v6630_v50 = vpop.xlane.xlu1 %6629 }
0x3b5a   : > { %v6632_v51 = vmul.f32 0.03125, %v6630_v50 }
0x3b5c   : > { %v6634_v52 = vadd.f32 1e-05, %v6632_v51 }
0x3b5e   : > { %10276 = vrsqrt.f32 %v6634_v52 }
0x3b68   : > { %v10277_v54 = vpop.eup %10276 }
0x3b69   : > { %v6638_v56 = vmul.f32 %v10277_v54, %v6622_v30  ;;  %v11312_v54 = vld [vmem:[%s10506_s24 + $0x160] sm:$0xff] }
0x3b6b   : > { %v6644_v57 = vmul.f32 %v9135_v35, %v6638_v56 }
0x3b6d   : > { %v6650_v48 = vadd.f32 %v9136_v15, %v6644_v57 }
0x3b6f   : > { %9864 = vmatmul.mubr.msk.f32.vlgmr.msra.gmra.mrb[78].mxu0 %vm197_vm0, %v6650_v48 }
0x3b70   : > { %9878 = vmatprep.mubr.msk.f32.mxu0 %vm10392_vm1, %v10391_v36 }
0x3c42   : > { %v11232_v58 = vpop.f32.mrb[78].mxu0 }
0x3c43   : > { %v11234_v59 = vpop.f32.mrb[79].mxu0 }
0x3c44   : > { %6898 = vrot.lane.b32.xlu1 %v11234_v59, %s10393_s18  ;;  %6733 = vrot.lane.b32.xlu0 %v11234_v59, %s10394_s27 }
0x3c48   : > { %6896 = vrot.lane.b32.xlu0 %v11234_v59, %s10395_s28 }
0x3cb6   : > { %v6899_v60 = vpop.permute.xlu1 %6898  ;;  %v6734_v44 = vpop.permute.xlu0 %6733 }
0x3cb7   : > { %9867 = vmatpush3.xpose.msk.msra.mxu1 %vm321_vm2, %v6734_v44  ;;  %9877 = vmatpush3.xpose.msk.msra.mxu0 %vm321_vm2, %v6899_v60 }
0x3cb8   : > { %9871 = vmatprep.subr.mxu1 %v10391_v36  ;;  %9886 = vmatprep.subr.mxu0 %v10391_v36 }
0x3cba   : > { %9869 = vmatmul.mubr.msk.f32.vlgmr.msra.gmra.mrb[76].mxu1 %vm321_vm2, %v11234_v59  ;;  %v6897_v61 = vpop.permute.xlu0 %6896 }
0x3cbb   : > { %9879 = vmatmul.mubr.msk.f32.vlgmr.msra.gmra.mrb[80].mxu0 %vm321_vm2, %v6897_v61  ;;  %9873 = vmatprep.mubr.msk.f32.mxu1 %vm10392_vm1, %v10391_v36 }
0x3cbc   : > { %9888 = vmatprep.mubr.msk.f32.mxu0 %vm10392_vm1, %v10391_v36  ;;  %9887 = vmatpush3.msra.mxu0 %v11266_v18 }
0x3cbd   : > { %9896 = vmatprep.subr.mxu0 %v10391_v36 }
0x3d8d   : > { %v6805_v0 = vpop.f32.mrb[76].mxu1 }
0x3d8e   : > { %v9870_v62 = vpop.f32.mrb[77].mxu1  ;;  %v6970_v63 = vpop.f32.mrb[80].mxu0  ;;  %v6809_v2 = vsel %vm321_vm2, %v6805_v0, -inf }
0x3d8f   : > { %6810 = vmax.xlane.f32.xlu0 %v6809_v2  ;;  %v9880_v4 = vpop.f32.mrb[81].mxu0  ;;  %v6974_v6 = vsel %vm321_vm2, %v6970_v63, -inf }
0x3d90   : > { %6975 = vmax.xlane.f32.xlu1 %v6974_v6 }
0x3da1   : > { %6985 = vrot.lane.b32.xlu1 %v11234_v59, %s10399_s4 }
0x3da5   : > { %7207 = vrot.lane.b32.xlu1 %v11234_v59, %s10398_s3 }
0x3e1c   : > { %v6811_v7 = vpop.xlane.xlu0 %6810 }
0x3e1d   : > { %v6812_v8 = vsub.f32 %v6805_v0, %v6811_v7  ;;  %v6976_v55 = vpop.xlane.xlu1 %6975 }
0x3e1e   : > { %v6977_v11 = vsub.f32 %v6970_v63, %v6976_v55 }
0x3e1f   : > { %v6813_v42 = vmul.f32 1.442695, %v6812_v8 }
0x3e20   : > { %v6978_v12 = vmul.f32 1.442695, %v6977_v11 }
0x3e21   : > { %10278 = vpow2.f32 %v6813_v42  ;;  %v6986_v23 = vpop.permute.xlu1 %6985 }
0x3e22   : > { %10280 = vpow2.f32 %v6978_v12 }
0x3e25   : > { %v7208_v32 = vpop.permute.xlu1 %7207 }
0x3e2b   : > { %v10279_v26 = vpop.eup %10278 }
0x3e2c   : > { %v6815_v14 = vsel %vm321_vm2, %v10279_v26, 0.0  ;;  %v10281_v3 = vpop.eup %10280 }
0x3e2d   : > { %6816 = vadd.xlane.f32.xlu0 %v6815_v14  ;;  %v6980_v17 = vsel %vm321_vm2, %v10281_v3, 0.0  ;;  %v11347_v14 = vld [vmem:[%s10506_s24 + $0x168] sm:$0xff] }
0x3e31   : > { %6981 = vadd.xlane.f32.xlu0 %v6980_v17 }
0x3e47   : > { %6820 = vrot.lane.b32.xlu0 %v11234_v59, %s10396_s29 }
0x3e4b   : > { %7209 = vrot.lane.b32.xlu0 %v11234_v59, %s10397_s30 }
0x3eba   : > { %v6817_v19 = vpop.xlane.xlu0 %6816 }
0x3ebb   : > { %10282 = vrcp.f32 %v6817_v19 }
0x3ebe   : > { %v6982_v10 = vpop.xlane.xlu0 %6981 }
0x3ebf   : > { %10284 = vrcp.f32 %v6982_v10 }
0x3ec2   : > { %v6821_v20 = vpop.permute.xlu0 %6820 }
0x3ec3   : > { %9872 = vmatpush3.msra.mxu1 %v6821_v20 }
0x3ec4   : > { %9881 = vmatprep.subr.mxu1 %v10391_v36 }
0x3ec5   : > { %v10283_v21 = vpop.eup %10282 }
0x3ec6   : > { %v6819_v22 = vmul.f32 %v10283_v21, %v10279_v26  ;;  %v7210_v29 = vpop.permute.xlu0 %7209 }
0x3ec8   : > { %9874 = vmatmul.mubr.msk.f32.vlgmr.msra.gmra.mrb[78].mxu1 %vm321_vm2, %v6819_v22 }
0x3ec9   : > { %v10285_v24 = vpop.eup %10284  ;;  %9882 = vmatpush3.msra.mxu1 %v6986_v23  ;;  %9883 = vmatprep.mubr.msk.f32.mxu1 %vm10392_vm1, %v10391_v36 }
0x3eca   : > { %v6984_v47 = vmul.f32 %v10285_v24, %v10281_v3  ;;  %9891 = vmatprep.subr.mxu1 %v10391_v36 }
0x3ecc   : > { %9884 = vmatmul.mubr.msk.f32.vlgmr.msra.gmra.mrb[80].mxu1 %vm321_vm2, %v6984_v47 }
0x3ecd   : > { %9893 = vmatprep.mubr.msk.f32.mxu1 %vm10392_vm1, %v10391_v36  ;;  %9892 = vmatpush3.msra.mxu1 %v11279_v25 }
0x3ece   : > { %9901 = vmatprep.subr.mxu1 %v10391_v36 }
0x3f9b   : > { %v6892_v27 = vpop.f32.mrb[78].mxu1 }
0x3f9c   : > { %v9875_v5 = vpop.f32.mrb[79].mxu1  ;;  %9894 = vmatmul.mubr.msk.f32.vlgmr.msra.gmra.mrb[82].mxu1 %vm321_vm2, %v6892_v27 }
0x3f9d   : > { %9903 = vmatprep.mubr.msk.f32.mxu1 %vm10392_vm1, %v10391_v36 }
0x3f9f   : > { %v7057_v28 = vpop.f32.mrb[80].mxu1 }
0x3fa0   : > { %v9885_v30 = vpop.f32.mrb[81].mxu1  ;;  %9889 = vmatmul.mubr.msk.f32.vlgmr.msra.gmra.mrb[82].mxu0 %vm321_vm2, %v7057_v28 }
0x3fa1   : > { %9897 = vmatpush3.xpose.msk.msra.mxu0 %vm321_vm2, %v7210_v29  ;;  %9898 = vmatprep.mubr.msk.f32.mxu0 %vm10392_vm1, %v10391_v36 }
0x3fa2   : > { %9906 = vmatprep.subr.mxu0 %v10391_v36 }
0x3fa4   : > { %9899 = vmatmul.mubr.msk.f32.vlgmr.msra.gmra.mrb[84].mxu0 %vm321_vm2, %v7208_v32 }
0x3fa5   : > { %9908 = vmatprep.mubr.msk.f32.mxu0 %vm10392_vm1, %v10391_v36  ;;  %9907 = vmatpush3.msra.mxu0 %v11312_v54 }
0x3fa6   : > { %9916 = vmatprep.subr.mxu0 %v10391_v36 }
0x406f   : > { %v7203_v33 = vpop.f32.mrb[82].mxu1 }
0x4070   : > { %v9895_v9 = vpop.f32.mrb[83].mxu1 }
0x4073   : > { %v7130_v34 = vpop.f32.mrb[82].mxu0 }
0x4074   : > { %v7204_v16 = vadd.f32 %v7203_v33, %v7130_v34  ;;  %v9890_v13 = vpop.f32.mrb[83].mxu0 }
0x4077   : > { %v7281_v35 = vpop.f32.mrb[84].mxu0 }
0x4078   : > { %v9900_v39 = vpop.f32.mrb[85].mxu0  ;;  %v7285_v15 = vsel %vm321_vm2, %v7281_v35, -inf }
0x4079   : > { %7286 = vmax.xlane.f32.xlu0 %v7285_v15 }
0x408f   : > { %7296 = vrot.lane.b32.xlu0 %v11234_v59, %s10402_s7 }
0x4093   : > { %7446 = vrot.lane.b32.xlu0 %v11234_v59, %s10401_s6 }
0x4106   : > { %v7287_v40 = vpop.xlane.xlu0 %7286 }
0x4107   : > { %v7288_v41 = vsub.f32 %v7281_v35, %v7287_v40 }
0x4109   : > { %v7289_v45 = vmul.f32 1.442695, %v7288_v41 }
0x410a   : > { %v7297_v46 = vpop.permute.xlu0 %7296 }
0x410b   : > { %10286 = vpow2.f32 %v7289_v45  ;;  %9902 = vmatpush3.msra.mxu1 %v7297_v46 }
0x410c   : > { %9911 = vmatprep.subr.mxu1 %v10391_v36 }
0x410e   : > { %v7447_v52 = vpop.permute.xlu0 %7446 }
0x4115   : > { %v10287_v38 = vpop.eup %10286 }
0x4116   : > { %v7291_v31 = vsel %vm321_vm2, %v10287_v38, 0.0 }
0x4117   : > { %7292 = vadd.xlane.f32.xlu1 %v7291_v31 }
0x4128   : > { %7448 = vrot.lane.b32.xlu1 %v11234_v59, %s10400_s5 }
0x41a4   : > { %v7293_v49 = vpop.xlane.xlu1 %7292 }
0x41a5   : > { %10288 = vrcp.f32 %v7293_v49 }
0x41a8   : > { %v7449_v51 = vpop.permute.xlu1 %7448 }
0x41af   : > { %v10289_v43 = vpop.eup %10288 }
0x41b0   : > { %v7295_v50 = vmul.f32 %v10289_v43, %v10287_v38 }
0x41b2   : > { %9904 = vmatmul.mubr.msk.f32.vlgmr.msra.gmra.mrb[84].mxu1 %vm321_vm2, %v7295_v50 }
0x41b3   : > { %9912 = vmatpush3.xpose.msk.msra.mxu1 %vm321_vm2, %v7449_v51  ;;  %9913 = vmatprep.mubr.msk.f32.mxu1 %vm10392_vm1, %v10391_v36 }
0x41b4   : > { %9921 = vmatprep.subr.mxu1 %v10391_v36 }
0x41b6   : > { %9914 = vmatmul.mubr.msk.f32.vlgmr.msra.gmra.mrb[86].mxu1 %vm321_vm2, %v7447_v52 }
0x41b7   : > { %9923 = vmatprep.mubr.msk.f32.mxu1 %vm10392_vm1, %v10391_v36  ;;  %9922 = vmatpush3.msra.mxu1 %v11347_v14 }
0x41b8   : > { %9931 = vmatprep.subr.mxu1 %v10391_v36 }
0x4285   : > { %v7368_v56 = vpop.f32.mrb[84].mxu1 }
0x4286   : > { %v9905_v57 = vpop.f32.mrb[85].mxu1  ;;  %9909 = vmatmul.mubr.msk.f32.vlgmr.msra.gmra.mrb[86].mxu0 %vm321_vm2, %v7368_v56 }
0x4287   : > { %9918 = vmatprep.mubr.msk.f32.mxu0 %vm10392_vm1, %v10391_v36 }
0x4289   : > { %v7520_v48 = vpop.f32.mrb[86].mxu1 }
0x428a   : > { %v9915_v60 = vpop.f32.mrb[87].mxu1  ;;  %v7524_v44 = vsel %vm321_vm2, %v7520_v48, -inf }
0x428b   : > { %7525 = vmax.xlane.f32.xlu1 %v7524_v44 }
0x429c   : > { %7686 = vrot.lane.b32.xlu1 %v11232_v58, %s10394_s27 }
0x42a0   : > { %7851 = vrot.lane.b32.xlu1 %v11232_v58, %s10393_s18 }
0x4318   : > { %v7526_v61 = vpop.xlane.xlu1 %7525 }
0x4319   : > { %v7527_v0 = vsub.f32 %v7520_v48, %v7526_v61 }
0x431b   : > { %v7528_v62 = vmul.f32 1.442695, %v7527_v0 }
0x431c   : > { %v7687_v42 = vpop.permute.xlu1 %7686 }
0x431d   : > { %10290 = vpow2.f32 %v7528_v62 }
0x4327   : > { %v10291_v63 = vpop.eup %10290 }
0x4328   : > { %v7530_v2 = vsel %vm321_vm2, %v10291_v63, 0.0 }
0x4329   : > { %7531 = vadd.xlane.f32.xlu0 %v7530_v2 }
0x433f   : > { %7535 = vrot.lane.b32.xlu0 %v11234_v59, %s10403_s8  ;;  %v7852_v59 = vpop.permute.xlu1 %7851 }
0x4343   : > { %7849 = vrot.lane.b32.xlu0 %v11232_v58, %s10395_s28 }
0x4359   : > { %v7441_v4 = vpop.f32.mrb[86].mxu0 }
0x435a   : > { %v7445_v6 = vadd.f32 %v7441_v4, %v7204_v16  ;;  %v9910_v7 = vpop.f32.mrb[87].mxu0 }
0x43b6   : > { %v7532_v8 = vpop.xlane.xlu0 %7531 }
0x43b7   : > { %10292 = vrcp.f32 %v7532_v8 }
0x43ba   : > { %v7536_v55 = vpop.permute.xlu0 %7535 }
0x43bb   : > { %9917 = vmatpush3.msra.mxu0 %v7536_v55 }
0x43bc   : > { %9926 = vmatprep.subr.mxu0 %v10391_v36 }
0x43be   : > { %v7850_v26 = vpop.permute.xlu0 %7849 }
0x43c1   : > { %v10293_v11 = vpop.eup %10292 }
0x43c2   : > { %v7534_v12 = vmul.f32 %v10293_v11, %v10291_v63 }
0x43c4   : > { %9919 = vmatmul.mubr.msk.f32.vlgmr.msra.gmra.mrb[88].mxu0 %vm321_vm2, %v7534_v12 }
0x43c5   : > { %9927 = vmatpush3.xpose.msk.msra.mxu0 %vm321_vm2, %v7687_v42  ;;  %9928 = vmatprep.mubr.msk.f32.mxu0 %vm10392_vm1, %v10391_v36 }
0x43c6   : > { %9936 = vmatprep.subr.mxu0 %v10391_v36 }
0x43c8   : > { %9929 = vmatmul.mubr.msk.f32.vlgmr.msra.gmra.mrb[90].mxu0 %vm321_vm2, %v11232_v58 }
0x43c9   : > { %9937 = vmatpush3.xpose.msk.msra.mxu0 %vm321_vm2, %v7852_v59  ;;  %9938 = vmatprep.mubr.msk.f32.mxu0 %vm10392_vm1, %v10391_v36 }
0x43ca   : > { %9946 = vmatprep.subr.mxu0 %v10391_v36 }
0x43cc   : > { %9939 = vmatmul.mubr.msk.f32.vlgmr.msra.gmra.mrb[92].mxu0 %vm321_vm2, %v7850_v26 }
0x43cd   : > { %9947 = vmatpush3.msra.mxu0 %v11266_v18  ;;  %9948 = vmatprep.mubr.msk.f32.mxu0 %vm10392_vm1, %v10391_v36 }
0x43ce   : > { %9956 = vmatprep.subr.mxu0 %v10391_v36 }
0x4497   : > { %v7607_v3 = vpop.f32.mrb[88].mxu0 }
0x4498   : > { %v9920_v17 = vpop.f32.mrb[89].mxu0  ;;  %9924 = vmatmul.mubr.msk.f32.vlgmr.msra.gmra.mrb[88].mxu1 %vm321_vm2, %v7607_v3 }
0x4499   : > { %9933 = vmatprep.mubr.msk.f32.mxu1 %vm10392_vm1, %v10391_v36 }
0x449b   : > { %v7758_v19 = vpop.f32.mrb[90].mxu0 }
0x449c   : > { %v9930_v18 = vpop.f32.mrb[91].mxu0  ;;  %v7762_v10 = vsel %vm321_vm2, %v7758_v19, -inf }
0x449d   : > { %7763 = vmax.xlane.f32.xlu1 %v7762_v10  ;;  %v9171_v10 = vld [vmem:[%s10506_s24 + $0x1d5] ss:$0 sm:$0xff] }
0x449f   : > { %v7923_v20 = vpop.f32.mrb[92].mxu0 }
0x44a0   : > { %v9940_v21 = vpop.f32.mrb[93].mxu0  ;;  %v7927_v22 = vsel %vm321_vm2, %v7923_v20, -inf }
0x44a1   : > { %7928 = vmax.xlane.f32.xlu0 %v7927_v22 }
0x452a   : > { %v7764_v23 = vpop.xlane.xlu1 %7763 }
0x452b   : > { %v7765_v24 = vsub.f32 %v7758_v19, %v7764_v23 }
0x452d   : > { %v7766_v47 = vmul.f32 1.442695, %v7765_v24 }
0x452e   : > { %v7929_v27 = vpop.xlane.xlu0 %7928 }
0x452f   : > { %10294 = vpow2.f32 %v7766_v47  ;;  %v7930_v5 = vsub.f32 %v7923_v20, %v7929_v27 }
0x4531   : > { %v7931_v28 = vmul.f32 1.442695, %v7930_v5 }
0x4533   : > { %10296 = vpow2.f32 %v7931_v28 }
0x4539   : > { %v10295_v29 = vpop.eup %10294 }
0x453a   : > { %v7768_v30 = vsel %vm321_vm2, %v10295_v29, 0.0 }
0x453b   : > { %7769 = vadd.xlane.f32.xlu0 %v7768_v30 }
0x453d   : > { %v10297_v32 = vpop.eup %10296 }
0x453e   : > { %v7933_v33 = vsel %vm321_vm2, %v10297_v32, 0.0 }
0x453f   : > { %7934 = vadd.xlane.f32.xlu1 %v7933_v33 }
0x4550   : > { %7938 = vrot.lane.b32.xlu1 %v11232_v58, %s10399_s4 }
0x4551   : > { %7773 = vrot.lane.b32.xlu0 %v11232_v58, %s10396_s29 }
0x4554   : > { %8162 = vrot.lane.b32.xlu1 %v11232_v58, %s10397_s30 }
0x4555   : > { %8160 = vrot.lane.b32.xlu0 %v11232_v58, %s10398_s3 }
0x456b   : > { %v7680_v9 = vpop.f32.mrb[88].mxu1 }
0x456c   : > { %v11366_v34 = vadd.f32 %v7680_v9, %v7445_v6  ;;  %v9925_v16 = vpop.f32.mrb[89].mxu1 }
0x456e   : > { %v8642_v20 = vadd.f32 %v9171_v10, %v11366_v34 }
0x45c8   : > { %v7770_v13 = vpop.xlane.xlu0 %7769 }
0x45c9   : > { %10298 = vrcp.f32 %v7770_v13 }
0x45cc   : > { %v7935_v35 = vpop.xlane.xlu1 %7934  ;;  %v7774_v39 = vpop.permute.xlu0 %7773 }
0x45cd   : > { %10300 = vrcp.f32 %v7935_v35  ;;  %9932 = vmatpush3.msra.mxu1 %v7774_v39 }
0x45ce   : > { %9941 = vmatprep.subr.mxu1 %v10391_v36 }
0x45d0   : > { %v7939_v41 = vpop.permute.xlu1 %7938 }
0x45d3   : > { %v10299_v15 = vpop.eup %10298 }
0x45d4   : > { %v7772_v40 = vmul.f32 %v10299_v15, %v10295_v29  ;;  %v8163_v43 = vpop.permute.xlu1 %8162 }
0x45d6   : > { %9934 = vmatmul.mubr.msk.f32.vlgmr.msra.gmra.mrb[90].mxu1 %vm321_vm2, %v7772_v40 }
0x45d7   : > { %v10301_v45 = vpop.eup %10300  ;;  %9942 = vmatpush3.msra.mxu1 %v7939_v41  ;;  %9943 = vmatprep.mubr.msk.f32.mxu1 %vm10392_vm1, %v10391_v36 }
0x45d8   : > { %v7937_v46 = vmul.f32 %v10301_v45, %v10297_v32  ;;  %9951 = vmatprep.subr.mxu1 %v10391_v36 }
0x45da   : > { %9944 = vmatmul.mubr.msk.f32.vlgmr.msra.gmra.mrb[92].mxu1 %vm321_vm2, %v7937_v46 }
0x45db   : > { %9952 = vmatpush3.msra.mxu1 %v11279_v25  ;;  %9953 = vmatprep.mubr.msk.f32.mxu1 %vm10392_vm1, %v10391_v36  ;;  %v8161_v25 = vpop.permute.xlu0 %8160 }
0x45dc   : > { %9961 = vmatprep.subr.mxu1 %v10391_v36 }
0x46a9   : > { %v7845_v38 = vpop.f32.mrb[90].mxu1 }
0x46aa   : > { %v9935_v31 = vpop.f32.mrb[91].mxu1  ;;  %9954 = vmatmul.mubr.msk.f32.vlgmr.msra.gmra.mrb[94].mxu1 %vm321_vm2, %v7845_v38 }
0x46ab   : > { %9963 = vmatprep.mubr.msk.f32.mxu1 %vm10392_vm1, %v10391_v36 }
0x46ad   : > { %v8010_v49 = vpop.f32.mrb[92].mxu1 }
0x46ae   : > { %v9945_v50 = vpop.f32.mrb[93].mxu1  ;;  %9949 = vmatmul.mubr.msk.f32.vlgmr.msra.gmra.mrb[94].mxu0 %vm321_vm2, %v8010_v49 }
0x46af   : > { %9957 = vmatpush3.xpose.msk.msra.mxu0 %vm321_vm2, %v8163_v43  ;;  %9958 = vmatprep.mubr.msk.f32.mxu0 %vm10392_vm1, %v10391_v36 }
0x46b0   : > { %9966 = vmatprep.subr.mxu0 %v10391_v36 }
0x46b2   : > { %9959 = vmatmul.mubr.msk.f32.vlgmr.msra.gmra.mrb[96].mxu0 %vm321_vm2, %v8161_v25  ;;  %v9172_v25 = vld [vmem:[%s10506_s24 + $0x1d6] ss:$0 sm:$0xff] }
0x46b3   : > { %9967 = vmatpush3.msra.mxu0 %v11312_v54  ;;  %9968 = vmatprep.mubr.msk.f32.mxu0 %vm10392_vm1, %v10391_v36 }
0x46b4   : > { %9976 = vmatprep.subr.mxu0 %v10391_v36 }
0x477d   : > { %v8156_v51 = vpop.f32.mrb[94].mxu1 }
0x477e   : > { %v9955_v52 = vpop.f32.mrb[95].mxu1 }
0x477f   : > { %v9173_v52 = vld [vmem:[%s10506_s24 + $0x1d7] ss:$0 sm:$0xff] }
0x4781   : > { %v8083_v56 = vpop.f32.mrb[94].mxu0 }
0x4782   : > { %v8157_v57 = vadd.f32 %v8156_v51, %v8083_v56  ;;  %v9950_v48 = vpop.f32.mrb[95].mxu0 }
0x4783   : > { %v8648_v48 = vld [vmem:[%s10506_s24 + $0x170] sm:$0xff] }
0x4785   : > { %v8234_v60 = vpop.f32.mrb[96].mxu0 }
0x4786   : > { %v9960_v44 = vpop.f32.mrb[97].mxu0  ;;  %v8238_v61 = vsel %vm321_vm2, %v8234_v60, -inf }
0x4787   : > { %8239 = vmax.xlane.f32.xlu1 %v8238_v61  ;;  %v8650_v61 = vld [vmem:[%s10506_s24 + $0x180] sm:$0xff] }
0x4798   : > { %8401 = vrot.lane.b32.xlu1 %v11232_v58, %s10400_s5 }
0x479c   : > { %8399 = vrot.lane.b32.xlu1 %v11232_v58, %s10401_s6 }
0x4814   : > { %v8240_v54 = vpop.xlane.xlu1 %8239 }
0x4815   : > { %v8241_v0 = vsub.f32 %v8234_v60, %v8240_v54  ;;  %v8649_v60 = vld [vmem:[%s10506_s24 + $0x178] sm:$0xff]  ;;  %v8651_v54 = vld [vmem:[%s10506_s24 + $0x188] sm:$0xff] }
0x4816   : > { %v10072_v44 = vpack.c.bf16 %v8649_v60, %v8648_v48 }
0x4817   : > { %v8242_v62 = vmul.f32 1.442695, %v8241_v0  ;;  %v10076_v0 = vpack.c.bf16 %v8651_v54, %v8650_v61 }
0x4818   : > { %v8402_v8 = vpop.permute.xlu1 %8401 }
0x4819   : > { %10302 = vpow2.f32 %v8242_v62 }
0x481c   : > { %v8400_v11 = vpop.permute.xlu1 %8399 }
0x4823   : > { %v10303_v63 = vpop.eup %10302 }
0x4824   : > { %v8244_v2 = vsel %vm321_vm2, %v10303_v63, 0.0 }
0x4825   : > { %8245 = vadd.xlane.f32.xlu0 %v8244_v2 }
0x483b   : > { %8249 = vrot.lane.b32.xlu0 %v11232_v58, %s10402_s7 }
0x48b2   : > { %v8246_v4 = vpop.xlane.xlu0 %8245 }
0x48b3   : > { %10304 = vrcp.f32 %v8246_v4 }
0x48b6   : > { %v8250_v6 = vpop.permute.xlu0 %8249 }
0x48b7   : > { %9962 = vmatpush3.msra.mxu1 %v8250_v6 }
0x48b8   : > { %9971 = vmatprep.subr.mxu1 %v10391_v36 }
0x48bd   : > { %v10305_v7 = vpop.eup %10304 }
0x48be   : > { %v8248_v55 = vmul.f32 %v10305_v7, %v10303_v63 }
0x48c0   : > { %9964 = vmatmul.mubr.msk.f32.vlgmr.msra.gmra.mrb[96].mxu1 %vm321_vm2, %v8248_v55  ;;  %v8653_v55 = vld [vmem:[%s10506_s24 + $0x190] sm:$0xff] }
0x48c1   : > { %9972 = vmatpush3.xpose.msk.msra.mxu1 %vm321_vm2, %v8402_v8  ;;  %9973 = vmatprep.mubr.msk.f32.mxu1 %vm10392_vm1, %v10391_v36 }
0x48c2   : > { %9981 = vmatprep.subr.mxu1 %v10391_v36 }
0x48c4   : > { %9974 = vmatmul.mubr.msk.f32.vlgmr.msra.gmra.mrb[98].mxu1 %vm321_vm2, %v8400_v11  ;;  %v8654_v11 = vld [vmem:[%s10506_s24 + $0x198] sm:$0xff] }
0x48c5   : > { %9982 = vmatpush3.msra.mxu1 %v11347_v14  ;;  %9983 = vmatprep.mubr.msk.f32.mxu1 %vm10392_vm1, %v10391_v36 }
0x4993   : > { %v8321_v42 = vpop.f32.mrb[96].mxu1 }
0x4994   : > { %v9965_v12 = vpop.f32.mrb[97].mxu1  ;;  %9969 = vmatmul.mubr.msk.f32.vlgmr.msra.gmra.mrb[98].mxu0 %vm321_vm2, %v8321_v42  ;;  %v10080_v42 = vpack.c.bf16 %v8654_v11, %v8653_v55 }
0x4995   : > { %9978 = vmatprep.mubr.msk.f32.mxu0 %vm10392_vm1, %v10391_v36  ;;  %v11418_v36 = vadd.f32 %v8642_v20, %v11203_v37  ;;  %v8655_v12 = vld [vmem:[%s10506_s24 + $0x1a0] sm:$0xff]  ;;  %v9174_v20 = vld [vmem:[%s10506_s24 + $0x1d8] ss:$0 sm:$0xff] }
0x4996   : > { %10081 = vmatprep.subr.bf16.mxu1 %v10080_v42 }
0x4997   : > { %v8473_v59 = vpop.f32.mrb[98].mxu1  ;;  %v8662_v23 = vsel %vm197_vm0, %v11418_v36, 0.0 }
0x4998   : > { %v9975_v26 = vpop.f32.mrb[99].mxu1  ;;  %v8477_v3 = vsel %vm321_vm2, %v8473_v59, -inf }
0x4999   : > { %8478 = vmax.xlane.f32.xlu0 %v8477_v3  ;;  %v8657_v3 = vld [vmem:[%s10506_s24 + $0x1b0] sm:$0xff] }
0x49af   : > { %8488 = vrot.lane.b32.xlu0 %v11232_v58, %s10403_s8 }
0x4a26   : > { %v8479_v14 = vpop.xlane.xlu0 %8478 }
0x4a27   : > { %v8480_v17 = vsub.f32 %v8473_v59, %v8479_v14  ;;  %v8656_v59 = vld [vmem:[%s10506_s24 + $0x1a8] sm:$0xff]  ;;  %v8658_v14 = vld [vmem:[%s10506_s24 + $0x1b8] sm:$0xff] }
0x4a28   : > { %v10084_v26 = vpack.c.bf16 %v8656_v59, %v8655_v12 }
0x4a29   : > { %v8481_v19 = vmul.f32 1.442695, %v8480_v17  ;;  %v10088_v17 = vpack.c.bf16 %v8658_v14, %v8657_v3  ;;  %v9177_v3 = vld [vmem:[%s10506_s24 + $0x1d9] ss:$0 sm:$0xff] }
0x4a2a   : > { %v8489_v18 = vpop.permute.xlu0 %8488 }
0x4a2b   : > { %10306 = vpow2.f32 %v8481_v19  ;;  %9977 = vmatpush3.msra.mxu0 %v8489_v18  ;;  %v8659_v19 = vld [vmem:[%s10506_s24 + $0x1c0] sm:$0xff]  ;;  %v8660_v18 = vld [vmem:[%s10506_s24 + $0x1c8] sm:$0xff] }
0x4a2c   : > { %10073 = vmatprep.subr.bf16.mxu0 %v10072_v44 }
0x4a35   : > { %v10307_v21 = vpop.eup %10306 }
0x4a36   : > { %v8483_v22 = vsel %vm321_vm2, %v10307_v21, 0.0 }
0x4a37   : > { %8484 = vadd.xlane.f32.xlu1 %v8483_v22 }
0x4a3b   : > { %8663 = vadd.xlane.f32.xlu1 %v8662_v23 }
0x4a67   : > { %v8394_v58 = vpop.f32.mrb[98].mxu0 }
0x4a68   : > { %v8398_v24 = vadd.f32 %v8394_v58, %v8157_v57  ;;  %v9970_v47 = vpop.f32.mrb[99].mxu0 }
0x4ac4   : > { %v8485_v27 = vpop.xlane.xlu1 %8484 }
0x4ac5   : > { %10308 = vrcp.f32 %v8485_v27 }
0x4ac8   : > { %v8664_v37 = vpop.xlane.xlu1 %8663 }
0x4ac9   : > { %v8668_v32 = vmul.f32 0.03125, %v8664_v37 }
0x4acb   : > { %v8670_v16 = vsub.f32 %v11418_v36, %v8668_v32 }
0x4acd   : > { %v8672_v15 = vmul.f32 %v8670_v16, %v8670_v16 }
0x4acf   : > { %v10309_v5 = vpop.eup %10308  ;;  %v8674_v40 = vsel %vm197_vm0, %v8672_v15, 0.0 }
0x4ad0   : > { %v8487_v28 = vmul.f32 %v10309_v5, %v10307_v21 }
0x4ad2   : > { %9979 = vmatmul.mubr.msk.f32.vlgmr.msra.gmra.mrb[100].mxu0 %vm321_vm2, %v8487_v28 }
0x4ad3   : > { %10075 = vmatpush3.bf16.msra.mxu0 %v10072_v44 }
0x4ad4   : > { %10077 = vmatprep.subr.bf16.mxu0 %v10076_v0 }
0x4ad7   : > { %10079 = vmatpush3.bf16.msra.mxu0 %v10076_v0 }
0x4ba5   : > { %v8560_v29 = vpop.f32.mrb[100].mxu0 }
0x4ba6   : > { %v9980_v30 = vpop.f32.mrb[101].mxu0  ;;  %9984 = vmatmul.mubr.msk.f32.vlgmr.msra.gmra.mrb[100].mxu1 %vm321_vm2, %v8560_v29 }
0x4ba7   : > { %10083 = vmatpush3.bf16.msra.mxu1 %v10080_v42 }
0x4ba8   : > { %10085 = vmatprep.subr.bf16.mxu1 %v10084_v26 }
0x4bab   : > { %10087 = vmatpush3.bf16.msra.mxu1 %v10084_v26 }
0x4bac   : > { %10089 = vmatprep.subr.bf16.mxu1 %v10088_v17 }
0x4baf   : > { %10091 = vmatpush3.bf16.msra.mxu1 %v10088_v17 }
0x4c79   : > { %v8633_v33 = vpop.f32.mrb[100].mxu1 }
0x4c7a   : > { %v8637_v9 = vadd.f32 %v8633_v33, %v8398_v24  ;;  %v9985_v34 = vpop.f32.mrb[101].mxu1 }
0x4c7c   : > { %v8643_v13 = vadd.f32 %v9171_v10, %v8637_v9  ;;  %v10092_v10 = vpack.c.bf16 %v8660_v18, %v8659_v19 }
0x4c7e   : > { %v11427_v35 = vadd.f32 %v8643_v13, %v11214_v1  ;;  %10093 = vmatprep.subr.bf16.mxu1 %v10092_v10 }
0x4c7f   : > { %10095 = vmatpush3.bf16.msra.mxu1 %v10092_v10 }
0x4c80   : > { %v8665_v39 = vsel %vm197_vm0, %v11427_v35, 0.0 }
0x4c81   : > { %8666 = vadd.xlane.f32.xlu1 %v8665_v39 }
0x4c85   : > { %8675 = vadd.xlane.f32.xlu1 %v8674_v40 }
0x4d0e   : > { %v8667_v41 = vpop.xlane.xlu1 %8666 }
0x4d0f   : > { %v8669_v45 = vmul.f32 0.03125, %v8667_v41 }
0x4d11   : > { %v8671_v46 = vsub.f32 %v11427_v35, %v8669_v45 }
0x4d12   : > { %v8676_v38 = vpop.xlane.xlu1 %8675 }
0x4d13   : > { %v8680_v31 = vmul.f32 0.03125, %v8676_v38  ;;  %v8673_v1 = vmul.f32 %v8671_v46, %v8671_v46 }
0x4d15   : > { %v8682_v49 = vadd.f32 1e-05, %v8680_v31  ;;  %v8677_v43 = vsel %vm197_vm0, %v8673_v1, 0.0 }
0x4d16   : > { %8678 = vadd.xlane.f32.xlu1 %v8677_v43 }
0x4d17   : > { %10310 = vrsqrt.f32 %v8682_v49 }
0x4d21   : > { %v10311_v50 = vpop.eup %10310 }
0x4d22   : > { %v8686_v51 = vmul.f32 %v10311_v50, %v8670_v16 }
0x4d24   : > { %v8692_v56 = vmul.f32 %v9172_v25, %v8686_v51 }
0x4d26   : > { %v8698_v57 = vadd.f32 %v9173_v52, %v8692_v56 }
0x4d28   : > { %9994 = vmatprep.mubr.msk.f32.mxu0 %vm197_vm0, %v8698_v57 }
0x4da3   : > { %v8679_v62 = vpop.xlane.xlu1 %8678 }
0x4da4   : > { %v8681_v63 = vmul.f32 0.03125, %v8679_v62 }
0x4da6   : > { %v8683_v2 = vadd.f32 1e-05, %v8681_v63 }
0x4da8   : > { %10312 = vrsqrt.f32 %v8683_v2 }
0x4db2   : > { %v10313_v4 = vpop.eup %10312 }
0x4db3   : > { %v8687_v6 = vmul.f32 %v10313_v4, %v8671_v46 }
0x4db5   : > { %v8693_v7 = vmul.f32 %v9172_v25, %v8687_v6 }
0x4db7   : > { %v8699_v8 = vadd.f32 %v9173_v52, %v8693_v7 }
0x4db9   : > { %9995 = vmatmul.mubr.msk.f32.vlgmr.msra.gmra.mrb[102].mxu0 %vm197_vm0, %v8699_v8 }
0x4e8c   : > { %v9996_v21 = vpop.f32.mrb[102].mxu0 }
0x4e8d   : > { %v8782_v22 = vadd.f32 %v9996_v21, %v9174_v20  ;;  %v8776_v23 = vpop.f32.mrb[103].mxu0 }
0x4e8e   : > { %v8777_v58 = vadd.f32 %v9174_v20, %v8776_v23 }
0x4e8f   : > { %v8788_v24 = vmul.f32 0.70710677, %v8782_v22  ;;  %v8786_v12 = vmul.f32 0.5, %v8782_v22 }
0x4e90   : > { %v8787_v47 = vmul.f32 0.70710677, %v8777_v58  ;;  %v8785_v11 = vmul.f32 0.5, %v8777_v58 }
0x4e91   : > { %v8794_v27 = vand.u32 2147483647, %v8788_v24  ;;  %vm8790_vm6 = vcmp.ge.f32.partialorder %v8788_v24, 0.0 }
0x4e92   : > { %v8793_v5 = vand.u32 2147483647, %v8787_v47  ;;  %vm8789_vm7 = vcmp.ge.f32.partialorder %v8787_v47, 0.0  ;;  %v8792_v2 = vsel %vm8790_vm6, 1.0, %v10404_v53 }
0x4e93   : > { %v8796_v28 = vmul.f32 0.3275911, %v8794_v27  ;;  %v8822_v32 = vsub.f32 0.0, %v8794_v27  ;;  %v8791_v7 = vsel %vm8789_vm7, 1.0, %v10404_v53 }
0x4e94   : > { %v8795_v29 = vmul.f32 0.3275911, %v8793_v5  ;;  %v8821_v33 = vsub.f32 0.0, %v8793_v5 }
0x4e95   : > { %v8798_v30 = vadd.f32 1.0, %v8796_v28  ;;  %v8824_v34 = vmul.f32 %v8822_v32, %v8794_v27 }
0x4e96   : > { %v8797_v37 = vadd.f32 1.0, %v8795_v29  ;;  %v8823_v39 = vmul.f32 %v8821_v33, %v8793_v5 }
0x4e97   : > { %10314 = vrcp.f32 %v8798_v30  ;;  %v8827_v41 = vmul.f32 1.442695, %v8824_v34 }
0x4e98   : > { %10316 = vrcp.f32 %v8797_v37  ;;  %v8825_v38 = vmul.f32 1.442695, %v8823_v39 }
0x4e99   : > { %10318 = vpow2.f32 %v8827_v41 }
0x4e9a   : > { %10320 = vpow2.f32 %v8825_v38 }
0x4ea1   : > { %v10315_v9 = vpop.eup %10314 }
0x4ea2   : > { %v10317_v16 = vpop.eup %10316  ;;  %v8804_v13 = vmul.f32 1.0614054, %v10315_v9 }
0x4ea3   : > { %v8803_v15 = vmul.f32 1.0614054, %v10317_v16  ;;  %v10319_v44 = vpop.eup %10318 }
0x4ea4   : > { %v8806_v40 = vadd.f32 -1.4531521, %v8804_v13  ;;  %v10321_v54 = vpop.eup %10320 }
0x4ea5   : > { %v8805_v45 = vadd.f32 -1.4531521, %v8803_v15 }
0x4ea6   : > { %v8808_v46 = vmul.f32 %v10315_v9, %v8806_v40 }
0x4ea7   : > { %v8807_v31 = vmul.f32 %v10317_v16, %v8805_v45 }
0x4ea8   : > { %v8810_v1 = vadd.f32 1.4214138, %v8808_v46 }
0x4ea9   : > { %v8809_v49 = vadd.f32 1.4214138, %v8807_v31 }
0x4eaa   : > { %v8812_v43 = vmul.f32 %v10315_v9, %v8810_v1 }
0x4eab   : > { %v8811_v50 = vmul.f32 %v10317_v16, %v8809_v49 }
0x4eac   : > { %v8814_v25 = vadd.f32 -0.28449672, %v8812_v43 }
0x4ead   : > { %v8813_v51 = vadd.f32 -0.28449672, %v8811_v50 }
0x4eae   : > { %v8816_v52 = vmul.f32 %v10315_v9, %v8814_v25 }
0x4eaf   : > { %v8815_v56 = vmul.f32 %v10317_v16, %v8813_v51 }
0x4eb0   : > { %v8818_v57 = vadd.f32 0.2548296, %v8816_v52 }
0x4eb1   : > { %v8817_v48 = vadd.f32 0.2548296, %v8815_v56 }
0x4eb2   : > { %v8820_v60 = vmul.f32 %v10315_v9, %v8818_v57 }
0x4eb3   : > { %v8819_v61 = vmul.f32 %v10317_v16, %v8817_v48 }
0x4eb4   : > { %v8830_v0 = vmul.f32 %v10319_v44, %v8820_v60 }
0x4eb5   : > { %v8829_v62 = vmul.f32 %v10321_v54, %v8819_v61 }
0x4eb6   : > { %v8832_v63 = vsub.f32 1.0, %v8830_v0 }
0x4eb7   : > { %v8831_v4 = vsub.f32 1.0, %v8829_v62 }
0x4eb8   : > { %v8834_v6 = vmul.f32 %v8832_v63, %v8792_v2 }
0x4eb9   : > { %v8833_v8 = vmul.f32 %v8831_v4, %v8791_v7 }
0x4eba   : > { %v8836_v55 = vadd.f32 1.0, %v8834_v6 }
0x4ebb   : > { %v8835_v42 = vadd.f32 1.0, %v8833_v8 }
0x4ebc   : > { %v8838_v26 = vmul.f32 %v8836_v55, %v8786_v12 }
0x4ebd   : > { %v8837_v59 = vmul.f32 %v8835_v42, %v8785_v11 }
0x4ebf   : > { %10013 = vmatprep.mubr.msk.f32.mxu1 %vm4474_vm5, %v8837_v59 }
0x4ec0   : > { %10014 = vmatmul.mubr.msk.f32.vlgmr.msra.gmra.mrb[102].mxu1 %vm4474_vm5, %v8838_v26 }
0x4f93   : > { %v10015_v14 = vpop.f32.mrb[102].mxu1 }
0x4f94   : > { %v8921_v17 = vadd.f32 %v10015_v14, %v9177_v3  ;;  %v8915_v19 = vpop.f32.mrb[103].mxu1 }
0x4f95   : > { %v8916_v53 = vadd.f32 %v9177_v3, %v8915_v19 }
0x4f96   : > { %v8925_v18 = vadd.f32 %v8921_v17, %v11427_v35 }
0x4f97   : > { %v8924_v10 = vadd.f32 %v8916_v53, %v11418_v36 }
0x4f98   : > { %8927 = vst.msk [vmem:[%s183_s16 + $0x8] sm:$0xff] %vm197_vm0, %v8925_v18 }
0x4f99   : > { %8926 = vst.msk [vmem:[%s183_s16] sm:$0xff] %vm197_vm0, %v8924_v10 }
0x4f9a PF: > { %p12_p7 = scmp.ge.s32.totalorder %s10442_s14, 4   ;;  %s11484_s9 = smov %s10378_s10 }
0x4f9b   : > { %s11485_s10 = smov %s10382_s11  ;;  %s11486_s11 = smov %s10452_s17 }
0x4f9c   : > { %s11487_s12 = smov %s10442_s14  ;;  %14 = sbr.rel (!%p12_p7) target bundleno = 3 (0x3), region = 71 }
0x4fa3   :  { %8949 = vsyncpa [#allocation3], 1 }
0x4fa4   :  { %8951 = vsyncpa [#allocation3 + $0x1], 1 }

</bundles_post_ra>
